<compile_context>
chip_gen: v6e
topology: v6e:2x2x1
jax: 0.10.0
libtpu: 0.0.40
codegen_flags: <defaults>
</compile_context>

<pallas_src>
import math

import jax
import jax.numpy as jnp
from jax.experimental import pallas as pl
from jax.experimental.pallas import tpu as pltpu

# ---------------- model config (small, consistent with the module) ----------
NUM_CLASSES = 10
IMAGE_SIZE = 16
PATCH = 4
DIM = 32
NUM_LAYERS = 2
NUM_HEADS = 2
HEAD_DIM = DIM // NUM_HEADS // 2                 # 8
EXPANSION = 4
HIDDEN = EXPANSION * DIM                         # 128
NUM_PATCHES = (IMAGE_SIZE // PATCH) ** 2         # 16
NUM_TOKENS = NUM_PATCHES + 1                     # 16 patches + 1 cls = 17
T_PAD = ((NUM_TOKENS + 7) // 8) * 8              # 24, sublane-aligned
C_PATCH = 3 * PATCH * PATCH                      # 48

_GELU_C = math.sqrt(2.0 / math.pi)


# ---------------- the fused forward kernel (one batch element / program) ----

def _vit_kernel(patches_ref, pw_ref, pb_ref, pos_ref, suffix_ref,
                wqkv_ref, wo_ref, subw_ref, lam_ref,
                ln1g_ref, ln1b_ref, ln2g_ref, ln2b_ref,
                fc1w_ref, fc1b_ref, fc2w_ref, fc2b_ref,
                headw_ref, headb_ref,
                out_ref, emb_ref):
    f32 = jnp.float32
    dn = (((1,), (1,)), ((), ()))                # contract last dims: q @ k^T

    def softmax_lastdim(s):
        m = jnp.max(s, axis=-1, keepdims=True)
        e = jnp.exp(s - m)
        # reciprocal on the (otherwise idle) EUP slot
        return e * pl.reciprocal(jnp.sum(e, axis=-1, keepdims=True), approx=True)

    def layernorm(v, g, b):
        mu = jnp.mean(v, axis=-1, keepdims=True)
        var = jnp.mean(jnp.square(v - mu), axis=-1, keepdims=True)
        return (v - mu) * jax.lax.rsqrt(var + 1e-5) * g + b

    # additive key mask for the padded token rows (keys >= NUM_TOKENS),
    # hoisted (broadcast_in_dim is not CSE'd by JAX) and reused in every head.
    key_ids = jax.lax.broadcasted_iota(jnp.int32, (1, T_PAD), 1)
    key_mask = jnp.where(key_ids < NUM_TOKENS, 0.0, -1e30).astype(f32)
    key_mask = jnp.broadcast_to(key_mask, (T_PAD, T_PAD))

    # ---- patch embedding; cls+pos and zero-padding rows are pre-packed -----
    tok = jnp.dot(patches_ref[0], pw_ref[...],
                  preferred_element_type=f32) + pb_ref[...]          # (NP, D)
    x = jnp.concatenate([tok + pos_ref[...], suffix_ref[...]], axis=0)  # (T_PAD, D)

    # ---- transformer blocks, everything register/VMEM resident -------------
    for l in range(NUM_LAYERS):
        qkv = jnp.dot(x, wqkv_ref[l], preferred_element_type=f32)    # (T_PAD, 3D)
        lam_b = jnp.broadcast_to(lam_ref[l], (T_PAD, T_PAD))         # hoisted
        subw = subw_ref[l]                                           # (1, 2*HD)

        heads = []
        for h in range(NUM_HEADS):
            c1 = 2 * h * HEAD_DIM
            c2 = c1 + HEAD_DIM
            c3 = c2 + HEAD_DIM
            q1 = qkv[:, c1:c2]                   # 1/sqrt(HD) folded into wqkv
            q2 = qkv[:, c2:c3]
            k1 = qkv[:, DIM + c1:DIM + c2]
            k2 = qkv[:, DIM + c2:DIM + c3]
            vh = qkv[:, 2 * DIM + c1:2 * DIM + c3]                   # (T_PAD, 2*HD)

            s1 = jax.lax.dot_general(q1, k1, dn, preferred_element_type=f32) + key_mask
            s2 = jax.lax.dot_general(q2, k2, dn, preferred_element_type=f32) + key_mask
            aw = softmax_lastdim(s1) - lam_b * softmax_lastdim(s2)
            oh = jnp.dot(aw, vh, preferred_element_type=f32)         # (T_PAD, 2*HD)
            # per-head RMSNorm (eps=1e-5); (1 - lambda_init) folded into subw
            ms = jnp.mean(oh * oh, axis=-1, keepdims=True)
            heads.append(oh * jax.lax.rsqrt(ms + 1e-5) * subw)

        attn_cat = jnp.concatenate(heads, axis=-1)                   # (T_PAD, D)
        attn = jnp.dot(attn_cat, wo_ref[l], preferred_element_type=f32)
        x = x + layernorm(attn, ln1g_ref[l], ln1b_ref[l])

        h1 = jnp.dot(x, fc1w_ref[l], preferred_element_type=f32) + fc1b_ref[l]
        # tanh-approx GELU (tanh runs on the EUP slot)
        h1 = 0.5 * h1 * (1.0 + jnp.tanh(_GELU_C * (h1 + 0.044715 * h1 * h1 * h1)))
        mo = jnp.dot(h1, fc2w_ref[l], preferred_element_type=f32) + fc2b_ref[l]
        x = x + layernorm(mo, ln2g_ref[l], ln2b_ref[l])

    # ---- embedding (token 0, as in the reference module) + head ------------
    emb = x[0:1, :]                                                  # (1, D)
    emb_ref[0] = emb
    out_ref[0] = (jnp.dot(emb, headw_ref[...], preferred_element_type=f32)
                  + headb_ref[...])


# ---------------- wrapper ----------------------------------------------------

def vit_forward(x, p, return_embedding=False):
    """x: (B, 3, H, W) NCHW; p: packed params (see pack_params)."""
    B = x.shape[0]
    hp = IMAGE_SIZE // PATCH
    # Conv2d(kernel=stride=patch) == matmul over channel-major flattened patches.
    patches = x.reshape(B, 3, hp, PATCH, hp, PATCH)
    patches = patches.transpose(0, 2, 4, 1, 3, 5).reshape(B, NUM_PATCHES, C_PATCH)

    def full(shape):
        return pl.BlockSpec(shape, lambda b, _s=shape: (0,) * len(_s))

    in_specs = [
        pl.BlockSpec((1, NUM_PATCHES, C_PATCH), lambda b: (b, 0, 0)),   # patches
        full((C_PATCH, DIM)),                    # patch_w
        full((1, DIM)),                          # patch_b
        full((NUM_PATCHES, DIM)),                # pos (patch rows)
        full((T_PAD - NUM_PATCHES, DIM)),        # suffix: [cls+pos_cls ; zeros]
        full((NUM_LAYERS, DIM, 3 * DIM)),        # wqkv (Q scaled)
        full((NUM_LAYERS, DIM, DIM)),            # wo
        full((NUM_LAYERS, 1, 2 * HEAD_DIM)),     # subln weight * (1-lambda_init)
        full((NUM_LAYERS, 1, 1)),                # lambda_full
        full((NUM_LAYERS, 1, DIM)),              # ln1_g
        full((NUM_LAYERS, 1, DIM)),              # ln1_b
        full((NUM_LAYERS, 1, DIM)),              # ln2_g
        full((NUM_LAYERS, 1, DIM)),              # ln2_b
        full((NUM_LAYERS, DIM, HIDDEN)),         # fc1_w
        full((NUM_LAYERS, 1, HIDDEN)),           # fc1_b
        full((NUM_LAYERS, HIDDEN, DIM)),         # fc2_w
        full((NUM_LAYERS, 1, DIM)),              # fc2_b
        full((DIM, NUM_CLASSES)),                # head_w
        full((1, NUM_CLASSES)),                  # head_b
    ]
    out_specs = (
        pl.BlockSpec((1, 1, NUM_CLASSES), lambda b: (b, 0, 0)),
        pl.BlockSpec((1, 1, DIM), lambda b: (b, 0, 0)),
    )

    logits3, emb3 = pl.pallas_call(
        _vit_kernel,
        grid=(B,),
        in_specs=in_specs,
        out_specs=out_specs,
        out_shape=(jax.ShapeDtypeStruct((B, 1, NUM_CLASSES), jnp.float32),
                   jax.ShapeDtypeStruct((B, 1, DIM), jnp.float32)),
        compiler_params=pltpu.CompilerParams(
            dimension_semantics=("parallel",)),
    )(patches, p["patch_w"], p["patch_b"], p["pos_patch"], p["suffix"],
      p["wqkv"], p["wo"], p["subw"], p["lam"],
      p["ln1_g"], p["ln1_b"], p["ln2_g"], p["ln2_b"],
      p["fc1_w"], p["fc1_b"], p["fc2_w"], p["fc2_b"],
      p["head_w"], p["head_b"])

    logits = logits3.reshape(B, NUM_CLASSES)
    if return_embedding:
        return logits, emb3.reshape(B, DIM)
    return logits


# ---------------- deterministic parameter init + packing --------------------

def init_params(key):
    keys = iter(jax.random.split(key, 64))

    def nrm(shape, std=0.02):
        return std * jax.random.normal(next(keys), shape, jnp.float32)

    params = dict(
        cls=jax.random.normal(next(keys), (1, 1, DIM), jnp.float32),
        pos=jax.random.normal(next(keys), (1, NUM_TOKENS, DIM), jnp.float32),
        patch_w=nrm((C_PATCH, DIM)),
        patch_b=jnp.zeros((DIM,), jnp.float32),
        head_w=nrm((DIM, NUM_CLASSES)),
        head_b=jnp.zeros((NUM_CLASSES,), jnp.float32),
        layers=[],
    )
    for i in range(NUM_LAYERS):
        params["layers"].append(dict(
            layer_num=i,
            wq=nrm((DIM, DIM)), wk=nrm((DIM, DIM)),
            wv=nrm((DIM, DIM)), wo=nrm((DIM, DIM)),
            lq1=nrm((HEAD_DIM,), 0.1), lk1=nrm((HEAD_DIM,), 0.1),
            lq2=nrm((HEAD_DIM,), 0.1), lk2=nrm((HEAD_DIM,), 0.1),
            subln_w=jnp.ones((2 * HEAD_DIM,), jnp.float32),
            ln1_g=jnp.ones((DIM,), jnp.float32), ln1_b=jnp.zeros((DIM,), jnp.float32),
            ln2_g=jnp.ones((DIM,), jnp.float32), ln2_b=jnp.zeros((DIM,), jnp.float32),
            fc1_w=nrm((DIM, HIDDEN)), fc1_b=jnp.zeros((HIDDEN,), jnp.float32),
            fc2_w=nrm((HIDDEN, DIM)), fc2_b=jnp.zeros((DIM,), jnp.float32),
        ))
    return params


def pack_params(params):
    """Stack per-layer weights and fold constants for the fused kernel."""
    L = params["layers"]
    nl = len(L)
    scaling = 1.0 / math.sqrt(HEAD_DIM)

    def stk(name, shape):
        return jnp.stack([lyr[name] for lyr in L]).reshape(shape)

    wqkv_list, subw_list, lam_list = [], [], []
    for lyr in L:
        lam_init = 0.8 - 0.6 * math.exp(-0.3 * lyr["layer_num"])
        lam1 = jnp.exp(jnp.sum(lyr["lq1"] * lyr["lk1"]))
        lam2 = jnp.exp(jnp.sum(lyr["lq2"] * lyr["lk2"]))
        lam_list.append((lam1 - lam2 + lam_init).astype(jnp.float32).reshape(1, 1))
        # fold 1/sqrt(HD) into the Q columns of the fused QKV weight
        wqkv_list.append(jnp.concatenate(
            [lyr["wq"] * scaling, lyr["wk"], lyr["wv"]], axis=1))
        # fold (1 - lambda_init) into the per-head RMSNorm weight
        subw_list.append((lyr["subln_w"] * (1.0 - lam_init)).reshape(1, 2 * HEAD_DIM))

    pos2 = params["pos"].reshape(NUM_TOKENS, DIM)
    cls2 = params["cls"].reshape(1, DIM)
    # suffix rows of the padded token slab: row 0 = cls + pos_cls, rest zeros
    suffix = jnp.zeros((T_PAD - NUM_PATCHES, DIM), jnp.float32)
    suffix = suffix.at[0:1].set(cls2 + pos2[NUM_PATCHES:NUM_PATCHES + 1])

    return dict(
        patch_w=params["patch_w"],
        patch_b=params["patch_b"].reshape(1, DIM),
        pos_patch=pos2[:NUM_PATCHES],
        suffix=suffix,
        wqkv=jnp.stack(wqkv_list),                                   # (L, D, 3D)
        wo=jnp.stack([lyr["wo"] for lyr in L]),                      # (L, D, D)
        subw=jnp.stack(subw_list),                                   # (L, 1, 2*HD)
        lam=jnp.stack(lam_list),                                     # (L, 1, 1)
        ln1_g=stk("ln1_g", (nl, 1, DIM)), ln1_b=stk("ln1_b", (nl, 1, DIM)),
        ln2_g=stk("ln2_g", (nl, 1, DIM)), ln2_b=stk("ln2_b", (nl, 1, DIM)),
        fc1_w=jnp.stack([lyr["fc1_w"] for lyr in L]),                # (L, D, HID)
        fc1_b=stk("fc1_b", (nl, 1, HIDDEN)),
        fc2_w=jnp.stack([lyr["fc2_w"] for lyr in L]),                # (L, HID, D)
        fc2_b=stk("fc2_b", (nl, 1, DIM)),
        head_w=params["head_w"],
        head_b=params["head_b"].reshape(1, NUM_CLASSES),
    )


if __name__ == "__main__":
    key = jax.random.PRNGKey(0)
    pkey, xkey = jax.random.split(key)
    params = pack_params(init_params(pkey))
    x = jax.random.normal(xkey, (2, 3, IMAGE_SIZE, IMAGE_SIZE), jnp.float32)  # NCHW

    fwd = jax.jit(vit_forward)
    logits = fwd(x, params)
    logits = jax.block_until_ready(logits)
    assert logits.shape == (2, NUM_CLASSES)
    assert bool(jnp.all(jnp.isfinite(logits)))
    print("KERNEL_OK")
</pallas_src>

<mosaic_0001>
module attributes {stable_mosaic.version = 11 : i64} {
  func.func @_vit_kernel(%arg0: i32, %arg1: memref<1x16x48xf32, #tpu.memory_space<vmem>>, %arg2: memref<48x32xf32, #tpu.memory_space<vmem>>, %arg3: memref<1x32xf32, #tpu.memory_space<vmem>>, %arg4: memref<16x32xf32, #tpu.memory_space<vmem>>, %arg5: memref<8x32xf32, #tpu.memory_space<vmem>>, %arg6: memref<2x32x96xf32, #tpu.memory_space<vmem>>, %arg7: memref<2x32x32xf32, #tpu.memory_space<vmem>>, %arg8: memref<2x1x16xf32, #tpu.memory_space<vmem>>, %arg9: memref<2x1x1xf32, #tpu.memory_space<vmem>>, %arg10: memref<2x1x32xf32, #tpu.memory_space<vmem>>, %arg11: memref<2x1x32xf32, #tpu.memory_space<vmem>>, %arg12: memref<2x1x32xf32, #tpu.memory_space<vmem>>, %arg13: memref<2x1x32xf32, #tpu.memory_space<vmem>>, %arg14: memref<2x32x128xf32, #tpu.memory_space<vmem>>, %arg15: memref<2x1x128xf32, #tpu.memory_space<vmem>>, %arg16: memref<2x128x32xf32, #tpu.memory_space<vmem>>, %arg17: memref<2x1x32xf32, #tpu.memory_space<vmem>>, %arg18: memref<32x10xf32, #tpu.memory_space<vmem>>, %arg19: memref<1x10xf32, #tpu.memory_space<vmem>>, %arg20: memref<1x1x10xf32, #tpu.memory_space<vmem>>, %arg21: memref<1x1x32xf32, #tpu.memory_space<vmem>>) attributes {dimension_semantics = [#tpu.dimension_semantics<parallel>], iteration_bounds = array<i64: 2>, scalar_prefetch = 0 : i64, scratch_operands = 0 : i64, tpu.core_type = #tpu.core_type<tc>, window_params = [{transform_indices = @transform_0, window_bounds = array<i64: 1, 16, 48>}, {pipeline_mode = #tpu.pipeline_mode<synchronous>, transform_indices = @transform_1, window_bounds = array<i64: 48, 32>}, {pipeline_mode = #tpu.pipeline_mode<synchronous>, transform_indices = @transform_2, window_bounds = array<i64: 1, 32>}, {pipeline_mode = #tpu.pipeline_mode<synchronous>, transform_indices = @transform_3, window_bounds = array<i64: 16, 32>}, {pipeline_mode = #tpu.pipeline_mode<synchronous>, transform_indices = @transform_4, window_bounds = array<i64: 8, 32>}, {pipeline_mode = #tpu.pipeline_mode<synchronous>, transform_indices = @transform_5, window_bounds = array<i64: 2, 32, 96>}, {pipeline_mode = #tpu.pipeline_mode<synchronous>, transform_indices = @transform_6, window_bounds = array<i64: 2, 32, 32>}, {pipeline_mode = #tpu.pipeline_mode<synchronous>, transform_indices = @transform_7, window_bounds = array<i64: 2, 1, 16>}, {pipeline_mode = #tpu.pipeline_mode<synchronous>, transform_indices = @transform_8, window_bounds = array<i64: 2, 1, 1>}, {pipeline_mode = #tpu.pipeline_mode<synchronous>, transform_indices = @transform_9, window_bounds = array<i64: 2, 1, 32>}, {pipeline_mode = #tpu.pipeline_mode<synchronous>, transform_indices = @transform_10, window_bounds = array<i64: 2, 1, 32>}, {pipeline_mode = #tpu.pipeline_mode<synchronous>, transform_indices = @transform_11, window_bounds = array<i64: 2, 1, 32>}, {pipeline_mode = #tpu.pipeline_mode<synchronous>, transform_indices = @transform_12, window_bounds = array<i64: 2, 1, 32>}, {pipeline_mode = #tpu.pipeline_mode<synchronous>, transform_indices = @transform_13, window_bounds = array<i64: 2, 32, 128>}, {pipeline_mode = #tpu.pipeline_mode<synchronous>, transform_indices = @transform_14, window_bounds = array<i64: 2, 1, 128>}, {pipeline_mode = #tpu.pipeline_mode<synchronous>, transform_indices = @transform_15, window_bounds = array<i64: 2, 128, 32>}, {pipeline_mode = #tpu.pipeline_mode<synchronous>, transform_indices = @transform_16, window_bounds = array<i64: 2, 1, 32>}, {pipeline_mode = #tpu.pipeline_mode<synchronous>, transform_indices = @transform_17, window_bounds = array<i64: 32, 10>}, {pipeline_mode = #tpu.pipeline_mode<synchronous>, transform_indices = @transform_18, window_bounds = array<i64: 1, 10>}, {transform_indices = @transform_19, window_bounds = array<i64: 1, 1, 10>}, {transform_indices = @transform_20, window_bounds = array<i64: 1, 1, 32>}]} {
    %0 = tpu.iota {dimensions = array<i32: 1>} : vector<1x24xi32>
    %c17_i32 = arith.constant 17 : i32
    %1 = vector.broadcast %c17_i32 : i32 to vector<1x24xi32>
    %2 = arith.cmpi slt, %0, %1 : vector<1x24xi32>
    %cst = arith.constant 0.000000e+00 : f32
    %cst_0 = arith.constant -1.000000e+30 : f32
    %3 = vector.broadcast %cst : f32 to vector<1x24xf32>
    %4 = vector.broadcast %cst_0 : f32 to vector<1x24xf32>
    %5 = arith.select %2, %3, %4 : vector<1x24xi1>, vector<1x24xf32>
    %6 = vector.shape_cast %5 : vector<1x24xf32> to vector<1x24xf32>
    %7 = vector.broadcast %6 : vector<1x24xf32> to vector<24x24xf32>
    %c0 = arith.constant 0 : index
    %c0_1 = arith.constant 0 : index
    %c0_2 = arith.constant 0 : index
    %8 = vector.load %arg1[%c0, %c0_1, %c0_2] : memref<1x16x48xf32, #tpu.memory_space<vmem>>, vector<1x16x48xf32>
    %9 = vector.shape_cast %8 : vector<1x16x48xf32> to vector<16x48xf32>
    %c0_3 = arith.constant 0 : index
    %c0_4 = arith.constant 0 : index
    %10 = vector.load %arg2[%c0_3, %c0_4] : memref<48x32xf32, #tpu.memory_space<vmem>>, vector<48x32xf32>
    %cst_5 = arith.constant dense<0.000000e+00> : vector<16x32xf32>
    %11 = tpu.matmul %9, %10, %cst_5 {dimension_numbers = #tpu.dot_dimension_numbers<[1], [0], [0], [1], [0, 0, 1, 1], [], []>} : vector<16x48xf32>, vector<48x32xf32>, vector<16x32xf32> -> vector<16x32xf32>
    %c0_6 = arith.constant 0 : index
    %c0_7 = arith.constant 0 : index
    %12 = vector.load %arg3[%c0_6, %c0_7] : memref<1x32xf32, #tpu.memory_space<vmem>>, vector<1x32xf32>
    %13 = vector.broadcast %12 : vector<1x32xf32> to vector<16x32xf32>
    %14 = arith.addf %11, %13 : vector<16x32xf32>
    %c0_8 = arith.constant 0 : index
    %c0_9 = arith.constant 0 : index
    %15 = vector.load %arg4[%c0_8, %c0_9] : memref<16x32xf32, #tpu.memory_space<vmem>>, vector<16x32xf32>
    %16 = arith.addf %14, %15 : vector<16x32xf32>
    %c0_10 = arith.constant 0 : index
    %c0_11 = arith.constant 0 : index
    %17 = vector.load %arg5[%c0_10, %c0_11] : memref<8x32xf32, #tpu.memory_space<vmem>>, vector<8x32xf32>
    %18 = tpu.concatenate %16, %17 in 0 : vector<16x32xf32>, vector<8x32xf32> -> vector<24x32xf32>
    %c0_12 = arith.constant 0 : index
    %c0_13 = arith.constant 0 : index
    %c0_14 = arith.constant 0 : index
    %19 = vector.load %arg6[%c0_12, %c0_13, %c0_14] : memref<2x32x96xf32, #tpu.memory_space<vmem>>, vector<1x32x96xf32>
    %20 = vector.shape_cast %19 : vector<1x32x96xf32> to vector<32x96xf32>
    %cst_15 = arith.constant dense<0.000000e+00> : vector<24x96xf32>
    %21 = tpu.matmul %18, %20, %cst_15 {dimension_numbers = #tpu.dot_dimension_numbers<[1], [0], [0], [1], [0, 0, 1, 1], [], []>} : vector<24x32xf32>, vector<32x96xf32>, vector<24x96xf32> -> vector<24x96xf32>
    %c0_16 = arith.constant 0 : index
    %c0_17 = arith.constant 0 : index
    %c0_18 = arith.constant 0 : index
    %22 = vector.load %arg9[%c0_16, %c0_17, %c0_18] : memref<2x1x1xf32, #tpu.memory_space<vmem>>, vector<1x1x1xf32>
    %23 = vector.shape_cast %22 : vector<1x1x1xf32> to vector<1x1xf32>
    %24 = vector.shape_cast %23 : vector<1x1xf32> to vector<1x1xf32>
    %25 = vector.broadcast %24 : vector<1x1xf32> to vector<24x24xf32>
    %c0_19 = arith.constant 0 : index
    %c0_20 = arith.constant 0 : index
    %c0_21 = arith.constant 0 : index
    %26 = vector.load %arg8[%c0_19, %c0_20, %c0_21] : memref<2x1x16xf32, #tpu.memory_space<vmem>>, vector<1x1x16xf32>
    %27 = vector.shape_cast %26 : vector<1x1x16xf32> to vector<1x16xf32>
    %28 = vector.extract_strided_slice %21 {offsets = [0, 0], sizes = [24, 8], strides = [1, 1]} : vector<24x96xf32> to vector<24x8xf32>
    %29 = vector.extract_strided_slice %21 {offsets = [0, 8], sizes = [24, 8], strides = [1, 1]} : vector<24x96xf32> to vector<24x8xf32>
    %30 = vector.extract_strided_slice %21 {offsets = [0, 32], sizes = [24, 8], strides = [1, 1]} : vector<24x96xf32> to vector<24x8xf32>
    %31 = vector.extract_strided_slice %21 {offsets = [0, 40], sizes = [24, 8], strides = [1, 1]} : vector<24x96xf32> to vector<24x8xf32>
    %32 = vector.extract_strided_slice %21 {offsets = [0, 64], sizes = [24, 16], strides = [1, 1]} : vector<24x96xf32> to vector<24x16xf32>
    %cst_22 = arith.constant dense<0.000000e+00> : vector<24x24xf32>
    %33 = tpu.matmul %28, %30, %cst_22 {dimension_numbers = #tpu.dot_dimension_numbers<[1], [1], [0], [0], [0, 0, 1, 0], [], []>} : vector<24x8xf32>, vector<24x8xf32>, vector<24x24xf32> -> vector<24x24xf32>
    %34 = arith.addf %33, %7 : vector<24x24xf32>
    %cst_23 = arith.constant dense<0.000000e+00> : vector<24x24xf32>
    %35 = tpu.matmul %29, %31, %cst_23 {dimension_numbers = #tpu.dot_dimension_numbers<[1], [1], [0], [0], [0, 0, 1, 0], [], []>} : vector<24x8xf32>, vector<24x8xf32>, vector<24x24xf32> -> vector<24x24xf32>
    %36 = arith.addf %35, %7 : vector<24x24xf32>
    %cst_24 = arith.constant dense<0xFF800000> : vector<24xf32>
    %37 = vector.multi_reduction <maximumf>, %34, %cst_24 [1] : vector<24x24xf32> to vector<24xf32>
    %38 = vector.shape_cast %37 : vector<24xf32> to vector<24x1xf32>
    %39 = vector.broadcast %38 : vector<24x1xf32> to vector<24x24xf32>
    %40 = arith.subf %34, %39 : vector<24x24xf32>
    %41 = math.exp %40 : vector<24x24xf32>
    %cst_25 = arith.constant dense<0.000000e+00> : vector<24xf32>
    %42 = vector.multi_reduction <add>, %41, %cst_25 [1] : vector<24x24xf32> to vector<24xf32>
    %43 = vector.shape_cast %42 : vector<24xf32> to vector<24x1xf32>
    %44 = tpu.reciprocal %43 {approx = true} : vector<24x1xf32> -> vector<24x1xf32>
    %45 = vector.broadcast %44 : vector<24x1xf32> to vector<24x24xf32>
    %46 = arith.mulf %41, %45 : vector<24x24xf32>
    %cst_26 = arith.constant dense<0xFF800000> : vector<24xf32>
    %47 = vector.multi_reduction <maximumf>, %36, %cst_26 [1] : vector<24x24xf32> to vector<24xf32>
    %48 = vector.shape_cast %47 : vector<24xf32> to vector<24x1xf32>
    %49 = vector.broadcast %48 : vector<24x1xf32> to vector<24x24xf32>
    %50 = arith.subf %36, %49 : vector<24x24xf32>
    %51 = math.exp %50 : vector<24x24xf32>
    %cst_27 = arith.constant dense<0.000000e+00> : vector<24xf32>
    %52 = vector.multi_reduction <add>, %51, %cst_27 [1] : vector<24x24xf32> to vector<24xf32>
    %53 = vector.shape_cast %52 : vector<24xf32> to vector<24x1xf32>
    %54 = tpu.reciprocal %53 {approx = true} : vector<24x1xf32> -> vector<24x1xf32>
    %55 = vector.broadcast %54 : vector<24x1xf32> to vector<24x24xf32>
    %56 = arith.mulf %51, %55 : vector<24x24xf32>
    %57 = arith.mulf %25, %56 : vector<24x24xf32>
    %58 = arith.subf %46, %57 : vector<24x24xf32>
    %cst_28 = arith.constant dense<0.000000e+00> : vector<24x16xf32>
    %59 = tpu.matmul %58, %32, %cst_28 {dimension_numbers = #tpu.dot_dimension_numbers<[1], [0], [0], [1], [0, 0, 1, 1], [], []>} : vector<24x24xf32>, vector<24x16xf32>, vector<24x16xf32> -> vector<24x16xf32>
    %60 = arith.mulf %59, %59 : vector<24x16xf32>
    %cst_29 = arith.constant dense<0.000000e+00> : vector<24xf32>
    %61 = vector.multi_reduction <add>, %60, %cst_29 [1] : vector<24x16xf32> to vector<24xf32>
    %62 = vector.shape_cast %61 : vector<24xf32> to vector<24x1xf32>
    %cst_30 = arith.constant 1.600000e+01 : f32
    %63 = vector.broadcast %cst_30 : f32 to vector<24x1xf32>
    %64 = arith.divf %62, %63 : vector<24x1xf32>
    %cst_31 = arith.constant 9.99999974E-6 : f32
    %65 = vector.broadcast %cst_31 : f32 to vector<24x1xf32>
    %66 = arith.addf %64, %65 : vector<24x1xf32>
    %67 = math.rsqrt %66 : vector<24x1xf32>
    %68 = vector.broadcast %67 : vector<24x1xf32> to vector<24x16xf32>
    %69 = arith.mulf %59, %68 : vector<24x16xf32>
    %70 = vector.broadcast %27 : vector<1x16xf32> to vector<24x16xf32>
    %71 = arith.mulf %69, %70 : vector<24x16xf32>
    %72 = vector.extract_strided_slice %21 {offsets = [0, 16], sizes = [24, 8], strides = [1, 1]} : vector<24x96xf32> to vector<24x8xf32>
    %73 = vector.extract_strided_slice %21 {offsets = [0, 24], sizes = [24, 8], strides = [1, 1]} : vector<24x96xf32> to vector<24x8xf32>
    %74 = vector.extract_strided_slice %21 {offsets = [0, 48], sizes = [24, 8], strides = [1, 1]} : vector<24x96xf32> to vector<24x8xf32>
    %75 = vector.extract_strided_slice %21 {offsets = [0, 56], sizes = [24, 8], strides = [1, 1]} : vector<24x96xf32> to vector<24x8xf32>
    %76 = vector.extract_strided_slice %21 {offsets = [0, 80], sizes = [24, 16], strides = [1, 1]} : vector<24x96xf32> to vector<24x16xf32>
    %cst_32 = arith.constant dense<0.000000e+00> : vector<24x24xf32>
    %77 = tpu.matmul %72, %74, %cst_32 {dimension_numbers = #tpu.dot_dimension_numbers<[1], [1], [0], [0], [0, 0, 1, 0], [], []>} : vector<24x8xf32>, vector<24x8xf32>, vector<24x24xf32> -> vector<24x24xf32>
    %78 = arith.addf %77, %7 : vector<24x24xf32>
    %cst_33 = arith.constant dense<0.000000e+00> : vector<24x24xf32>
    %79 = tpu.matmul %73, %75, %cst_33 {dimension_numbers = #tpu.dot_dimension_numbers<[1], [1], [0], [0], [0, 0, 1, 0], [], []>} : vector<24x8xf32>, vector<24x8xf32>, vector<24x24xf32> -> vector<24x24xf32>
    %80 = arith.addf %79, %7 : vector<24x24xf32>
    %cst_34 = arith.constant dense<0xFF800000> : vector<24xf32>
    %81 = vector.multi_reduction <maximumf>, %78, %cst_34 [1] : vector<24x24xf32> to vector<24xf32>
    %82 = vector.shape_cast %81 : vector<24xf32> to vector<24x1xf32>
    %83 = vector.broadcast %82 : vector<24x1xf32> to vector<24x24xf32>
    %84 = arith.subf %78, %83 : vector<24x24xf32>
    %85 = math.exp %84 : vector<24x24xf32>
    %cst_35 = arith.constant dense<0.000000e+00> : vector<24xf32>
    %86 = vector.multi_reduction <add>, %85, %cst_35 [1] : vector<24x24xf32> to vector<24xf32>
    %87 = vector.shape_cast %86 : vector<24xf32> to vector<24x1xf32>
    %88 = tpu.reciprocal %87 {approx = true} : vector<24x1xf32> -> vector<24x1xf32>
    %89 = vector.broadcast %88 : vector<24x1xf32> to vector<24x24xf32>
    %90 = arith.mulf %85, %89 : vector<24x24xf32>
    %cst_36 = arith.constant dense<0xFF800000> : vector<24xf32>
    %91 = vector.multi_reduction <maximumf>, %80, %cst_36 [1] : vector<24x24xf32> to vector<24xf32>
    %92 = vector.shape_cast %91 : vector<24xf32> to vector<24x1xf32>
    %93 = vector.broadcast %92 : vector<24x1xf32> to vector<24x24xf32>
    %94 = arith.subf %80, %93 : vector<24x24xf32>
    %95 = math.exp %94 : vector<24x24xf32>
    %cst_37 = arith.constant dense<0.000000e+00> : vector<24xf32>
    %96 = vector.multi_reduction <add>, %95, %cst_37 [1] : vector<24x24xf32> to vector<24xf32>
    %97 = vector.shape_cast %96 : vector<24xf32> to vector<24x1xf32>
    %98 = tpu.reciprocal %97 {approx = true} : vector<24x1xf32> -> vector<24x1xf32>
    %99 = vector.broadcast %98 : vector<24x1xf32> to vector<24x24xf32>
    %100 = arith.mulf %95, %99 : vector<24x24xf32>
    %101 = arith.mulf %25, %100 : vector<24x24xf32>
    %102 = arith.subf %90, %101 : vector<24x24xf32>
    %cst_38 = arith.constant dense<0.000000e+00> : vector<24x16xf32>
    %103 = tpu.matmul %102, %76, %cst_38 {dimension_numbers = #tpu.dot_dimension_numbers<[1], [0], [0], [1], [0, 0, 1, 1], [], []>} : vector<24x24xf32>, vector<24x16xf32>, vector<24x16xf32> -> vector<24x16xf32>
    %104 = arith.mulf %103, %103 : vector<24x16xf32>
    %cst_39 = arith.constant dense<0.000000e+00> : vector<24xf32>
    %105 = vector.multi_reduction <add>, %104, %cst_39 [1] : vector<24x16xf32> to vector<24xf32>
    %106 = vector.shape_cast %105 : vector<24xf32> to vector<24x1xf32>
    %cst_40 = arith.constant 1.600000e+01 : f32
    %107 = vector.broadcast %cst_40 : f32 to vector<24x1xf32>
    %108 = arith.divf %106, %107 : vector<24x1xf32>
    %cst_41 = arith.constant 9.99999974E-6 : f32
    %109 = vector.broadcast %cst_41 : f32 to vector<24x1xf32>
    %110 = arith.addf %108, %109 : vector<24x1xf32>
    %111 = math.rsqrt %110 : vector<24x1xf32>
    %112 = vector.broadcast %111 : vector<24x1xf32> to vector<24x16xf32>
    %113 = arith.mulf %103, %112 : vector<24x16xf32>
    %114 = vector.broadcast %27 : vector<1x16xf32> to vector<24x16xf32>
    %115 = arith.mulf %113, %114 : vector<24x16xf32>
    %116 = tpu.concatenate %71, %115 in 1 : vector<24x16xf32>, vector<24x16xf32> -> vector<24x32xf32>
    %c0_42 = arith.constant 0 : index
    %c0_43 = arith.constant 0 : index
    %c0_44 = arith.constant 0 : index
    %117 = vector.load %arg7[%c0_42, %c0_43, %c0_44] : memref<2x32x32xf32, #tpu.memory_space<vmem>>, vector<1x32x32xf32>
    %118 = vector.shape_cast %117 : vector<1x32x32xf32> to vector<32x32xf32>
    %cst_45 = arith.constant dense<0.000000e+00> : vector<24x32xf32>
    %119 = tpu.matmul %116, %118, %cst_45 {dimension_numbers = #tpu.dot_dimension_numbers<[1], [0], [0], [1], [0, 0, 1, 1], [], []>} : vector<24x32xf32>, vector<32x32xf32>, vector<24x32xf32> -> vector<24x32xf32>
    %c0_46 = arith.constant 0 : index
    %c0_47 = arith.constant 0 : index
    %c0_48 = arith.constant 0 : index
    %120 = vector.load %arg10[%c0_46, %c0_47, %c0_48] : memref<2x1x32xf32, #tpu.memory_space<vmem>>, vector<1x1x32xf32>
    %121 = vector.shape_cast %120 : vector<1x1x32xf32> to vector<1x32xf32>
    %c0_49 = arith.constant 0 : index
    %c0_50 = arith.constant 0 : index
    %c0_51 = arith.constant 0 : index
    %122 = vector.load %arg11[%c0_49, %c0_50, %c0_51] : memref<2x1x32xf32, #tpu.memory_space<vmem>>, vector<1x1x32xf32>
    %123 = vector.shape_cast %122 : vector<1x1x32xf32> to vector<1x32xf32>
    %cst_52 = arith.constant dense<0.000000e+00> : vector<24xf32>
    %124 = vector.multi_reduction <add>, %119, %cst_52 [1] : vector<24x32xf32> to vector<24xf32>
    %125 = vector.shape_cast %124 : vector<24xf32> to vector<24x1xf32>
    %cst_53 = arith.constant 3.200000e+01 : f32
    %126 = vector.broadcast %cst_53 : f32 to vector<24x1xf32>
    %127 = arith.divf %125, %126 : vector<24x1xf32>
    %128 = vector.broadcast %127 : vector<24x1xf32> to vector<24x32xf32>
    %129 = arith.subf %119, %128 : vector<24x32xf32>
    %130 = arith.mulf %129, %129 : vector<24x32xf32>
    %cst_54 = arith.constant dense<0.000000e+00> : vector<24xf32>
    %131 = vector.multi_reduction <add>, %130, %cst_54 [1] : vector<24x32xf32> to vector<24xf32>
    %132 = vector.shape_cast %131 : vector<24xf32> to vector<24x1xf32>
    %cst_55 = arith.constant 3.200000e+01 : f32
    %133 = vector.broadcast %cst_55 : f32 to vector<24x1xf32>
    %134 = arith.divf %132, %133 : vector<24x1xf32>
    %135 = vector.broadcast %127 : vector<24x1xf32> to vector<24x32xf32>
    %136 = arith.subf %119, %135 : vector<24x32xf32>
    %cst_56 = arith.constant 9.99999974E-6 : f32
    %137 = vector.broadcast %cst_56 : f32 to vector<24x1xf32>
    %138 = arith.addf %134, %137 : vector<24x1xf32>
    %139 = math.rsqrt %138 : vector<24x1xf32>
    %140 = vector.broadcast %139 : vector<24x1xf32> to vector<24x32xf32>
    %141 = arith.mulf %136, %140 : vector<24x32xf32>
    %142 = vector.broadcast %121 : vector<1x32xf32> to vector<24x32xf32>
    %143 = arith.mulf %141, %142 : vector<24x32xf32>
    %144 = vector.broadcast %123 : vector<1x32xf32> to vector<24x32xf32>
    %145 = arith.addf %143, %144 : vector<24x32xf32>
    %146 = arith.addf %18, %145 : vector<24x32xf32>
    %c0_57 = arith.constant 0 : index
    %c0_58 = arith.constant 0 : index
    %c0_59 = arith.constant 0 : index
    %147 = vector.load %arg14[%c0_57, %c0_58, %c0_59] : memref<2x32x128xf32, #tpu.memory_space<vmem>>, vector<1x32x128xf32>
    %148 = vector.shape_cast %147 : vector<1x32x128xf32> to vector<32x128xf32>
    %cst_60 = arith.constant dense<0.000000e+00> : vector<24x128xf32>
    %149 = tpu.matmul %146, %148, %cst_60 {dimension_numbers = #tpu.dot_dimension_numbers<[1], [0], [0], [1], [0, 0, 1, 1], [], []>} : vector<24x32xf32>, vector<32x128xf32>, vector<24x128xf32> -> vector<24x128xf32>
    %c0_61 = arith.constant 0 : index
    %c0_62 = arith.constant 0 : index
    %c0_63 = arith.constant 0 : index
    %150 = vector.load %arg15[%c0_61, %c0_62, %c0_63] : memref<2x1x128xf32, #tpu.memory_space<vmem>>, vector<1x1x128xf32>
    %151 = vector.shape_cast %150 : vector<1x1x128xf32> to vector<1x128xf32>
    %152 = vector.broadcast %151 : vector<1x128xf32> to vector<24x128xf32>
    %153 = arith.addf %149, %152 : vector<24x128xf32>
    %cst_64 = arith.constant 5.000000e-01 : f32
    %154 = vector.broadcast %cst_64 : f32 to vector<24x128xf32>
    %155 = arith.mulf %154, %153 : vector<24x128xf32>
    %cst_65 = arith.constant 4.471500e-02 : f32
    %156 = vector.broadcast %cst_65 : f32 to vector<24x128xf32>
    %157 = arith.mulf %156, %153 : vector<24x128xf32>
    %158 = arith.mulf %157, %153 : vector<24x128xf32>
    %159 = arith.mulf %158, %153 : vector<24x128xf32>
    %160 = arith.addf %153, %159 : vector<24x128xf32>
    %cst_66 = arith.constant 0.797884583 : f32
    %161 = vector.broadcast %cst_66 : f32 to vector<24x128xf32>
    %162 = arith.mulf %161, %160 : vector<24x128xf32>
    %163 = math.tanh %162 : vector<24x128xf32>
    %cst_67 = arith.constant 1.000000e+00 : f32
    %164 = vector.broadcast %cst_67 : f32 to vector<24x128xf32>
    %165 = arith.addf %164, %163 : vector<24x128xf32>
    %166 = arith.mulf %155, %165 : vector<24x128xf32>
    %c0_68 = arith.constant 0 : index
    %c0_69 = arith.constant 0 : index
    %c0_70 = arith.constant 0 : index
    %167 = vector.load %arg16[%c0_68, %c0_69, %c0_70] : memref<2x128x32xf32, #tpu.memory_space<vmem>>, vector<1x128x32xf32>
    %168 = vector.shape_cast %167 : vector<1x128x32xf32> to vector<128x32xf32>
    %cst_71 = arith.constant dense<0.000000e+00> : vector<24x32xf32>
    %169 = tpu.matmul %166, %168, %cst_71 {dimension_numbers = #tpu.dot_dimension_numbers<[1], [0], [0], [1], [0, 0, 1, 1], [], []>} : vector<24x128xf32>, vector<128x32xf32>, vector<24x32xf32> -> vector<24x32xf32>
    %c0_72 = arith.constant 0 : index
    %c0_73 = arith.constant 0 : index
    %c0_74 = arith.constant 0 : index
    %170 = vector.load %arg17[%c0_72, %c0_73, %c0_74] : memref<2x1x32xf32, #tpu.memory_space<vmem>>, vector<1x1x32xf32>
    %171 = vector.shape_cast %170 : vector<1x1x32xf32> to vector<1x32xf32>
    %172 = vector.broadcast %171 : vector<1x32xf32> to vector<24x32xf32>
    %173 = arith.addf %169, %172 : vector<24x32xf32>
    %c0_75 = arith.constant 0 : index
    %c0_76 = arith.constant 0 : index
    %c0_77 = arith.constant 0 : index
    %174 = vector.load %arg12[%c0_75, %c0_76, %c0_77] : memref<2x1x32xf32, #tpu.memory_space<vmem>>, vector<1x1x32xf32>
    %175 = vector.shape_cast %174 : vector<1x1x32xf32> to vector<1x32xf32>
    %c0_78 = arith.constant 0 : index
    %c0_79 = arith.constant 0 : index
    %c0_80 = arith.constant 0 : index
    %176 = vector.load %arg13[%c0_78, %c0_79, %c0_80] : memref<2x1x32xf32, #tpu.memory_space<vmem>>, vector<1x1x32xf32>
    %177 = vector.shape_cast %176 : vector<1x1x32xf32> to vector<1x32xf32>
    %cst_81 = arith.constant dense<0.000000e+00> : vector<24xf32>
    %178 = vector.multi_reduction <add>, %173, %cst_81 [1] : vector<24x32xf32> to vector<24xf32>
    %179 = vector.shape_cast %178 : vector<24xf32> to vector<24x1xf32>
    %cst_82 = arith.constant 3.200000e+01 : f32
    %180 = vector.broadcast %cst_82 : f32 to vector<24x1xf32>
    %181 = arith.divf %179, %180 : vector<24x1xf32>
    %182 = vector.broadcast %181 : vector<24x1xf32> to vector<24x32xf32>
    %183 = arith.subf %173, %182 : vector<24x32xf32>
    %184 = arith.mulf %183, %183 : vector<24x32xf32>
    %cst_83 = arith.constant dense<0.000000e+00> : vector<24xf32>
    %185 = vector.multi_reduction <add>, %184, %cst_83 [1] : vector<24x32xf32> to vector<24xf32>
    %186 = vector.shape_cast %185 : vector<24xf32> to vector<24x1xf32>
    %cst_84 = arith.constant 3.200000e+01 : f32
    %187 = vector.broadcast %cst_84 : f32 to vector<24x1xf32>
    %188 = arith.divf %186, %187 : vector<24x1xf32>
    %189 = vector.broadcast %181 : vector<24x1xf32> to vector<24x32xf32>
    %190 = arith.subf %173, %189 : vector<24x32xf32>
    %cst_85 = arith.constant 9.99999974E-6 : f32
    %191 = vector.broadcast %cst_85 : f32 to vector<24x1xf32>
    %192 = arith.addf %188, %191 : vector<24x1xf32>
    %193 = math.rsqrt %192 : vector<24x1xf32>
    %194 = vector.broadcast %193 : vector<24x1xf32> to vector<24x32xf32>
    %195 = arith.mulf %190, %194 : vector<24x32xf32>
    %196 = vector.broadcast %175 : vector<1x32xf32> to vector<24x32xf32>
    %197 = arith.mulf %195, %196 : vector<24x32xf32>
    %198 = vector.broadcast %177 : vector<1x32xf32> to vector<24x32xf32>
    %199 = arith.addf %197, %198 : vector<24x32xf32>
    %200 = arith.addf %146, %199 : vector<24x32xf32>
    %c1 = arith.constant 1 : index
    %c0_86 = arith.constant 0 : index
    %c0_87 = arith.constant 0 : index
    %201 = vector.load %arg6[%c1, %c0_86, %c0_87] : memref<2x32x96xf32, #tpu.memory_space<vmem>>, vector<1x32x96xf32>
    %202 = vector.shape_cast %201 : vector<1x32x96xf32> to vector<32x96xf32>
    %cst_88 = arith.constant dense<0.000000e+00> : vector<24x96xf32>
    %203 = tpu.matmul %200, %202, %cst_88 {dimension_numbers = #tpu.dot_dimension_numbers<[1], [0], [0], [1], [0, 0, 1, 1], [], []>} : vector<24x32xf32>, vector<32x96xf32>, vector<24x96xf32> -> vector<24x96xf32>
    %c1_89 = arith.constant 1 : index
    %c0_90 = arith.constant 0 : index
    %c0_91 = arith.constant 0 : index
    %204 = vector.load %arg9[%c1_89, %c0_90, %c0_91] : memref<2x1x1xf32, #tpu.memory_space<vmem>>, vector<1x1x1xf32>
    %205 = vector.shape_cast %204 : vector<1x1x1xf32> to vector<1x1xf32>
    %206 = vector.shape_cast %205 : vector<1x1xf32> to vector<1x1xf32>
    %207 = vector.broadcast %206 : vector<1x1xf32> to vector<24x24xf32>
    %c1_92 = arith.constant 1 : index
    %c0_93 = arith.constant 0 : index
    %c0_94 = arith.constant 0 : index
    %208 = vector.load %arg8[%c1_92, %c0_93, %c0_94] : memref<2x1x16xf32, #tpu.memory_space<vmem>>, vector<1x1x16xf32>
    %209 = vector.shape_cast %208 : vector<1x1x16xf32> to vector<1x16xf32>
    %210 = vector.extract_strided_slice %203 {offsets = [0, 0], sizes = [24, 8], strides = [1, 1]} : vector<24x96xf32> to vector<24x8xf32>
    %211 = vector.extract_strided_slice %203 {offsets = [0, 8], sizes = [24, 8], strides = [1, 1]} : vector<24x96xf32> to vector<24x8xf32>
    %212 = vector.extract_strided_slice %203 {offsets = [0, 32], sizes = [24, 8], strides = [1, 1]} : vector<24x96xf32> to vector<24x8xf32>
    %213 = vector.extract_strided_slice %203 {offsets = [0, 40], sizes = [24, 8], strides = [1, 1]} : vector<24x96xf32> to vector<24x8xf32>
    %214 = vector.extract_strided_slice %203 {offsets = [0, 64], sizes = [24, 16], strides = [1, 1]} : vector<24x96xf32> to vector<24x16xf32>
    %cst_95 = arith.constant dense<0.000000e+00> : vector<24x24xf32>
    %215 = tpu.matmul %210, %212, %cst_95 {dimension_numbers = #tpu.dot_dimension_numbers<[1], [1], [0], [0], [0, 0, 1, 0], [], []>} : vector<24x8xf32>, vector<24x8xf32>, vector<24x24xf32> -> vector<24x24xf32>
    %216 = arith.addf %215, %7 : vector<24x24xf32>
    %cst_96 = arith.constant dense<0.000000e+00> : vector<24x24xf32>
    %217 = tpu.matmul %211, %213, %cst_96 {dimension_numbers = #tpu.dot_dimension_numbers<[1], [1], [0], [0], [0, 0, 1, 0], [], []>} : vector<24x8xf32>, vector<24x8xf32>, vector<24x24xf32> -> vector<24x24xf32>
    %218 = arith.addf %217, %7 : vector<24x24xf32>
    %cst_97 = arith.constant dense<0xFF800000> : vector<24xf32>
    %219 = vector.multi_reduction <maximumf>, %216, %cst_97 [1] : vector<24x24xf32> to vector<24xf32>
    %220 = vector.shape_cast %219 : vector<24xf32> to vector<24x1xf32>
    %221 = vector.broadcast %220 : vector<24x1xf32> to vector<24x24xf32>
    %222 = arith.subf %216, %221 : vector<24x24xf32>
    %223 = math.exp %222 : vector<24x24xf32>
    %cst_98 = arith.constant dense<0.000000e+00> : vector<24xf32>
    %224 = vector.multi_reduction <add>, %223, %cst_98 [1] : vector<24x24xf32> to vector<24xf32>
    %225 = vector.shape_cast %224 : vector<24xf32> to vector<24x1xf32>
    %226 = tpu.reciprocal %225 {approx = true} : vector<24x1xf32> -> vector<24x1xf32>
    %227 = vector.broadcast %226 : vector<24x1xf32> to vector<24x24xf32>
    %228 = arith.mulf %223, %227 : vector<24x24xf32>
    %cst_99 = arith.constant dense<0xFF800000> : vector<24xf32>
    %229 = vector.multi_reduction <maximumf>, %218, %cst_99 [1] : vector<24x24xf32> to vector<24xf32>
    %230 = vector.shape_cast %229 : vector<24xf32> to vector<24x1xf32>
    %231 = vector.broadcast %230 : vector<24x1xf32> to vector<24x24xf32>
    %232 = arith.subf %218, %231 : vector<24x24xf32>
    %233 = math.exp %232 : vector<24x24xf32>
    %cst_100 = arith.constant dense<0.000000e+00> : vector<24xf32>
    %234 = vector.multi_reduction <add>, %233, %cst_100 [1] : vector<24x24xf32> to vector<24xf32>
    %235 = vector.shape_cast %234 : vector<24xf32> to vector<24x1xf32>
    %236 = tpu.reciprocal %235 {approx = true} : vector<24x1xf32> -> vector<24x1xf32>
    %237 = vector.broadcast %236 : vector<24x1xf32> to vector<24x24xf32>
    %238 = arith.mulf %233, %237 : vector<24x24xf32>
    %239 = arith.mulf %207, %238 : vector<24x24xf32>
    %240 = arith.subf %228, %239 : vector<24x24xf32>
    %cst_101 = arith.constant dense<0.000000e+00> : vector<24x16xf32>
    %241 = tpu.matmul %240, %214, %cst_101 {dimension_numbers = #tpu.dot_dimension_numbers<[1], [0], [0], [1], [0, 0, 1, 1], [], []>} : vector<24x24xf32>, vector<24x16xf32>, vector<24x16xf32> -> vector<24x16xf32>
    %242 = arith.mulf %241, %241 : vector<24x16xf32>
    %cst_102 = arith.constant dense<0.000000e+00> : vector<24xf32>
    %243 = vector.multi_reduction <add>, %242, %cst_102 [1] : vector<24x16xf32> to vector<24xf32>
    %244 = vector.shape_cast %243 : vector<24xf32> to vector<24x1xf32>
    %cst_103 = arith.constant 1.600000e+01 : f32
    %245 = vector.broadcast %cst_103 : f32 to vector<24x1xf32>
    %246 = arith.divf %244, %245 : vector<24x1xf32>
    %cst_104 = arith.constant 9.99999974E-6 : f32
    %247 = vector.broadcast %cst_104 : f32 to vector<24x1xf32>
    %248 = arith.addf %246, %247 : vector<24x1xf32>
    %249 = math.rsqrt %248 : vector<24x1xf32>
    %250 = vector.broadcast %249 : vector<24x1xf32> to vector<24x16xf32>
    %251 = arith.mulf %241, %250 : vector<24x16xf32>
    %252 = vector.broadcast %209 : vector<1x16xf32> to vector<24x16xf32>
    %253 = arith.mulf %251, %252 : vector<24x16xf32>
    %254 = vector.extract_strided_slice %203 {offsets = [0, 16], sizes = [24, 8], strides = [1, 1]} : vector<24x96xf32> to vector<24x8xf32>
    %255 = vector.extract_strided_slice %203 {offsets = [0, 24], sizes = [24, 8], strides = [1, 1]} : vector<24x96xf32> to vector<24x8xf32>
    %256 = vector.extract_strided_slice %203 {offsets = [0, 48], sizes = [24, 8], strides = [1, 1]} : vector<24x96xf32> to vector<24x8xf32>
    %257 = vector.extract_strided_slice %203 {offsets = [0, 56], sizes = [24, 8], strides = [1, 1]} : vector<24x96xf32> to vector<24x8xf32>
    %258 = vector.extract_strided_slice %203 {offsets = [0, 80], sizes = [24, 16], strides = [1, 1]} : vector<24x96xf32> to vector<24x16xf32>
    %cst_105 = arith.constant dense<0.000000e+00> : vector<24x24xf32>
    %259 = tpu.matmul %254, %256, %cst_105 {dimension_numbers = #tpu.dot_dimension_numbers<[1], [1], [0], [0], [0, 0, 1, 0], [], []>} : vector<24x8xf32>, vector<24x8xf32>, vector<24x24xf32> -> vector<24x24xf32>
    %260 = arith.addf %259, %7 : vector<24x24xf32>
    %cst_106 = arith.constant dense<0.000000e+00> : vector<24x24xf32>
    %261 = tpu.matmul %255, %257, %cst_106 {dimension_numbers = #tpu.dot_dimension_numbers<[1], [1], [0], [0], [0, 0, 1, 0], [], []>} : vector<24x8xf32>, vector<24x8xf32>, vector<24x24xf32> -> vector<24x24xf32>
    %262 = arith.addf %261, %7 : vector<24x24xf32>
    %cst_107 = arith.constant dense<0xFF800000> : vector<24xf32>
    %263 = vector.multi_reduction <maximumf>, %260, %cst_107 [1] : vector<24x24xf32> to vector<24xf32>
    %264 = vector.shape_cast %263 : vector<24xf32> to vector<24x1xf32>
    %265 = vector.broadcast %264 : vector<24x1xf32> to vector<24x24xf32>
    %266 = arith.subf %260, %265 : vector<24x24xf32>
    %267 = math.exp %266 : vector<24x24xf32>
    %cst_108 = arith.constant dense<0.000000e+00> : vector<24xf32>
    %268 = vector.multi_reduction <add>, %267, %cst_108 [1] : vector<24x24xf32> to vector<24xf32>
    %269 = vector.shape_cast %268 : vector<24xf32> to vector<24x1xf32>
    %270 = tpu.reciprocal %269 {approx = true} : vector<24x1xf32> -> vector<24x1xf32>
    %271 = vector.broadcast %270 : vector<24x1xf32> to vector<24x24xf32>
    %272 = arith.mulf %267, %271 : vector<24x24xf32>
    %cst_109 = arith.constant dense<0xFF800000> : vector<24xf32>
    %273 = vector.multi_reduction <maximumf>, %262, %cst_109 [1] : vector<24x24xf32> to vector<24xf32>
    %274 = vector.shape_cast %273 : vector<24xf32> to vector<24x1xf32>
    %275 = vector.broadcast %274 : vector<24x1xf32> to vector<24x24xf32>
    %276 = arith.subf %262, %275 : vector<24x24xf32>
    %277 = math.exp %276 : vector<24x24xf32>
    %cst_110 = arith.constant dense<0.000000e+00> : vector<24xf32>
    %278 = vector.multi_reduction <add>, %277, %cst_110 [1] : vector<24x24xf32> to vector<24xf32>
    %279 = vector.shape_cast %278 : vector<24xf32> to vector<24x1xf32>
    %280 = tpu.reciprocal %279 {approx = true} : vector<24x1xf32> -> vector<24x1xf32>
    %281 = vector.broadcast %280 : vector<24x1xf32> to vector<24x24xf32>
    %282 = arith.mulf %277, %281 : vector<24x24xf32>
    %283 = arith.mulf %207, %282 : vector<24x24xf32>
    %284 = arith.subf %272, %283 : vector<24x24xf32>
    %cst_111 = arith.constant dense<0.000000e+00> : vector<24x16xf32>
    %285 = tpu.matmul %284, %258, %cst_111 {dimension_numbers = #tpu.dot_dimension_numbers<[1], [0], [0], [1], [0, 0, 1, 1], [], []>} : vector<24x24xf32>, vector<24x16xf32>, vector<24x16xf32> -> vector<24x16xf32>
    %286 = arith.mulf %285, %285 : vector<24x16xf32>
    %cst_112 = arith.constant dense<0.000000e+00> : vector<24xf32>
    %287 = vector.multi_reduction <add>, %286, %cst_112 [1] : vector<24x16xf32> to vector<24xf32>
    %288 = vector.shape_cast %287 : vector<24xf32> to vector<24x1xf32>
    %cst_113 = arith.constant 1.600000e+01 : f32
    %289 = vector.broadcast %cst_113 : f32 to vector<24x1xf32>
    %290 = arith.divf %288, %289 : vector<24x1xf32>
    %cst_114 = arith.constant 9.99999974E-6 : f32
    %291 = vector.broadcast %cst_114 : f32 to vector<24x1xf32>
    %292 = arith.addf %290, %291 : vector<24x1xf32>
    %293 = math.rsqrt %292 : vector<24x1xf32>
    %294 = vector.broadcast %293 : vector<24x1xf32> to vector<24x16xf32>
    %295 = arith.mulf %285, %294 : vector<24x16xf32>
    %296 = vector.broadcast %209 : vector<1x16xf32> to vector<24x16xf32>
    %297 = arith.mulf %295, %296 : vector<24x16xf32>
    %298 = tpu.concatenate %253, %297 in 1 : vector<24x16xf32>, vector<24x16xf32> -> vector<24x32xf32>
    %c1_115 = arith.constant 1 : index
    %c0_116 = arith.constant 0 : index
    %c0_117 = arith.constant 0 : index
    %299 = vector.load %arg7[%c1_115, %c0_116, %c0_117] : memref<2x32x32xf32, #tpu.memory_space<vmem>>, vector<1x32x32xf32>
    %300 = vector.shape_cast %299 : vector<1x32x32xf32> to vector<32x32xf32>
    %cst_118 = arith.constant dense<0.000000e+00> : vector<24x32xf32>
    %301 = tpu.matmul %298, %300, %cst_118 {dimension_numbers = #tpu.dot_dimension_numbers<[1], [0], [0], [1], [0, 0, 1, 1], [], []>} : vector<24x32xf32>, vector<32x32xf32>, vector<24x32xf32> -> vector<24x32xf32>
    %c1_119 = arith.constant 1 : index
    %c0_120 = arith.constant 0 : index
    %c0_121 = arith.constant 0 : index
    %302 = vector.load %arg10[%c1_119, %c0_120, %c0_121] : memref<2x1x32xf32, #tpu.memory_space<vmem>>, vector<1x1x32xf32>
    %303 = vector.shape_cast %302 : vector<1x1x32xf32> to vector<1x32xf32>
    %c1_122 = arith.constant 1 : index
    %c0_123 = arith.constant 0 : index
    %c0_124 = arith.constant 0 : index
    %304 = vector.load %arg11[%c1_122, %c0_123, %c0_124] : memref<2x1x32xf32, #tpu.memory_space<vmem>>, vector<1x1x32xf32>
    %305 = vector.shape_cast %304 : vector<1x1x32xf32> to vector<1x32xf32>
    %cst_125 = arith.constant dense<0.000000e+00> : vector<24xf32>
    %306 = vector.multi_reduction <add>, %301, %cst_125 [1] : vector<24x32xf32> to vector<24xf32>
    %307 = vector.shape_cast %306 : vector<24xf32> to vector<24x1xf32>
    %cst_126 = arith.constant 3.200000e+01 : f32
    %308 = vector.broadcast %cst_126 : f32 to vector<24x1xf32>
    %309 = arith.divf %307, %308 : vector<24x1xf32>
    %310 = vector.broadcast %309 : vector<24x1xf32> to vector<24x32xf32>
    %311 = arith.subf %301, %310 : vector<24x32xf32>
    %312 = arith.mulf %311, %311 : vector<24x32xf32>
    %cst_127 = arith.constant dense<0.000000e+00> : vector<24xf32>
    %313 = vector.multi_reduction <add>, %312, %cst_127 [1] : vector<24x32xf32> to vector<24xf32>
    %314 = vector.shape_cast %313 : vector<24xf32> to vector<24x1xf32>
    %cst_128 = arith.constant 3.200000e+01 : f32
    %315 = vector.broadcast %cst_128 : f32 to vector<24x1xf32>
    %316 = arith.divf %314, %315 : vector<24x1xf32>
    %317 = vector.broadcast %309 : vector<24x1xf32> to vector<24x32xf32>
    %318 = arith.subf %301, %317 : vector<24x32xf32>
    %cst_129 = arith.constant 9.99999974E-6 : f32
    %319 = vector.broadcast %cst_129 : f32 to vector<24x1xf32>
    %320 = arith.addf %316, %319 : vector<24x1xf32>
    %321 = math.rsqrt %320 : vector<24x1xf32>
    %322 = vector.broadcast %321 : vector<24x1xf32> to vector<24x32xf32>
    %323 = arith.mulf %318, %322 : vector<24x32xf32>
    %324 = vector.broadcast %303 : vector<1x32xf32> to vector<24x32xf32>
    %325 = arith.mulf %323, %324 : vector<24x32xf32>
    %326 = vector.broadcast %305 : vector<1x32xf32> to vector<24x32xf32>
    %327 = arith.addf %325, %326 : vector<24x32xf32>
    %328 = arith.addf %200, %327 : vector<24x32xf32>
    %c1_130 = arith.constant 1 : index
    %c0_131 = arith.constant 0 : index
    %c0_132 = arith.constant 0 : index
    %329 = vector.load %arg14[%c1_130, %c0_131, %c0_132] : memref<2x32x128xf32, #tpu.memory_space<vmem>>, vector<1x32x128xf32>
    %330 = vector.shape_cast %329 : vector<1x32x128xf32> to vector<32x128xf32>
    %cst_133 = arith.constant dense<0.000000e+00> : vector<24x128xf32>
    %331 = tpu.matmul %328, %330, %cst_133 {dimension_numbers = #tpu.dot_dimension_numbers<[1], [0], [0], [1], [0, 0, 1, 1], [], []>} : vector<24x32xf32>, vector<32x128xf32>, vector<24x128xf32> -> vector<24x128xf32>
    %c1_134 = arith.constant 1 : index
    %c0_135 = arith.constant 0 : index
    %c0_136 = arith.constant 0 : index
    %332 = vector.load %arg15[%c1_134, %c0_135, %c0_136] : memref<2x1x128xf32, #tpu.memory_space<vmem>>, vector<1x1x128xf32>
    %333 = vector.shape_cast %332 : vector<1x1x128xf32> to vector<1x128xf32>
    %334 = vector.broadcast %333 : vector<1x128xf32> to vector<24x128xf32>
    %335 = arith.addf %331, %334 : vector<24x128xf32>
    %cst_137 = arith.constant 5.000000e-01 : f32
    %336 = vector.broadcast %cst_137 : f32 to vector<24x128xf32>
    %337 = arith.mulf %336, %335 : vector<24x128xf32>
    %cst_138 = arith.constant 4.471500e-02 : f32
    %338 = vector.broadcast %cst_138 : f32 to vector<24x128xf32>
    %339 = arith.mulf %338, %335 : vector<24x128xf32>
    %340 = arith.mulf %339, %335 : vector<24x128xf32>
    %341 = arith.mulf %340, %335 : vector<24x128xf32>
    %342 = arith.addf %335, %341 : vector<24x128xf32>
    %cst_139 = arith.constant 0.797884583 : f32
    %343 = vector.broadcast %cst_139 : f32 to vector<24x128xf32>
    %344 = arith.mulf %343, %342 : vector<24x128xf32>
    %345 = math.tanh %344 : vector<24x128xf32>
    %cst_140 = arith.constant 1.000000e+00 : f32
    %346 = vector.broadcast %cst_140 : f32 to vector<24x128xf32>
    %347 = arith.addf %346, %345 : vector<24x128xf32>
    %348 = arith.mulf %337, %347 : vector<24x128xf32>
    %c1_141 = arith.constant 1 : index
    %c0_142 = arith.constant 0 : index
    %c0_143 = arith.constant 0 : index
    %349 = vector.load %arg16[%c1_141, %c0_142, %c0_143] : memref<2x128x32xf32, #tpu.memory_space<vmem>>, vector<1x128x32xf32>
    %350 = vector.shape_cast %349 : vector<1x128x32xf32> to vector<128x32xf32>
    %cst_144 = arith.constant dense<0.000000e+00> : vector<24x32xf32>
    %351 = tpu.matmul %348, %350, %cst_144 {dimension_numbers = #tpu.dot_dimension_numbers<[1], [0], [0], [1], [0, 0, 1, 1], [], []>} : vector<24x128xf32>, vector<128x32xf32>, vector<24x32xf32> -> vector<24x32xf32>
    %c1_145 = arith.constant 1 : index
    %c0_146 = arith.constant 0 : index
    %c0_147 = arith.constant 0 : index
    %352 = vector.load %arg17[%c1_145, %c0_146, %c0_147] : memref<2x1x32xf32, #tpu.memory_space<vmem>>, vector<1x1x32xf32>
    %353 = vector.shape_cast %352 : vector<1x1x32xf32> to vector<1x32xf32>
    %354 = vector.broadcast %353 : vector<1x32xf32> to vector<24x32xf32>
    %355 = arith.addf %351, %354 : vector<24x32xf32>
    %c1_148 = arith.constant 1 : index
    %c0_149 = arith.constant 0 : index
    %c0_150 = arith.constant 0 : index
    %356 = vector.load %arg12[%c1_148, %c0_149, %c0_150] : memref<2x1x32xf32, #tpu.memory_space<vmem>>, vector<1x1x32xf32>
    %357 = vector.shape_cast %356 : vector<1x1x32xf32> to vector<1x32xf32>
    %c1_151 = arith.constant 1 : index
    %c0_152 = arith.constant 0 : index
    %c0_153 = arith.constant 0 : index
    %358 = vector.load %arg13[%c1_151, %c0_152, %c0_153] : memref<2x1x32xf32, #tpu.memory_space<vmem>>, vector<1x1x32xf32>
    %359 = vector.shape_cast %358 : vector<1x1x32xf32> to vector<1x32xf32>
    %cst_154 = arith.constant dense<0.000000e+00> : vector<24xf32>
    %360 = vector.multi_reduction <add>, %355, %cst_154 [1] : vector<24x32xf32> to vector<24xf32>
    %361 = vector.shape_cast %360 : vector<24xf32> to vector<24x1xf32>
    %cst_155 = arith.constant 3.200000e+01 : f32
    %362 = vector.broadcast %cst_155 : f32 to vector<24x1xf32>
    %363 = arith.divf %361, %362 : vector<24x1xf32>
    %364 = vector.broadcast %363 : vector<24x1xf32> to vector<24x32xf32>
    %365 = arith.subf %355, %364 : vector<24x32xf32>
    %366 = arith.mulf %365, %365 : vector<24x32xf32>
    %cst_156 = arith.constant dense<0.000000e+00> : vector<24xf32>
    %367 = vector.multi_reduction <add>, %366, %cst_156 [1] : vector<24x32xf32> to vector<24xf32>
    %368 = vector.shape_cast %367 : vector<24xf32> to vector<24x1xf32>
    %cst_157 = arith.constant 3.200000e+01 : f32
    %369 = vector.broadcast %cst_157 : f32 to vector<24x1xf32>
    %370 = arith.divf %368, %369 : vector<24x1xf32>
    %371 = vector.broadcast %363 : vector<24x1xf32> to vector<24x32xf32>
    %372 = arith.subf %355, %371 : vector<24x32xf32>
    %cst_158 = arith.constant 9.99999974E-6 : f32
    %373 = vector.broadcast %cst_158 : f32 to vector<24x1xf32>
    %374 = arith.addf %370, %373 : vector<24x1xf32>
    %375 = math.rsqrt %374 : vector<24x1xf32>
    %376 = vector.broadcast %375 : vector<24x1xf32> to vector<24x32xf32>
    %377 = arith.mulf %372, %376 : vector<24x32xf32>
    %378 = vector.broadcast %357 : vector<1x32xf32> to vector<24x32xf32>
    %379 = arith.mulf %377, %378 : vector<24x32xf32>
    %380 = vector.broadcast %359 : vector<1x32xf32> to vector<24x32xf32>
    %381 = arith.addf %379, %380 : vector<24x32xf32>
    %382 = arith.addf %328, %381 : vector<24x32xf32>
    %383 = vector.extract_strided_slice %382 {offsets = [0, 0], sizes = [1, 32], strides = [1, 1]} : vector<24x32xf32> to vector<1x32xf32>
    %c0_159 = arith.constant 0 : index
    %c0_160 = arith.constant 0 : index
    %c0_161 = arith.constant 0 : index
    %384 = vector.load %arg21[%c0_159, %c0_160, %c0_161] : memref<1x1x32xf32, #tpu.memory_space<vmem>>, vector<1x1x32xf32>
    %385 = vector.shape_cast %384 : vector<1x1x32xf32> to vector<1x32xf32>
    %386 = vector.shape_cast %383 : vector<1x32xf32> to vector<1x1x32xf32>
    tpu.vector_store %arg21[%c0_159, %c0_160, %c0_161], %386 {strides = array<i32>} : memref<1x1x32xf32, #tpu.memory_space<vmem>>, vector<1x1x32xf32>,
    %c0_162 = arith.constant 0 : index
    %c0_163 = arith.constant 0 : index
    %387 = vector.load %arg18[%c0_162, %c0_163] : memref<32x10xf32, #tpu.memory_space<vmem>>, vector<32x10xf32>
    %cst_164 = arith.constant dense<0.000000e+00> : vector<1x10xf32>
    %388 = tpu.matmul %383, %387, %cst_164 {dimension_numbers = #tpu.dot_dimension_numbers<[1], [0], [0], [1], [0, 0, 1, 1], [], []>} : vector<1x32xf32>, vector<32x10xf32>, vector<1x10xf32> -> vector<1x10xf32>
    %c0_165 = arith.constant 0 : index
    %c0_166 = arith.constant 0 : index
    %389 = vector.load %arg19[%c0_165, %c0_166] : memref<1x10xf32, #tpu.memory_space<vmem>>, vector<1x10xf32>
    %390 = arith.addf %388, %389 : vector<1x10xf32>
    %c0_167 = arith.constant 0 : index
    %c0_168 = arith.constant 0 : index
    %c0_169 = arith.constant 0 : index
    %391 = vector.load %arg20[%c0_167, %c0_168, %c0_169] : memref<1x1x10xf32, #tpu.memory_space<vmem>>, vector<1x1x10xf32>
    %392 = vector.shape_cast %391 : vector<1x1x10xf32> to vector<1x10xf32>
    %393 = vector.shape_cast %390 : vector<1x10xf32> to vector<1x1x10xf32>
    tpu.vector_store %arg20[%c0_167, %c0_168, %c0_169], %393 {strides = array<i32>} : memref<1x1x10xf32, #tpu.memory_space<vmem>>, vector<1x1x10xf32>,
    return
  }
  func.func @transform_0(%arg0: i32) -> (i32, i32, i32) {
    %c0_i32 = arith.constant 0 : i32
    %c0_i32_0 = arith.constant 0 : i32
    %c0_i32_1 = arith.constant 0 : i32
    return %arg0, %c0_i32, %c0_i32_0 : i32, i32, i32
  }
  func.func @transform_1(%arg0: i32) -> (i32, i32) {
    %c0_i32 = arith.constant 0 : i32
    %c0_i32_0 = arith.constant 0 : i32
    %c0_i32_1 = arith.constant 0 : i32
    return %c0_i32, %c0_i32_0 : i32, i32
  }
  func.func @transform_2(%arg0: i32) -> (i32, i32) {
    %c0_i32 = arith.constant 0 : i32
    %c0_i32_0 = arith.constant 0 : i32
    %c0_i32_1 = arith.constant 0 : i32
    return %c0_i32, %c0_i32_0 : i32, i32
  }
  func.func @transform_3(%arg0: i32) -> (i32, i32) {
    %c0_i32 = arith.constant 0 : i32
    %c0_i32_0 = arith.constant 0 : i32
    %c0_i32_1 = arith.constant 0 : i32
    return %c0_i32, %c0_i32_0 : i32, i32
  }
  func.func @transform_4(%arg0: i32) -> (i32, i32) {
    %c0_i32 = arith.constant 0 : i32
    %c0_i32_0 = arith.constant 0 : i32
    %c0_i32_1 = arith.constant 0 : i32
    return %c0_i32, %c0_i32_0 : i32, i32
  }
  func.func @transform_5(%arg0: i32) -> (i32, i32, i32) {
    %c0_i32 = arith.constant 0 : i32
    %c0_i32_0 = arith.constant 0 : i32
    %c0_i32_1 = arith.constant 0 : i32
    %c0_i32_2 = arith.constant 0 : i32
    return %c0_i32, %c0_i32_0, %c0_i32_1 : i32, i32, i32
  }
  func.func @transform_6(%arg0: i32) -> (i32, i32, i32) {
    %c0_i32 = arith.constant 0 : i32
    %c0_i32_0 = arith.constant 0 : i32
    %c0_i32_1 = arith.constant 0 : i32
    %c0_i32_2 = arith.constant 0 : i32
    return %c0_i32, %c0_i32_0, %c0_i32_1 : i32, i32, i32
  }
  func.func @transform_7(%arg0: i32) -> (i32, i32, i32) {
    %c0_i32 = arith.constant 0 : i32
    %c0_i32_0 = arith.constant 0 : i32
    %c0_i32_1 = arith.constant 0 : i32
    %c0_i32_2 = arith.constant 0 : i32
    return %c0_i32, %c0_i32_0, %c0_i32_1 : i32, i32, i32
  }
  func.func @transform_8(%arg0: i32) -> (i32, i32, i32) {
    %c0_i32 = arith.constant 0 : i32
    %c0_i32_0 = arith.constant 0 : i32
    %c0_i32_1 = arith.constant 0 : i32
    %c0_i32_2 = arith.constant 0 : i32
    return %c0_i32, %c0_i32_0, %c0_i32_1 : i32, i32, i32
  }
  func.func @transform_9(%arg0: i32) -> (i32, i32, i32) {
    %c0_i32 = arith.constant 0 : i32
    %c0_i32_0 = arith.constant 0 : i32
    %c0_i32_1 = arith.constant 0 : i32
    %c0_i32_2 = arith.constant 0 : i32
    return %c0_i32, %c0_i32_0, %c0_i32_1 : i32, i32, i32
  }
  func.func @transform_10(%arg0: i32) -> (i32, i32, i32) {
    %c0_i32 = arith.constant 0 : i32
    %c0_i32_0 = arith.constant 0 : i32
    %c0_i32_1 = arith.constant 0 : i32
    %c0_i32_2 = arith.constant 0 : i32
    return %c0_i32, %c0_i32_0, %c0_i32_1 : i32, i32, i32
  }
  func.func @transform_11(%arg0: i32) -> (i32, i32, i32) {
    %c0_i32 = arith.constant 0 : i32
    %c0_i32_0 = arith.constant 0 : i32
    %c0_i32_1 = arith.constant 0 : i32
    %c0_i32_2 = arith.constant 0 : i32
    return %c0_i32, %c0_i32_0, %c0_i32_1 : i32, i32, i32
  }
  func.func @transform_12(%arg0: i32) -> (i32, i32, i32) {
    %c0_i32 = arith.constant 0 : i32
    %c0_i32_0 = arith.constant 0 : i32
    %c0_i32_1 = arith.constant 0 : i32
    %c0_i32_2 = arith.constant 0 : i32
    return %c0_i32, %c0_i32_0, %c0_i32_1 : i32, i32, i32
  }
  func.func @transform_13(%arg0: i32) -> (i32, i32, i32) {
    %c0_i32 = arith.constant 0 : i32
    %c0_i32_0 = arith.constant 0 : i32
    %c0_i32_1 = arith.constant 0 : i32
    %c0_i32_2 = arith.constant 0 : i32
    return %c0_i32, %c0_i32_0, %c0_i32_1 : i32, i32, i32
  }
  func.func @transform_14(%arg0: i32) -> (i32, i32, i32) {
    %c0_i32 = arith.constant 0 : i32
    %c0_i32_0 = arith.constant 0 : i32
    %c0_i32_1 = arith.constant 0 : i32
    %c0_i32_2 = arith.constant 0 : i32
    return %c0_i32, %c0_i32_0, %c0_i32_1 : i32, i32, i32
  }
  func.func @transform_15(%arg0: i32) -> (i32, i32, i32) {
    %c0_i32 = arith.constant 0 : i32
    %c0_i32_0 = arith.constant 0 : i32
    %c0_i32_1 = arith.constant 0 : i32
    %c0_i32_2 = arith.constant 0 : i32
    return %c0_i32, %c0_i32_0, %c0_i32_1 : i32, i32, i32
  }
  func.func @transform_16(%arg0: i32) -> (i32, i32, i32) {
    %c0_i32 = arith.constant 0 : i32
    %c0_i32_0 = arith.constant 0 : i32
    %c0_i32_1 = arith.constant 0 : i32
    %c0_i32_2 = arith.constant 0 : i32
    return %c0_i32, %c0_i32_0, %c0_i32_1 : i32, i32, i32
  }
  func.func @transform_17(%arg0: i32) -> (i32, i32) {
    %c0_i32 = arith.constant 0 : i32
    %c0_i32_0 = arith.constant 0 : i32
    %c0_i32_1 = arith.constant 0 : i32
    return %c0_i32, %c0_i32_0 : i32, i32
  }
  func.func @transform_18(%arg0: i32) -> (i32, i32) {
    %c0_i32 = arith.constant 0 : i32
    %c0_i32_0 = arith.constant 0 : i32
    %c0_i32_1 = arith.constant 0 : i32
    return %c0_i32, %c0_i32_0 : i32, i32
  }
  func.func @transform_19(%arg0: i32) -> (i32, i32, i32) {
    %c0_i32 = arith.constant 0 : i32
    %c0_i32_0 = arith.constant 0 : i32
    %c0_i32_1 = arith.constant 0 : i32
    return %arg0, %c0_i32, %c0_i32_0 : i32, i32, i32
  }
  func.func @transform_20(%arg0: i32) -> (i32, i32, i32) {
    %c0_i32 = arith.constant 0 : i32
    %c0_i32_0 = arith.constant 0 : i32
    %c0_i32_1 = arith.constant 0 : i32
    return %arg0, %c0_i32, %c0_i32_0 : i32, i32, i32
  }
}

</mosaic_0001>

<bundles_post_ra>
// kernel: vit_forward.1
= control target key start
LH: loop header
LB: loop body
LE: loop exit
PB: predicated region body
PF: predicated region fallthrough
CT: control target
= control target key end

     0   :  { %s5876_s0 = inlined_call_operand.vmem [shape: f32[2,16,48], index: 0, kind: input, shape index: {}]   ;;  %s5877_s1 = inlined_call_operand.vmem [shape: f32[48,32], index: 1, kind: input, shape index: {}]   ;;  %s5878_s2 = inlined_call_operand.vmem [shape: f32[1,32], index: 2, kind: input, shape index: {}]   ;;  %s5879_s3 = inlined_call_operand.vmem [shape: f32[16,32], index: 3, kind: input, shape index: {}]   ;;  %s5880_s4 = inlined_call_operand.vmem [shape: f32[8,32], index: 4, kind: input, shape index: {}]   ;;  %s5881_s5 = inlined_call_operand.vmem [shape: f32[2,32,96], index: 5, kind: input, shape index: {}]   ;;  %s5882_s6 = inlined_call_operand.vmem [shape: f32[2,32,32], index: 6, kind: input, shape index: {}]   ;;  %s5883_s7 = inlined_call_operand.vmem [shape: f32[2,1,16], index: 7, kind: input, shape index: {}]   ;;  %s5884_s8 = inlined_call_operand.vmem [shape: f32[2,1,1], index: 8, kind: input, shape index: {}]   ;;  %s5885_s9 = inlined_call_operand.vmem [shape: f32[2,1,32], index: 9, kind: input, shape index: {}]   ;;  %s5886_s10 = inlined_call_operand.vmem [shape: f32[2,1,32], index: 10, kind: input, shape index: {}]   ;;  %s5887_s11 = inlined_call_operand.vmem [shape: f32[2,1,32], index: 11, kind: input, shape index: {}]   ;;  %s5888_s12 = inlined_call_operand.vmem [shape: f32[2,1,32], index: 12, kind: input, shape index: {}]   ;;  %s5889_s13 = inlined_call_operand.vmem [shape: f32[2,32,128], index: 13, kind: input, shape index: {}]   ;;  %s5890_s14 = inlined_call_operand.vmem [shape: f32[2,1,128], index: 14, kind: input, shape index: {}]   ;;  %s5891_s15 = inlined_call_operand.vmem [shape: f32[2,128,32], index: 15, kind: input, shape index: {}]   ;;  %s5892_s16 = inlined_call_operand.vmem [shape: f32[2,1,32], index: 16, kind: input, shape index: {}]   ;;  %s5893_s17 = inlined_call_operand.vmem [shape: f32[32,10], index: 17, kind: input, shape index: {}]   ;;  %s5894_s18 = inlined_call_operand.vmem [shape: f32[1,10], index: 18, kind: input, shape index: {}]   ;;  %s5895_s19 = inlined_call_operand.hbm [shape: f32[2,1,10], index: 19, kind: output, shape index: {0}]   ;;  %s5896_s20 = inlined_call_operand.hbm [shape: f32[2,1,32], index: 20, kind: output, shape index: {1}]  }
   0x1   :  { %5925 = sst [smem:[#allocation14_spill]] %s5876_s0 }
   0x2   :  { %5926 = sst [smem:[#allocation15_spill]] %s5877_s1 }
   0x3   :  { %5927 = sst [smem:[#allocation16_spill]] %s5878_s2 }
   0x4   :  { %5928 = sst [smem:[#allocation17_spill]] %s5879_s3 }
   0x5   :  { %5929 = sst [smem:[#allocation18_spill]] %s5880_s4 }
   0x6   :  { %5930 = sst [smem:[#allocation19_spill]] %s5881_s5 }
   0x7   :  { %5931 = sst [smem:[#allocation20_spill]] %s5882_s6 }
   0x8   :  { %5932 = sst [smem:[#allocation21_spill]] %s5883_s7 }
   0x9   :  { %5933 = sst [smem:[#allocation22_spill]] %s5895_s19 }
   0xa   :  { %26 = vsyncpa [#allocation3], 0 }
   0xb   :  { %28 = vsyncpa [#allocation3 + $0x1], 0 }
   0xc   :  { %29 = vsyncpa [#allocation5], 0 }
   0xd   :  { %31 = vsyncpa [#allocation5 + $0x1], 0  ;;  %s4806_s1 = smov 0   ;;  %s4808_s22 = smov 0  }
   0xe   :  { %s4810_s23 = smov 0   ;;  %s4812_s24 = smov 0  }
   0xf LB: > { %5934 = sst [smem:[#allocation8_spill]] %s4671_s1  ;;  %s4827_s2 = sadd.s32 4294967295, %s4683_s24   ;;  %s4683_s24 = sphi %s4812_s24, %s5963_s24   ;;  %s4679_s23 = sphi %s4810_s23, %s5965_s23   ;;  %s4675_s22 = sphi %s4808_s22, %s5967_s22   ;;  %s4671_s1 = sphi %s4806_s1, %s5966_s1  }
  0x10   : > { %5935 = sst [smem:[#allocation9_spill]] %s4679_s23  ;;  %s3680_s25 = sadd.s32 4294967294, %s4683_s24  }
  0x11   : > { %5936 = sst [smem:[#allocation10_spill]] %s4683_s24  ;;  %s4831_s3 = sadd.s32 1, %s4683_s24  }
  0x12   : > { %5937 = sst [smem:[#allocation11_spill]] %s4831_s3  ;;  %s448_s26 = sadd.s32 1, %s4679_s23 }
  0x13   : > { %s445_s27 = ssub.s32 %s4683_s24, %s4831_s3  ;;  %p458_p0 = scmp.ne.s32.totalorder %s4679_s23, %s4675_s22 }
  0x14   : > { %p446_p1 = scmp.eq.s32.totalorder %s445_s27, 0  ;;  %p459_p2 = scmp.eq.s32.totalorder %s4827_s2, 1 }
  0x15   : > { %p464_p3 = scmp.ne.s32.totalorder %s4675_s22, %s4671_s1  ;;  %p465_p4 = scmp.eq.s32.totalorder %s3680_s25, 1 }
  0x16   : > { %s4842_s28 = scalar_select %p446_p1, %s4679_s23, %s448_s26  }
  0x17   : > { %p4844_p5 = por %p459_p2, %p458_p0  ;;  %p4848_p6 = por %p465_p4, %p464_p3 }
  0x18   : > { %5938 = sst [smem:[#allocation12_spill]] %s4842_s28  ;;  %p3683_p7 = scmp.ge.s32.totalorder %s4683_s24, 1 }
  0x19   : > { %s5940_s29 = scalar_select %p4848_p6, 1, 0 }
  0x1a   : > { %p571_p8 = scmp.lt.s32.totalorder %s4683_s24, 3 }
  0x1b   : > { %5941 = sst [smem:[#allocation13_spill]] %s5940_s29 }
  0x1c   : > { %p572_p9 = pnand %p3683_p7, %p571_p8 }
  0x1d   : > { %s5942_s21 = sld [smem:[#allocation15_spill]] (!%p572_p9)  ;;  %p632_p10 = scmp.lt.s32.totalorder (!%p572_p9), %s4827_s2, 1 }
  0x1e   : > { %575 = sbr.rel (%p572_p9) target bundleno = 6716 (0x1a3c), region = 96  ;;  %s5943_s29 = sld [smem:[#allocation14_spill]] (!%p572_p9) }
  0x1f   : > { %s5944_s5 = sld [smem:[#allocation19_spill]] (!%p572_p9)  ;;  %s4687_s0 = smov (!%p572_p9), 88  }
  0x20   : > { %s5945_s28 = sld [smem:[#allocation16_spill]] (!%p572_p9)  ;;  %s4688_s25 = smov (!%p572_p9), 96  }
  0x21   : > { %s5947_s30 = sld [smem:[#allocation18_spill]] (!%p572_p9)  ;;  %s5921_s26 = smov (!%p572_p9), 120  }
  0x22   : > { %s5913_s19 = smov (!%p572_p9), 72   ;;  %s5915_s24 = smov (!%p572_p9), 80  }
  0x23   : > { %v648_v0 = vld [vmem:[%s5942_s21 + $0x28] sm:$0xff]  ;;  %v647_v1 = vld [vmem:[%s5942_s21 + $0x20] sm:$0xff]  ;;  %v4685_v2 = vmov 0.0   ;;  %v646_v3 = vld [vmem:[%s5942_s21 + $0x18] sm:$0xff]  ;;  %s633_s23 = scalar_select %p632_p10, %s4827_s2, 1  ;;  %vm656_vm0 = vcmask 392192   ;;  %v637_v38 = vlaneseq }
  0x24   : > { %3990 = vmatprep.subr.mxu0 %v648_v0  ;;  %4022 = vmatprep.subr.mxu1 %v4685_v2  ;;  %v645_v4 = vld [vmem:[%s5942_s21 + $0x10] sm:$0xff]  ;;  %v644_v5 = vld [vmem:[%s5942_s21 + $0x8] sm:$0xff]  ;;  %v643_v7 = vld [vmem:[%s5942_s21] sm:$0xff]  ;;  %vm4686_vm1 = vmmov 0   ;;  %vm747_vm2 = vcmask 261120   ;;  %vm857_vm3 = vcmask 64512  }
  0x25   : > { %3991 = vmatpush3.msra.mxu0 %v648_v0  ;;  %s3824_s3 = sshll.u32 %s633_s23, 4  ;;  %v746_v9 = vld [vmem:[%s5944_s5 + $0x18] sm:$0xff]  ;;  %v745_v10 = vld [vmem:[%s5944_s5 + $0x10] sm:$0xff]  ;;  %v744_v11 = vld [vmem:[%s5944_s5 + $0x8] sm:$0xff]  ;;  %4028 = vmatprep.mubr.msk.f32.mxu1 %vm4686_vm1, %v4685_v2  ;;  %v638_v39 = vand.u32 127, %v637_v38  ;;  %vm1054_vm5 = vcmask 195584  }
  0x26   : > { %3992 = vmatprep.subr.mxu0 %v647_v1  ;;  %s636_s1 = scalar_lea.vmem %s5943_s29, %s3824_s3  ;;  %v743_v12 = vld [vmem:[%s5944_s5] sm:$0xff]  ;;  %s5946_s3 = sld [smem:[#allocation17_spill]]  ;;  %v4690_v40 = vmov -1e+30   ;;  %vm1228_vm6 = vcmask 130048   ;;  %vm3485_vm7 = vcmask 253952  }
  0x27   : > { %3993 = vmatpush3.msra.mxu0 %v647_v1  ;;  %v641_v6 = vld [vmem:[%s636_s1] sm:$0xff]  ;;  %v642_v8 = vld [vmem:[%s636_s1 + $0x8] sm:$0xff]  ;;  %vm639_vm4 = vcmp.lt.s32.totalorder %v638_v39, 17  ;;  %s5911_s1 = smov 112   ;;  %s5909_s29 = smov 104  }
  0x28   : > { %3994 = vmatprep.subr.mxu0 %v646_v3  ;;  %4002 = vmatprep.mubr.msk.f32.mxu0 %vm656_vm0, %v641_v6  ;;  %v3686_v14 = vld [vmem:[%s5945_s28] ss:$0 sm:$0xff]  ;;  %v4983_v41 = vsel %vm639_vm4, 0.0, %v4690_v40  ;;  %s5919_s28 = smov 64   ;;  %s5907_s27 = smov 48  }
  0x29   : > { %3995 = vmatpush3.msra.mxu0 %v646_v3  ;;  %v742_v22 = vld [vmem:[%s5947_s30] sm:$0xff]  ;;  %v4691_v3 = vmov 0   ;;  %s5948_s6 = sld [smem:[#allocation20_spill]]  ;;  %s5955_s23 = smov 104  }
  0x2a   : > { %3996 = vmatprep.subr.mxu0 %v645_v4  ;;  %4438 = vset.pattern.permute.xlu0 %v4691_v3  ;;  %s5949_s7 = sld [smem:[#allocation21_spill]] }
  0x2b   : > { %3997 = vmatpush3.msra.mxu0 %v645_v4  ;;  %4439 = vset.pattern.permute.xlu1 %v4691_v3 }
  0x2c   : > { %3998 = vmatprep.subr.mxu0 %v644_v5  ;;  %v738_v16 = vld [vmem:[%s5946_s3] sm:$0xff]  ;;  %v739_v20 = vld [vmem:[%s5946_s3 + $0x8] sm:$0xff] }
  0x2d   : > { %3999 = vmatpush3.msra.mxu0 %v644_v5 }
  0x2e   : > { %4000 = vmatprep.subr.mxu0 %v643_v7 }
  0x2f   : > { %4001 = vmatpush3.msra.mxu0 %v643_v7 }
  0x30   : > { %4003 = vmatmul.mubr.msk.f32.vlgmr.msra.gmra.mxu0 %vm656_vm0, %v642_v8  ;;  %4005 = vmatprep.subr.mxu0 %v4685_v2 }
  0x31   : > { %4006 = vmatpush3.msra.mxu0 %v746_v9  ;;  %4013 = vmatprep.mubr.msk.f32.mxu0 %vm4686_vm1, %v4685_v2 }
  0x32   : > { %4007 = vmatprep.subr.mxu0 %v4685_v2 }
  0x33   : > { %4008 = vmatpush3.msra.mxu0 %v745_v10 }
  0x34   : > { %4009 = vmatprep.subr.mxu0 %v4685_v2 }
  0x35   : > { %4010 = vmatpush3.msra.mxu0 %v744_v11 }
  0x36   : > { %4011 = vmatprep.subr.mxu0 %v4685_v2 }
  0x37   : > { %4012 = vmatpush3.msra.mxu0 %v743_v12 }
  0x38   : > { %4037 = vmatprep.subr.mxu0 %v4685_v2 }
  0xf0   : > { %v4004_v13 = vpop.f32.mrf.mxu0 }
  0xf1   : > { %v735_v18 = vadd.f32 %v4004_v13, %v3686_v14 }
  0xf2   : > { %v729_v15 = vpop.f32.mrf.mxu0 }
  0xf3   : > { %v730_v17 = vadd.f32 %v3686_v14, %v729_v15  ;;  %v4914_v21 = vadd.f32 %v739_v20, %v735_v18 }
  0xf5   : > { %v4905_v19 = vadd.f32 %v738_v16, %v730_v17 }
  0xf7   : > { %4014 = vmatmul.mubr.msk.f32.vlgmr.msra.gmra.mxu0 %vm747_vm2, %v4905_v19 }
  0xf8   : > { %4016 = vmatprep.mubr.msk.f32.mxu0 %vm4686_vm1, %v4685_v2 }
  0xfb   : > { %4017 = vmatmul.mubr.msk.f32.gmra.mxu0 %vm747_vm2, %v4914_v21 }
  0xfc   : > { %4019 = vmatprep.mubr.msk.f32.mxu0 %vm4686_vm1, %v4685_v2 }
  0xff   : > { %4020 = vmatmul.mubr.msk.f32.gmra.mxu0 %vm747_vm2, %v742_v22 }
 0x100   : > { %4043 = vmatprep.mubr.msk.f32.mxu0 %vm4686_vm1, %v4685_v2 }
 0x1b7   : > { %v4926_v23 = vpop.f32.mrf.mxu0 }
 0x1b9   : > { %v4015_v24 = vpop.f32.mrf.mxu0 }
 0x1bb   : > { %v4928_v25 = vpop.f32.mrf.mxu0 }
 0x1bc   : > { %958 = vrot.lane.b32.xlu1 %v4928_v25, %s4687_s0 }
 0x1bd   : > { %v4018_v26 = vpop.f32.mrf.mxu0 }
 0x1bf   : > { %v4932_v27 = vpop.f32.mrf.mxu0 }
 0x1c0   : > { %853 = vrot.lane.b32.xlu1 %v4928_v25, %s4688_s25  ;;  %960 = vrot.lane.b32.xlu0 %v4932_v27, %s4687_s0 }
 0x1c1   : > { %v4021_v28 = vpop.f32.mrf.mxu0 }
 0x1c4   : > { %851 = vrot.lane.b32.xlu1 %v4926_v23, %s4688_s25  ;;  %855 = vrot.lane.b32.xlu0 %v4932_v27, %s4688_s25 }
 0x1c8   : > { %952 = vrot.lane.b32.xlu1 %v4928_v25, %s5921_s26  ;;  %956 = vrot.lane.b32.xlu0 %v4926_v23, %s4687_s0 }
 0x1cc   : > { %950 = vrot.lane.b32.xlu0 %v4926_v23, %s5921_s26 }
 0x1d0   : > { %954 = vrot.lane.b32.xlu0 %v4932_v27, %s5921_s26  ;;  %s5952_s26 = smov 80  }
 0x22e   : > { %v959_v29 = vpop.permute.xlu1 %958 }
 0x232   : > { %v961_v30 = vpop.permute.xlu0 %960  ;;  %v854_v31 = vpop.permute.xlu1 %853 }
 0x233   : > { %4038 = vmatpush3.xpose.msk.msra.mxu0 %vm857_vm3, %v961_v30 }
 0x234   : > { %4039 = vmatprep.subr.mxu0 %v4685_v2 }
 0x236   : > { %v856_v32 = vpop.permute.xlu0 %855  ;;  %v852_v34 = vpop.permute.xlu1 %851 }
 0x237   : > { %4023 = vmatpush3.xpose.msk.msra.mxu1 %vm857_vm3, %v856_v32  ;;  %4040 = vmatpush3.xpose.msk.msra.mxu0 %vm857_vm3, %v959_v29 }
 0x238   : > { %4024 = vmatprep.subr.mxu1 %v4685_v2  ;;  %4041 = vmatprep.subr.mxu0 %v4685_v2 }
 0x23a   : > { %v957_v33 = vpop.permute.xlu0 %956  ;;  %v953_v36 = vpop.permute.xlu1 %952 }
 0x23b   : > { %4025 = vmatpush3.xpose.msk.msra.mxu1 %vm857_vm3, %v854_v31  ;;  %4042 = vmatpush3.xpose.msk.msra.mxu0 %vm857_vm3, %v957_v33 }
 0x23c   : > { %4026 = vmatprep.subr.mxu1 %v4685_v2  ;;  %4067 = vmatprep.subr.mxu0 %v4685_v2 }
 0x23e   : > { %v951_v35 = vpop.permute.xlu0 %950 }
 0x23f   : > { %4027 = vmatpush3.xpose.msk.msra.mxu1 %vm857_vm3, %v852_v34  ;;  %4044 = vmatmul.mubr.msk.f32.vlgmr.msra.gmra.mxu0 %vm857_vm3, %v951_v35  ;;  %v3692_v34 = vld [vmem:[%s5884_s8] ss:$0 sm:$0xff] }
 0x240   : > { %4046 = vmatprep.mubr.msk.f32.mxu0 %vm4686_vm1, %v4685_v2  ;;  %4052 = vmatprep.subr.mxu1 %v4685_v2 }
 0x242   : > { %4029 = vmatmul.mubr.msk.f32.vlgmr.msra.gmra.mxu1 %vm857_vm3, %v4926_v23  ;;  %v955_v37 = vpop.permute.xlu0 %954 }
 0x243   : > { %4047 = vmatmul.mubr.msk.f32.gmra.mxu0 %vm857_vm3, %v953_v36  ;;  %4031 = vmatprep.mubr.msk.f32.mxu1 %vm4686_vm1, %v4685_v2 }
 0x244   : > { %4049 = vmatprep.mubr.msk.f32.mxu0 %vm4686_vm1, %v4685_v2 }
 0x246   : > { %4032 = vmatmul.mubr.msk.f32.gmra.mxu1 %vm857_vm3, %v4928_v25 }
 0x247   : > { %4050 = vmatmul.mubr.msk.f32.gmra.mxu0 %vm857_vm3, %v955_v37  ;;  %4034 = vmatprep.mubr.msk.f32.mxu1 %vm4686_vm1, %v4685_v2 }
 0x248   : > { %4073 = vmatprep.mubr.msk.f32.mxu0 %vm4686_vm1, %v4685_v2 }
 0x24a   : > { %4035 = vmatmul.mubr.msk.f32.gmra.mxu1 %vm857_vm3, %v4932_v27 }
 0x24b   : > { %4058 = vmatprep.mubr.msk.f32.mxu1 %vm4686_vm1, %v4685_v2 }
 0x2ff   : > { %v1040_v42 = vpop.f32.mrf.mxu0 }
 0x300   : > { %v1041_v43 = vadd.f32 %v1040_v42, %v4983_v41 }
 0x301   : > { %v4045_v44 = vpop.f32.mrf.mxu0 }
 0x302   : > { %v936_v45 = vpop.f32.mrf.mxu1  ;;  %v1088_v46 = vsel %vm1054_vm5, %v1041_v43, -inf }
 0x303   : > { %v937_v47 = vadd.f32 %v936_v45, %v4983_v41  ;;  %1089 = vmax.xlane.f32.xlu1 %v1088_v46  ;;  %v1045_v48 = vpop.f32.mrf.mxu0 }
 0x304   : > { %v4030_v49 = vpop.f32.mrf.mxu1  ;;  %v1046_v50 = vadd.f32 %v1045_v48, %v4983_v41 }
 0x305   : > { %v4048_v51 = vpop.f32.mrf.mxu0  ;;  %v1055_v52 = vsel %vm1054_vm5, %v937_v47, -inf }
 0x306   : > { %1056 = vmax.xlane.f32.xlu0 %v1055_v52  ;;  %v941_v53 = vpop.f32.mrf.mxu1  ;;  %v1091_v60 = vsel %vm1054_vm5, %v1046_v50, -inf }
 0x307   : > { %v942_v54 = vadd.f32 %v941_v53, %v4983_v41  ;;  %v1050_v55 = vpop.f32.mrf.mxu0 }
 0x308   : > { %v4033_v56 = vpop.f32.mrf.mxu1  ;;  %v1051_v57 = vadd.f32 %v1050_v55, %v4983_v41 }
 0x309   : > { %v4051_v58 = vpop.f32.mrf.mxu0  ;;  %v1058_v59 = vsel %vm1054_vm5, %v942_v54, -inf }
 0x30a   : > { %v946_v61 = vpop.f32.mrf.mxu1  ;;  %1059 = vmax.xlane.f32.xlu1 %v1058_v59  ;;  %1092 = vmax.xlane.f32.xlu0 %v1091_v60  ;;  %v1094_v1 = vsel %vm1054_vm5, %v1051_v57, -inf }
 0x30b   : > { %v4995_v62 = vadd.f32 %v946_v61, %v4983_v41 }
 0x30c   : > { %v4036_v63 = vpop.f32.mrf.mxu1 }
 0x30d   : > { %v1061_v0 = vsel %vm1054_vm5, %v4995_v62, -inf }
 0x30e   : > { %1062 = vmax.xlane.f32.xlu1 %v1061_v0  ;;  %1095 = vmax.xlane.f32.xlu0 %v1094_v1 }
 0x38c   : > { %v1090_v4 = vpop.xlane.xlu1 %1089 }
 0x38d   : > { %v1097_v5 = vsub.f32 %v1041_v43, %v1090_v4 }
 0x38f   : > { %v1100_v6 = vmul.f32 1.442695, %v1097_v5  ;;  %v1057_v7 = vpop.xlane.xlu0 %1056 }
 0x390   : > { %v1064_v8 = vsub.f32 %v937_v47, %v1057_v7 }
 0x391   : > { %4440 = vpow2.f32 %v1100_v6 }
 0x392   : > { %v1067_v9 = vmul.f32 1.442695, %v1064_v8 }
 0x393   : > { %v1060_v10 = vpop.xlane.xlu1 %1059  ;;  %v1093_v11 = vpop.xlane.xlu0 %1092 }
 0x394   : > { %4442 = vpow2.f32 %v1067_v9  ;;  %v1065_v12 = vsub.f32 %v942_v54, %v1060_v10  ;;  %v1098_v13 = vsub.f32 %v1046_v50, %v1093_v11 }
 0x396   : > { %v1069_v14 = vmul.f32 1.442695, %v1065_v12  ;;  %v1102_v15 = vmul.f32 1.442695, %v1098_v13 }
 0x397   : > { %v1096_v16 = vpop.xlane.xlu0 %1095  ;;  %v1063_v35 = vpop.xlane.xlu1 %1062 }
 0x398   : > { %4444 = vpow2.f32 %v1069_v14  ;;  %v1099_v17 = vsub.f32 %v1051_v57, %v1096_v16  ;;  %v1066_v36 = vsub.f32 %v4995_v62, %v1063_v35 }
 0x399   : > { %4446 = vpow2.f32 %v1102_v15 }
 0x39a   : > { %v1104_v18 = vmul.f32 1.442695, %v1099_v17  ;;  %v1071_v37 = vmul.f32 1.442695, %v1066_v36 }
 0x39c   : > { %4448 = vpow2.f32 %v1104_v18 }
 0x39d   : > { %4450 = vpow2.f32 %v1071_v37 }
 0x39e   : > { %v4441_v20 = vpop.eup %4440 }
 0x39f   : > { %v1106_v22 = vsel %vm1054_vm5, %v4441_v20, 0.0 }
 0x3a0   : > { %1107 = vadd.xlane.f32.xlu0 %v1106_v22 }
 0x3a1   : > { %v5001_v24 = vpop.eup %4442 }
 0x3a2   : > { %v1073_v26 = vsel %vm1054_vm5, %v5001_v24, 0.0 }
 0x3a3   : > { %1074 = vadd.xlane.f32.xlu1 %v1073_v26 }
 0x3a5   : > { %v5005_v28 = vpop.eup %4444 }
 0x3a6   : > { %v5007_v29 = vpop.eup %4446  ;;  %v1076_v30 = vsel %vm1054_vm5, %v5005_v28, 0.0 }
 0x3a7   : > { %1077 = vadd.xlane.f32.xlu1 %v1076_v30  ;;  %v1109_v31 = vsel %vm1054_vm5, %v5007_v29, 0.0 }
 0x3a8   : > { %1110 = vadd.xlane.f32.xlu0 %v1109_v31 }
 0x3a9   : > { %v5013_v32 = vpop.eup %4448 }
 0x3aa   : > { %v1112_v33 = vsel %vm1054_vm5, %v5013_v32, 0.0  ;;  %v5045_v38 = vpop.eup %4450 }
 0x3ab   : > { %v1079_v39 = vsel %vm1054_vm5, %v5045_v38, 0.0 }
 0x3ac   : > { %1113 = vadd.xlane.f32.xlu0 %v1112_v33 }
 0x3b8   : > { %1131 = vrot.lane.b32.xlu1 %v4932_v27, %s5919_s28 }
 0x3bc   : > { %1129 = vrot.lane.b32.xlu1 %v4928_v25, %s5919_s28 }
 0x3c0   : > { %1127 = vrot.lane.b32.xlu1 %v4926_v23, %s5919_s28  ;;  %s5953_s28 = smov 72  }
 0x3c2   : > { %844 = vperm.xlu0 %4438, %v3692_v34  }
 0x3c4   : > { %1374 = vrot.lane.b32.xlu1 %v4932_v27, %s5913_s19 }
 0x3c6   : > { %1266 = vrot.lane.b32.xlu0 %v4926_v23, %s5915_s24 }
 0x3c8   : > { %1270 = vrot.lane.b32.xlu1 %v4932_v27, %s5915_s24 }
 0x3ca   : > { %1260 = vrot.lane.b32.xlu0 %v4926_v23, %s5911_s1 }
 0x3cc   : > { %1372 = vrot.lane.b32.xlu1 %v4928_v25, %s5913_s19 }
 0x3ce   : > { %1262 = vrot.lane.b32.xlu0 %v4928_v25, %s5911_s1 }
 0x3d0   : > { %1268 = vrot.lane.b32.xlu1 %v4928_v25, %s5915_s24  ;;  %s5951_s24 = smov 64  }
 0x3d2   : > { %1264 = vrot.lane.b32.xlu0 %v4932_v27, %s5911_s1  ;;  %s5956_s1 = smov 48  }
 0x3d4   : > { %1370 = vrot.lane.b32.xlu1 %v4926_v23, %s5913_s19  ;;  %s5950_s19 = smov 120  }
 0x3f8   : > { %1080 = vadd.xlane.f32.xlu1 %v1079_v39 }
 0x409   : > { %1364 = vrot.lane.b32.xlu1 %v4926_v23, %s5909_s29 }
 0x40d   : > { %1366 = vrot.lane.b32.xlu1 %v4928_v25, %s5909_s29 }
 0x411   : > { %1368 = vrot.lane.b32.xlu1 %v4932_v27, %s5909_s29  ;;  %s5957_s29 = smov 16  }
 0x429   : > { %v1108_v40 = vpop.xlane.xlu0 %1107 }
 0x42a   : > { %4452 = vrcp.f32 %v1108_v40 }
 0x42c   : > { %v1075_v42 = vpop.xlane.xlu1 %1074 }
 0x42d   : > { %4454 = vrcp.f32 %v1075_v42 }
 0x430   : > { %v1078_v43 = vpop.xlane.xlu1 %1077 }
 0x431   : > { %4456 = vrcp.f32 %v1078_v43  ;;  %v1111_v44 = vpop.xlane.xlu0 %1110 }
 0x432   : > { %4458 = vrcp.f32 %v1111_v44 }
 0x434   : > { %v1132_v45 = vpop.permute.xlu1 %1131 }
 0x435   : > { %4053 = vmatpush3.msra.mxu1 %v1132_v45  ;;  %v1114_v48 = vpop.xlane.xlu0 %1113 }
 0x436   : > { %4054 = vmatprep.subr.mxu1 %v4685_v2  ;;  %4460 = vrcp.f32 %v1114_v48 }
 0x437   : > { %v4453_v47 = vpop.eup %4452 }
 0x438   : > { %v1130_v46 = vpop.permute.xlu1 %1129  ;;  %v1118_v50 = vmul.f32 %v4453_v47, %v4441_v20 }
 0x439   : > { %4055 = vmatpush3.msra.mxu1 %v1130_v46 }
 0x43a   : > { %4056 = vmatprep.subr.mxu1 %v4685_v2  ;;  %v4455_v49 = vpop.eup %4454 }
 0x43b   : > { %v1085_v54 = vmul.f32 %v4455_v49, %v5001_v24 }
 0x43c   : > { %v1128_v51 = vpop.permute.xlu1 %1127 }
 0x43d   : > { %v5057_v52 = vpop.permute.xlu0 %844  ;;  %4057 = vmatpush3.msra.mxu1 %v1128_v51 }
 0x43e   : > { %v4457_v53 = vpop.eup %4456  ;;  %v1121_v55 = vmul.f32 %v1118_v50, %v5057_v52  ;;  %4082 = vmatprep.subr.mxu1 %v4685_v2 }
 0x43f   : > { %v4459_v56 = vpop.eup %4458  ;;  %v1086_v60 = vmul.f32 %v4457_v53, %v5005_v28 }
 0x440   : > { %v1375_v57 = vpop.permute.xlu1 %1374  ;;  %v1124_v58 = vsub.f32 %v1085_v54, %v1121_v55  ;;  %v1119_v59 = vmul.f32 %v4459_v56, %v5007_v29 }
 0x441   : > { %v1267_v1 = vpop.permute.xlu0 %1266 }
 0x442   : > { %4059 = vmatmul.mubr.msk.f32.vlgmr.msra.gmra.mxu1 %vm1054_vm5, %v1124_v58  ;;  %v1122_v61 = vmul.f32 %v1119_v59, %v5057_v52 }
 0x443   : > { %4083 = vmatpush3.xpose.msk.msra.mxu1 %vm857_vm3, %v1375_v57  ;;  %4061 = vmatprep.mubr.msk.f32.mxu1 %vm4686_vm1, %v4685_v2  ;;  %v4461_v9 = vpop.eup %4460 }
 0x444   : > { %v1271_v62 = vpop.permute.xlu1 %1270  ;;  %v1125_v63 = vsub.f32 %v1086_v60, %v1122_v61  ;;  %4084 = vmatprep.subr.mxu1 %v4685_v2  ;;  %v1120_v10 = vmul.f32 %v4461_v9, %v5013_v32 }
 0x445   : > { %4068 = vmatpush3.xpose.msk.msra.mxu0 %vm857_vm3, %v1271_v62  ;;  %v1261_v4 = vpop.permute.xlu0 %1260 }
 0x446   : > { %4062 = vmatmul.mubr.msk.f32.gmra.mxu1 %vm1054_vm5, %v1125_v63  ;;  %4069 = vmatprep.subr.mxu0 %v4685_v2  ;;  %v1123_v13 = vmul.f32 %v1120_v10, %v5057_v52 }
 0x447   : > { %4064 = vmatprep.mubr.msk.f32.mxu1 %vm4686_vm1, %v4685_v2 }
 0x448   : > { %v1373_v0 = vpop.permute.xlu1 %1372 }
 0x449   : > { %4085 = vmatpush3.xpose.msk.msra.mxu1 %vm857_vm3, %v1373_v0  ;;  %v1263_v6 = vpop.permute.xlu0 %1262 }
 0x44a   : > { %4086 = vmatprep.subr.mxu1 %v4685_v2 }
 0x44c   : > { %v1269_v3 = vpop.permute.xlu1 %1268 }
 0x44d   : > { %4070 = vmatpush3.xpose.msk.msra.mxu0 %vm857_vm3, %v1269_v3  ;;  %v1265_v7 = vpop.permute.xlu0 %1264 }
 0x44e   : > { %4071 = vmatprep.subr.mxu0 %v4685_v2 }
 0x450   : > { %v1371_v5 = vpop.permute.xlu1 %1370 }
 0x451   : > { %4072 = vmatpush3.xpose.msk.msra.mxu0 %vm857_vm3, %v1267_v1  ;;  %4087 = vmatpush3.xpose.msk.msra.mxu1 %vm857_vm3, %v1371_v5 }
 0x452   : > { %4097 = vmatprep.subr.mxu0 %v4685_v2  ;;  %4112 = vmatprep.subr.mxu1 %v4685_v2 }
 0x454   : > { %4074 = vmatmul.mubr.msk.f32.vlgmr.msra.gmra.mxu0 %vm857_vm3, %v1261_v4 }
 0x455   : > { %4076 = vmatprep.mubr.msk.f32.mxu0 %vm4686_vm1, %v4685_v2 }
 0x458   : > { %4077 = vmatmul.mubr.msk.f32.gmra.mxu0 %vm857_vm3, %v1263_v6 }
 0x459   : > { %4079 = vmatprep.mubr.msk.f32.mxu0 %vm4686_vm1, %v4685_v2 }
 0x45c   : > { %4080 = vmatmul.mubr.msk.f32.gmra.mxu0 %vm857_vm3, %v1265_v7 }
 0x45d   : > { %4103 = vmatprep.mubr.msk.f32.mxu0 %vm4686_vm1, %v4685_v2 }
 0x481   : > { %v1081_v8 = vpop.xlane.xlu1 %1080 }
 0x482   : > { %4462 = vrcp.f32 %v1081_v8 }
 0x485   : > { %v1365_v15 = vpop.permute.xlu1 %1364 }
 0x489   : > { %v1367_v16 = vpop.permute.xlu1 %1366 }
 0x48d   : > { %v1369_v17 = vpop.permute.xlu1 %1368 }
 0x48f   : > { %v4463_v11 = vpop.eup %4462 }
 0x490   : > { %v1087_v12 = vmul.f32 %v4463_v11, %v5045_v38 }
 0x492   : > { %v1126_v14 = vsub.f32 %v1087_v12, %v1123_v13 }
 0x494   : > { %4065 = vmatmul.mubr.msk.f32.gmra.mxu1 %vm1054_vm5, %v1126_v14 }
 0x495   : > { %4088 = vmatprep.mubr.msk.f32.mxu1 %vm4686_vm1, %v4685_v2 }
 0x498   : > { %4089 = vmatmul.mubr.msk.f32.vlgmr.msra.gmra.mxu1 %vm857_vm3, %v1365_v15 }
 0x499   : > { %4091 = vmatprep.mubr.msk.f32.mxu1 %vm4686_vm1, %v4685_v2 }
 0x49c   : > { %4092 = vmatmul.mubr.msk.f32.gmra.mxu1 %vm857_vm3, %v1367_v16 }
 0x49d   : > { %4094 = vmatprep.mubr.msk.f32.mxu1 %vm4686_vm1, %v4685_v2 }
 0x4a0   : > { %4095 = vmatmul.mubr.msk.f32.gmra.mxu1 %vm857_vm3, %v1369_v17 }
 0x4a1   : > { %4120 = vmatprep.mubr.msk.f32.mxu1 %vm4686_vm1, %v4685_v2 }
 0x502   : > { %v5107_v18 = vpop.f32.mrf.mxu1 }
 0x504   : > { %v4060_v20 = vpop.f32.mrf.mxu1 }
 0x506   : > { %v5109_v22 = vpop.f32.mrf.mxu1 }
 0x508   : > { %v4063_v24 = vpop.f32.mrf.mxu1 }
 0x514   : > { %v1350_v26 = vpop.f32.mrf.mxu0 }
 0x515   : > { %v1351_v28 = vadd.f32 %v1350_v26, %v4983_v41 }
 0x516   : > { %v4075_v29 = vpop.f32.mrf.mxu0 }
 0x517   : > { %v1468_v30 = vsel %vm1054_vm5, %v1351_v28, -inf }
 0x518   : > { %1469 = vmax.xlane.f32.xlu0 %v1468_v30  ;;  %v1355_v31 = vpop.f32.mrf.mxu0 }
 0x519   : > { %v1356_v40 = vadd.f32 %v1355_v31, %v4983_v41 }
 0x51a   : > { %v4078_v32 = vpop.f32.mrf.mxu0 }
 0x51b   : > { %v1471_v48 = vsel %vm1054_vm5, %v1356_v40, -inf }
 0x51c   : > { %v1360_v33 = vpop.f32.mrf.mxu0 }
 0x51d   : > { %v1361_v46 = vadd.f32 %v1360_v33, %v4983_v41 }
 0x51e   : > { %v4081_v34 = vpop.f32.mrf.mxu0 }
 0x51f   : > { %v1474_v54 = vsel %vm1054_vm5, %v1361_v46, -inf }
 0x554   : > { %v5113_v35 = vpop.f32.mrf.mxu1 }
 0x556   : > { %v4066_v36 = vpop.f32.mrf.mxu1 }
 0x558   : > { %v1454_v37 = vpop.f32.mrf.mxu1 }
 0x559   : > { %v1455_v38 = vadd.f32 %v1454_v37, %v4983_v41 }
 0x55a   : > { %v4090_v39 = vpop.f32.mrf.mxu1 }
 0x55b   : > { %v1501_v42 = vsel %vm1054_vm5, %v1455_v38, -inf }
 0x55c   : > { %1502 = vmax.xlane.f32.xlu1 %v1501_v42  ;;  %v1459_v43 = vpop.f32.mrf.mxu1 }
 0x55d   : > { %v1460_v44 = vadd.f32 %v1459_v43, %v4983_v41 }
 0x55e   : > { %v4093_v45 = vpop.f32.mrf.mxu1 }
 0x55f   : > { %v1504_v47 = vsel %vm1054_vm5, %v1460_v44, -inf }
 0x560   : > { %v1464_v49 = vpop.f32.mrf.mxu1  ;;  %1505 = vmax.xlane.f32.xlu0 %v1504_v47  ;;  %1472 = vmax.xlane.f32.xlu1 %v1471_v48 }
 0x561   : > { %v1465_v50 = vadd.f32 %v1464_v49, %v4983_v41 }
 0x562   : > { %v4096_v51 = vpop.f32.mrf.mxu1 }
 0x563   : > { %v1507_v53 = vsel %vm1054_vm5, %v1465_v50, -inf }
 0x564   : > { %1508 = vmax.xlane.f32.xlu0 %v1507_v53  ;;  %1475 = vmax.xlane.f32.xlu1 %v1474_v54 }
 0x5a1   : > { %v1470_v55 = vpop.xlane.xlu0 %1469 }
 0x5a2   : > { %v1477_v56 = vsub.f32 %v1351_v28, %v1470_v55 }
 0x5a4   : > { %v1480_v57 = vmul.f32 1.442695, %v1477_v56 }
 0x5a6   : > { %4464 = vpow2.f32 %v1480_v57 }
 0x5b3   : > { %v5125_v58 = vpop.eup %4464 }
 0x5b4   : > { %v1486_v59 = vsel %vm1054_vm5, %v5125_v58, 0.0 }
 0x5b5   : > { %1487 = vadd.xlane.f32.xlu1 %v1486_v59 }
 0x5e5   : > { %v1503_v60 = vpop.xlane.xlu1 %1502 }
 0x5e6   : > { %v1510_v61 = vsub.f32 %v1455_v38, %v1503_v60 }
 0x5e8   : > { %v1513_v62 = vmul.f32 1.442695, %v1510_v61 }
 0x5e9   : > { %v1506_v63 = vpop.xlane.xlu0 %1505  ;;  %v1473_v0 = vpop.xlane.xlu1 %1472 }
 0x5ea   : > { %4466 = vpow2.f32 %v1513_v62  ;;  %v1511_v1 = vsub.f32 %v1460_v44, %v1506_v63  ;;  %v1478_v3 = vsub.f32 %v1356_v40, %v1473_v0 }
 0x5ec   : > { %v1515_v4 = vmul.f32 1.442695, %v1511_v1  ;;  %v1482_v5 = vmul.f32 1.442695, %v1478_v3 }
 0x5ed   : > { %v1509_v6 = vpop.xlane.xlu0 %1508  ;;  %v1476_v7 = vpop.xlane.xlu1 %1475 }
 0x5ee   : > { %4468 = vpow2.f32 %v1515_v4  ;;  %v1512_v8 = vsub.f32 %v1465_v50, %v1509_v6  ;;  %v1479_v9 = vsub.f32 %v1361_v46, %v1476_v7  ;;  %v1225_v4 = vmul.f32 %v5107_v18, %v5107_v18 }
 0x5ef   : > { %4470 = vpow2.f32 %v1482_v5  ;;  %v1227_v7 = vmul.f32 %v5113_v35, %v5113_v35 }
 0x5f0   : > { %v1517_v10 = vmul.f32 1.442695, %v1512_v8  ;;  %v1484_v11 = vmul.f32 1.442695, %v1479_v9  ;;  %v1229_v8 = vsel %vm1228_vm6, %v1225_v4, 0.0 }
 0x5f1   : > { %v1235_v9 = vsel %vm1228_vm6, %v1227_v7, 0.0 }
 0x5f2   : > { %4472 = vpow2.f32 %v1517_v10  ;;  %v1683_v10 = vld [vmem:[%s5948_s6 + $0x18] sm:$0xff] }
 0x5f3   : > { %4474 = vpow2.f32 %v1484_v11  ;;  %v1682_v11 = vld [vmem:[%s5948_s6 + $0x10] sm:$0xff]  ;;  %4113 = vmatpush3.msra.mxu1 %v1683_v10 }
 0x5f4   : > { %4114 = vmatprep.subr.mxu1 %v4685_v2 }
 0x5f5   : > { %4115 = vmatpush3.msra.mxu1 %v1682_v11 }
 0x5f6   : > { %4116 = vmatprep.subr.mxu1 %v4685_v2 }
 0x5f7   : > { %v4467_v12 = vpop.eup %4466 }
 0x5f8   : > { %v1519_v13 = vsel %vm1054_vm5, %v4467_v12, 0.0 }
 0x5f9   : > { %1520 = vadd.xlane.f32.xlu0 %v1519_v13 }
 0x5fb   : > { %v4469_v14 = vpop.eup %4468 }
 0x5fc   : > { %v4471_v15 = vpop.eup %4470  ;;  %v1522_v16 = vsel %vm1054_vm5, %v4469_v14, 0.0 }
 0x5fd   : > { %1523 = vadd.xlane.f32.xlu0 %v1522_v16  ;;  %v1489_v17 = vsel %vm1054_vm5, %v4471_v15, 0.0 }
 0x5fe   : > { %1490 = vadd.xlane.f32.xlu1 %v1489_v17 }
 0x5ff   : > { %v4473_v20 = vpop.eup %4472 }
 0x600   : > { %v4475_v24 = vpop.eup %4474  ;;  %v1525_v26 = vsel %vm1054_vm5, %v4473_v20, 0.0 }
 0x601   : > { %1526 = vadd.xlane.f32.xlu0 %v1525_v26  ;;  %v1492_v28 = vsel %vm1054_vm5, %v4475_v24, 0.0 }
 0x602   : > { %1493 = vadd.xlane.f32.xlu1 %v1492_v28  ;;  %v1680_v28 = vld [vmem:[%s5948_s6] sm:$0xff] }
 0x613   : > { %1542 = vrot.lane.b32.xlu1 %v4928_v25, %s5907_s27 }
 0x617   : > { %1540 = vrot.lane.b32.xlu1 %v4926_v23, %s5907_s27  ;;  %1544 = vrot.lane.b32.xlu0 %v4932_v27, %s5907_s27  ;;  %s5917_s27 = smov 16  }
 0x63e   : > { %v1488_v29 = vpop.xlane.xlu1 %1487 }
 0x63f   : > { %4476 = vrcp.f32 %v1488_v29 }
 0x64c   : > { %v4477_v25 = vpop.eup %4476 }
 0x64d   : > { %v1498_v38 = vmul.f32 %v4477_v25, %v5125_v58 }
 0x682   : > { %v1521_v30 = vpop.xlane.xlu0 %1520 }
 0x683   : > { %4478 = vrcp.f32 %v1521_v30 }
 0x686   : > { %v1524_v31 = vpop.xlane.xlu0 %1523 }
 0x687   : > { %4480 = vrcp.f32 %v1524_v31  ;;  %v1491_v32 = vpop.xlane.xlu1 %1490  ;;  %v3708_v31 = vld [vmem:[%s5949_s7] ss:$0 sm:$0xff] }
 0x688   : > { %4482 = vrcp.f32 %v1491_v32 }
 0x68a   : > { %v1527_v33 = vpop.xlane.xlu0 %1526 }
 0x68b   : > { %4484 = vrcp.f32 %v1527_v33  ;;  %v1494_v34 = vpop.xlane.xlu1 %1493 }
 0x68c   : > { %4486 = vrcp.f32 %v1494_v34 }
 0x68e   : > { %v1545_v36 = vpop.permute.xlu0 %1544 }
 0x68f   : > { %v1543_v37 = vpop.permute.xlu1 %1542  ;;  %4098 = vmatpush3.msra.mxu0 %v1545_v36 }
 0x690   : > { %v4479_v23 = vpop.eup %4478  ;;  %4099 = vmatprep.subr.mxu0 %v4685_v2 }
 0x691   : > { %v1531_v27 = vmul.f32 %v4479_v23, %v4467_v12  ;;  %4100 = vmatpush3.msra.mxu0 %v1543_v37  ;;  %v1681_v12 = vld [vmem:[%s5948_s6 + $0x8] sm:$0xff] }
 0x692   : > { %4101 = vmatprep.subr.mxu0 %v4685_v2  ;;  %4117 = vmatpush3.msra.mxu1 %v1681_v12 }
 0x693   : > { %v1534_v39 = vmul.f32 %v1531_v27, %v5057_v52  ;;  %v1541_v40 = vpop.permute.xlu1 %1540  ;;  %4118 = vmatprep.subr.mxu1 %v4685_v2 }
 0x694   : > { %v4481_v42 = vpop.eup %4480  ;;  %4102 = vmatpush3.msra.mxu0 %v1541_v40  ;;  %4119 = vmatpush3.msra.mxu1 %v1680_v28  ;;  %v1839_v28 = vld [vmem:[%s5889_s13 + $0x18] sm:$0xff] }
 0x695   : > { %v4483_v43 = vpop.eup %4482  ;;  %v1537_v44 = vsub.f32 %v1498_v38, %v1534_v39  ;;  %v1532_v45 = vmul.f32 %v4481_v42, %v4469_v14  ;;  %4129 = vmatprep.subr.mxu0 %v4685_v2  ;;  %4146 = vmatprep.subr.mxu1 %v4685_v2 }
 0x696   : > { %v1499_v46 = vmul.f32 %v4483_v43, %v4471_v15 }
 0x697   : > { %4104 = vmatmul.mubr.msk.f32.vlgmr.msra.gmra.mxu0 %vm1054_vm5, %v1537_v44  ;;  %v1535_v47 = vmul.f32 %v1532_v45, %v5057_v52 }
 0x698   : > { %v4485_v48 = vpop.eup %4484  ;;  %4106 = vmatprep.mubr.msk.f32.mxu0 %vm4686_vm1, %v4685_v2  ;;  %4130 = vmatpush3.msra.mxu0 %v1839_v28 }
 0x699   : > { %v4487_v49 = vpop.eup %4486  ;;  %v1538_v50 = vsub.f32 %v1499_v46, %v1535_v47  ;;  %v1533_v51 = vmul.f32 %v4485_v48, %v4473_v20  ;;  %4131 = vmatprep.subr.mxu0 %v4685_v2 }
 0x69a   : > { %v1500_v53 = vmul.f32 %v4487_v49, %v4475_v24 }
 0x69b   : > { %4107 = vmatmul.mubr.msk.f32.gmra.mxu0 %vm1054_vm5, %v1538_v50  ;;  %v1536_v54 = vmul.f32 %v1533_v51, %v5057_v52  ;;  %v1226_v52 = vmul.f32 %v5109_v22, %v5109_v22 }
 0x69c   : > { %4109 = vmatprep.mubr.msk.f32.mxu0 %vm4686_vm1, %v4685_v2 }
 0x69d   : > { %v1539_v55 = vsub.f32 %v1500_v53, %v1536_v54  ;;  %v1232_v5 = vsel %vm1228_vm6, %v1226_v52, 0.0 }
 0x69f   : > { %4110 = vmatmul.mubr.msk.f32.gmra.mxu0 %vm1054_vm5, %v1539_v55 }
 0x6a0   : > { %4137 = vmatprep.mubr.msk.f32.mxu0 %vm4686_vm1, %v4685_v2 }
 0x757   : > { %v1624_v56 = vpop.f32.mrf.mxu0 }
 0x758   : > { %v1638_v57 = vmul.f32 %v1624_v56, %v1624_v56 }
 0x759   : > { %v4105_v58 = vpop.f32.mrf.mxu0 }
 0x75a   : > { %v1641_v59 = vsel %vm1228_vm6, %v1638_v57, 0.0 }
 0x75b   : > { %1642 = vadd.xlane.f32.xlu0 %v1641_v59  ;;  %v1629_v60 = vpop.f32.mrf.mxu0 }
 0x75c   : > { %v1639_v61 = vmul.f32 %v1629_v60, %v1629_v60 }
 0x75d   : > { %v4108_v62 = vpop.f32.mrf.mxu0 }
 0x75e   : > { %v1644_v63 = vsel %vm1228_vm6, %v1639_v61, 0.0 }
 0x75f   : > { %1645 = vadd.xlane.f32.xlu1 %v1644_v63  ;;  %v1634_v0 = vpop.f32.mrf.mxu0 }
 0x760   : > { %v1640_v1 = vmul.f32 %v1634_v0, %v1634_v0 }
 0x761   : > { %v4111_v3 = vpop.f32.mrf.mxu0 }
 0x762   : > { %v1647_v6 = vsel %vm1228_vm6, %v1640_v1, 0.0 }
 0x763   : > { %1233 = vadd.xlane.f32.xlu1 %v1232_v5  ;;  %1648 = vadd.xlane.f32.xlu0 %v1647_v6 }
 0x767   : > { %1230 = vadd.xlane.f32.xlu0 %v1229_v8 }
 0x76b   : > { %1236 = vadd.xlane.f32.xlu0 %v1235_v9 }
 0x7e4   : > { %v1643_v13 = vpop.xlane.xlu0 %1642 }
 0x7e5   : > { %v1650_v14 = vmul.f32 0.0625, %v1643_v13 }
 0x7e7   : > { %v1653_v15 = vadd.f32 1e-05, %v1650_v14 }
 0x7e8   : > { %v1646_v16 = vpop.xlane.xlu1 %1645 }
 0x7e9   : > { %4488 = vrsqrt.f32 %v1653_v15  ;;  %v1651_v17 = vmul.f32 0.0625, %v1646_v16 }
 0x7eb   : > { %v1654_v20 = vadd.f32 1e-05, %v1651_v17 }
 0x7ec   : > { %v1649_v24 = vpop.xlane.xlu0 %1648  ;;  %v1234_v40 = vpop.xlane.xlu1 %1233 }
 0x7ed   : > { %4490 = vrsqrt.f32 %v1654_v20  ;;  %v1652_v26 = vmul.f32 0.0625, %v1649_v24  ;;  %v1240_v42 = vmul.f32 0.0625, %v1234_v40  ;;  %v3727_v40 = vld [vmem:[%s5885_s9] ss:$0 sm:$0xff] }
 0x7ef   : > { %v1655_v29 = vadd.f32 1e-05, %v1652_v26  ;;  %v1243_v45 = vadd.f32 1e-05, %v1240_v42 }
 0x7f0   : > { %v1231_v38 = vpop.xlane.xlu0 %1230 }
 0x7f1   : > { %4492 = vrsqrt.f32 %v1655_v29  ;;  %v1239_v39 = vmul.f32 0.0625, %v1231_v38  ;;  %v1838_v29 = vld [vmem:[%s5889_s13 + $0x10] sm:$0xff] }
 0x7f2   : > { %4132 = vmatpush3.msra.mxu0 %v1838_v29 }
 0x7f3   : > { %v1242_v43 = vadd.f32 1e-05, %v1239_v39  ;;  %4133 = vmatprep.subr.mxu0 %v4685_v2 }
 0x7f4   : > { %v1237_v44 = vpop.xlane.xlu0 %1236 }
 0x7f5   : > { %4494 = vrsqrt.f32 %v1242_v43  ;;  %v1241_v46 = vmul.f32 0.0625, %v1237_v44  ;;  %v3728_v43 = vld [vmem:[%s5886_s10] ss:$0 sm:$0xff] }
 0x7f6   : > { %v4489_v30 = vpop.eup %4488  ;;  %4496 = vrsqrt.f32 %v1243_v45 }
 0x7f7   : > { %v1659_v32 = vmul.f32 %v4489_v30, %v1624_v56  ;;  %v1244_v47 = vadd.f32 1e-05, %v1241_v46  ;;  %v1837_v30 = vld [vmem:[%s5889_s13 + $0x8] sm:$0xff] }
 0x7f8   : > { %4134 = vmatpush3.msra.mxu0 %v1837_v30 }
 0x7f9   : > { %v1662_v33 = vmul.f32 %v3708_v31, %v1659_v32  ;;  %4498 = vrsqrt.f32 %v1244_v47  ;;  %4135 = vmatprep.subr.mxu0 %v4685_v2 }
 0x7fa   : > { %v4491_v34 = vpop.eup %4490 }
 0x7fb   : > { %1668 = vrot.lane.b32.xlu1 %v1662_v33, %s5917_s27  ;;  %v1660_v36 = vmul.f32 %v4491_v34, %v1629_v60 }
 0x7fd   : > { %v1663_v25 = vmul.f32 %v3708_v31, %v1660_v36 }
 0x7fe   : > { %v4493_v37 = vpop.eup %4492 }
 0x7ff   : > { %1670 = vrot.lane.b32.xlu0 %v1663_v25, %s5917_s27  ;;  %v1661_v23 = vmul.f32 %v4493_v37, %v1634_v0 }
 0x801   : > { %v1664_v27 = vmul.f32 %v3708_v31, %v1661_v23 }
 0x802   : > { %v4495_v48 = vpop.eup %4494 }
 0x803   : > { %1672 = vrot.lane.b32.xlu1 %v1664_v27, %s5917_s27  ;;  %v1248_v49 = vmul.f32 %v4495_v48, %v5107_v18  ;;  %v4497_v50 = vpop.eup %4496  ;;  %s5954_s27 = smov 112  }
 0x804   : > { %v1249_v53 = vmul.f32 %v4497_v50, %v5109_v22 }
 0x805   : > { %v1257_v51 = vmul.f32 %v3708_v31, %v1248_v49 }
 0x806   : > { %v4499_v55 = vpop.eup %4498  ;;  %v1258_v57 = vmul.f32 %v3708_v31, %v1249_v53 }
 0x807   : > { %v1250_v59 = vmul.f32 %v4499_v55, %v5113_v35 }
 0x809   : > { %v1259_v18 = vmul.f32 %v3708_v31, %v1250_v59  ;;  %v1836_v31 = vld [vmem:[%s5889_s13] sm:$0xff]  ;;  %v1976_v59 = vld [vmem:[%s5891_s15 + $0x68] sm:$0xff] }
 0x80a   : > { %4136 = vmatpush3.msra.mxu0 %v1836_v31 }
 0x80b   : > { %4187 = vmatprep.subr.mxu0 %v4685_v2 }
 0x86d   : > { %v1669_v54 = vpop.permute.xlu1 %1668 }
 0x86e   : > { %v1677_v56 = vsel %vm1228_vm6, %v1257_v51, %v1669_v54 }
 0x86f   : > { %4121 = vmatmul.mubr.msk.f32.vlgmr.msra.gmra.mxu1 %vm747_vm2, %v1677_v56  ;;  %v4592_v56 = vld [vmem:[%s5947_s30] sm:$0xff] }
 0x870   : > { %4123 = vmatprep.mubr.msk.f32.mxu1 %vm4686_vm1, %v4685_v2 }
 0x871   : > { %v1671_v58 = vpop.permute.xlu0 %1670 }
 0x872   : > { %v1678_v60 = vsel %vm1228_vm6, %v1258_v57, %v1671_v58  ;;  %v1977_v58 = vld [vmem:[%s5891_s15 + $0x70] sm:$0xff] }
 0x873   : > { %4124 = vmatmul.mubr.msk.f32.gmra.mxu1 %vm747_vm2, %v1678_v60  ;;  %v1975_v60 = vld [vmem:[%s5891_s15 + $0x60] sm:$0xff] }
 0x874   : > { %4126 = vmatprep.mubr.msk.f32.mxu1 %vm4686_vm1, %v4685_v2 }
 0x875   : > { %v1673_v22 = vpop.permute.xlu1 %1672 }
 0x876   : > { %v1679_v61 = vsel %vm1228_vm6, %v1259_v18, %v1673_v22  ;;  %v1974_v18 = vld [vmem:[%s5891_s15 + $0x58] sm:$0xff]  ;;  %v1973_v22 = vld [vmem:[%s5891_s15 + $0x50] sm:$0xff] }
 0x877   : > { %4127 = vmatmul.mubr.msk.f32.gmra.mxu1 %vm747_vm2, %v1679_v61  ;;  %v1972_v61 = vld [vmem:[%s5891_s15 + $0x48] sm:$0xff] }
 0x878   : > { %4178 = vmatprep.mubr.msk.f32.mxu1 %vm4686_vm1, %v4685_v2 }
 0x92f   : > { %v1759_v62 = vpop.f32.mrf.mxu1 }
 0x930   : > { %v1775_v52 = vsel %vm747_vm2, %v1759_v62, 0.0 }
 0x931   : > { %1776 = vadd.xlane.f32.xlu1 %v1775_v52  ;;  %v4122_v35 = vpop.f32.mrf.mxu1  ;;  %v1970_v52 = vld [vmem:[%s5891_s15 + $0x38] sm:$0xff] }
 0x932   : > { %v1969_v35 = vld [vmem:[%s5891_s15 + $0x30] sm:$0xff] }
 0x933   : > { %v1764_v63 = vpop.f32.mrf.mxu1 }
 0x934   : > { %v1778_v0 = vsel %vm747_vm2, %v1764_v63, 0.0 }
 0x935   : > { %1779 = vadd.xlane.f32.xlu0 %v1778_v0  ;;  %v4125_v1 = vpop.f32.mrf.mxu1  ;;  %v1967_v0 = vld [vmem:[%s5891_s15 + $0x20] sm:$0xff] }
 0x936   : > { %v1966_v1 = vld [vmem:[%s5891_s15 + $0x18] sm:$0xff] }
 0x937   : > { %v1769_v3 = vpop.f32.mrf.mxu1 }
 0x938   : > { %v1781_v4 = vsel %vm747_vm2, %v1769_v3, 0.0 }
 0x939   : > { %1782 = vadd.xlane.f32.xlu0 %v1781_v4  ;;  %v4128_v5 = vpop.f32.mrf.mxu1  ;;  %v1964_v4 = vld [vmem:[%s5891_s15 + $0x8] sm:$0xff] }
 0x93a   : > { %v1963_v5 = vld [vmem:[%s5891_s15] sm:$0xff] }
 0x9ba   : > { %v1777_v6 = vpop.xlane.xlu1 %1776 }
 0x9bb   : > { %v1785_v7 = vmul.f32 0.03125, %v1777_v6  ;;  %v3729_v6 = vld [vmem:[%s5890_s14] ss:$0 sm:$0xff] }
 0x9bd   : > { %v1788_v8 = vsub.f32 %v1759_v62, %v1785_v7  ;;  %v1971_v62 = vld [vmem:[%s5891_s15 + $0x40] sm:$0xff] }
 0x9be   : > { %v1780_v9 = vpop.xlane.xlu0 %1779 }
 0x9bf   : > { %v1786_v10 = vmul.f32 0.03125, %v1780_v9  ;;  %v1791_v11 = vmul.f32 %v1788_v8, %v1788_v8 }
 0x9c1   : > { %v1789_v12 = vsub.f32 %v1764_v63, %v1786_v10  ;;  %v1794_v13 = vsel %vm747_vm2, %v1791_v11, 0.0  ;;  %v1968_v63 = vld [vmem:[%s5891_s15 + $0x28] sm:$0xff] }
 0x9c2   : > { %1795 = vadd.xlane.f32.xlu1 %v1794_v13  ;;  %v1783_v14 = vpop.xlane.xlu0 %1782 }
 0x9c3   : > { %v1792_v15 = vmul.f32 %v1789_v12, %v1789_v12  ;;  %v1787_v16 = vmul.f32 0.03125, %v1783_v14 }
 0x9c5   : > { %v1797_v17 = vsel %vm747_vm2, %v1792_v15, 0.0  ;;  %v1790_v20 = vsub.f32 %v1769_v3, %v1787_v16  ;;  %v1965_v3 = vld [vmem:[%s5891_s15 + $0x10] sm:$0xff] }
 0x9c6   : > { %1798 = vadd.xlane.f32.xlu0 %v1797_v17 }
 0x9c7   : > { %v1793_v24 = vmul.f32 %v1790_v20, %v1790_v20 }
 0x9c9   : > { %v1800_v26 = vsel %vm747_vm2, %v1793_v24, 0.0 }
 0x9ca   : > { %1801 = vadd.xlane.f32.xlu1 %v1800_v26 }
 0xa4b   : > { %v1796_v32 = vpop.xlane.xlu1 %1795 }
 0xa4c   : > { %v1803_v33 = vmul.f32 0.03125, %v1796_v32 }
 0xa4e   : > { %v1806_v34 = vadd.f32 1e-05, %v1803_v33 }
 0xa4f   : > { %v1799_v36 = vpop.xlane.xlu0 %1798 }
 0xa50   : > { %4500 = vrsqrt.f32 %v1806_v34  ;;  %v1804_v25 = vmul.f32 0.03125, %v1799_v36 }
 0xa52   : > { %v1807_v37 = vadd.f32 1e-05, %v1804_v25 }
 0xa53   : > { %v1802_v23 = vpop.xlane.xlu1 %1801 }
 0xa54   : > { %4502 = vrsqrt.f32 %v1807_v37  ;;  %v1805_v27 = vmul.f32 0.03125, %v1802_v23 }
 0xa56   : > { %v1808_v38 = vadd.f32 1e-05, %v1805_v27 }
 0xa58   : > { %4504 = vrsqrt.f32 %v1808_v38 }
 0xa5d   : > { %v4501_v39 = vpop.eup %4500 }
 0xa5e   : > { %v1812_v42 = vmul.f32 %v4501_v39, %v1788_v8 }
 0xa60   : > { %v1821_v44 = vmul.f32 %v3727_v40, %v1812_v42 }
 0xa61   : > { %v4503_v45 = vpop.eup %4502 }
 0xa62   : > { %v1830_v46 = vadd.f32 %v3728_v43, %v1821_v44  ;;  %v1813_v47 = vmul.f32 %v4503_v45, %v1789_v12 }
 0xa64   : > { %v5234_v48 = vadd.f32 %v1830_v46, %v4905_v19  ;;  %v1822_v49 = vmul.f32 %v3727_v40, %v1813_v47 }
 0xa65   : > { %v4505_v50 = vpop.eup %4504 }
 0xa66   : > { %4138 = vmatmul.mubr.msk.f32.vlgmr.msra.gmra.mxu0 %vm747_vm2, %v5234_v48  ;;  %v1831_v51 = vadd.f32 %v3728_v43, %v1822_v49  ;;  %v1814_v53 = vmul.f32 %v4505_v50, %v1790_v20  ;;  %v3733_v50 = vld [vmem:[%s5892_s16] ss:$0 sm:$0xff] }
 0xa67   : > { %4140 = vmatprep.mubr.msk.f32.mxu0 %vm4686_vm1, %v4685_v2 }
 0xa68   : > { %v5241_v54 = vadd.f32 %v1831_v51, %v4914_v21  ;;  %v1823_v55 = vmul.f32 %v3727_v40, %v1814_v53  ;;  %v1978_v21 = vld [vmem:[%s5891_s15 + $0x78] sm:$0xff] }
 0xa69   : > { %4147 = vmatpush3.msra.mxu1 %v1978_v21 }
 0xa6a   : > { %4141 = vmatmul.mubr.msk.f32.gmra.mxu0 %vm747_vm2, %v5241_v54  ;;  %v1832_v19 = vadd.f32 %v3728_v43, %v1823_v55  ;;  %4148 = vmatprep.subr.mxu1 %v4685_v2 }
 0xa6b   : > { %4143 = vmatprep.mubr.msk.f32.mxu0 %vm4686_vm1, %v4685_v2  ;;  %4149 = vmatpush3.msra.mxu1 %v1977_v58 }
 0xa6c   : > { %v5250_v57 = vadd.f32 %v4592_v56, %v1832_v19  ;;  %4150 = vmatprep.subr.mxu1 %v4685_v2 }
 0xa6d   : > { %4151 = vmatpush3.msra.mxu1 %v1976_v59 }
 0xa6e   : > { %4144 = vmatmul.mubr.msk.f32.gmra.mxu0 %vm747_vm2, %v5250_v57  ;;  %4152 = vmatprep.subr.mxu1 %v4685_v2 }
 0xa6f   : > { %4195 = vmatprep.mubr.msk.f32.mxu0 %vm4686_vm1, %v4685_v2  ;;  %4153 = vmatpush3.msra.mxu1 %v1975_v60 }
 0xa70   : > { %4154 = vmatprep.subr.mxu1 %v4685_v2 }
 0xa71   : > { %4155 = vmatpush3.msra.mxu1 %v1974_v18 }
 0xa72   : > { %4156 = vmatprep.subr.mxu1 %v4685_v2 }
 0xa73   : > { %4157 = vmatpush3.msra.mxu1 %v1973_v22 }
 0xa74   : > { %4158 = vmatprep.subr.mxu1 %v4685_v2 }
 0xa75   : > { %4159 = vmatpush3.msra.mxu1 %v1972_v61 }
 0xa76   : > { %4160 = vmatprep.subr.mxu1 %v4685_v2 }
 0xa77   : > { %4161 = vmatpush3.msra.mxu1 %v1971_v62 }
 0xa78   : > { %4162 = vmatprep.subr.mxu1 %v4685_v2 }
 0xa79   : > { %4163 = vmatpush3.msra.mxu1 %v1970_v52 }
 0xa7a   : > { %4164 = vmatprep.subr.mxu1 %v4685_v2 }
 0xa7b   : > { %4165 = vmatpush3.msra.mxu1 %v1969_v35 }
 0xa7c   : > { %4166 = vmatprep.subr.mxu1 %v4685_v2 }
 0xa7d   : > { %4167 = vmatpush3.msra.mxu1 %v1968_v63 }
 0xa7e   : > { %4168 = vmatprep.subr.mxu1 %v4685_v2 }
 0xa7f   : > { %4169 = vmatpush3.msra.mxu1 %v1967_v0 }
 0xa80   : > { %4170 = vmatprep.subr.mxu1 %v4685_v2 }
 0xa81   : > { %4171 = vmatpush3.msra.mxu1 %v1966_v1 }
 0xa82   : > { %4172 = vmatprep.subr.mxu1 %v4685_v2 }
 0xa83   : > { %4173 = vmatpush3.msra.mxu1 %v1965_v3 }
 0xa84   : > { %4174 = vmatprep.subr.mxu1 %v4685_v2 }
 0xa85   : > { %4175 = vmatpush3.msra.mxu1 %v1964_v4 }
 0xa86   : > { %4176 = vmatprep.subr.mxu1 %v4685_v2 }
 0xa87   : > { %4177 = vmatpush3.msra.mxu1 %v1963_v5 }
 0xa88   : > { %4234 = vmatprep.subr.mxu1 %v4685_v2 }
 0xb26   : > { %v1922_v7 = vpop.f32.mrf.mxu0 }
 0xb27   : > { %v1923_v8 = vadd.f32 %v3729_v6, %v1922_v7 }
 0xb28   : > { %v4139_v9 = vpop.f32.mrf.mxu0 }
 0xb29   : > { %v1939_v10 = vmul.f32 0.044715, %v1923_v8  ;;  %v1936_v27 = vmul.f32 0.5, %v1923_v8 }
 0xb2a   : > { %v1927_v11 = vpop.f32.mrf.mxu0 }
 0xb2b   : > { %v1942_v12 = vmul.f32 %v1939_v10, %v1923_v8  ;;  %v1928_v13 = vadd.f32 %v3729_v6, %v1927_v11 }
 0xb2c   : > { %v4142_v14 = vpop.f32.mrf.mxu0 }
 0xb2d   : > { %v1945_v15 = vmul.f32 %v1942_v12, %v1923_v8  ;;  %v1940_v16 = vmul.f32 0.044715, %v1928_v13  ;;  %v1937_v42 = vmul.f32 0.5, %v1928_v13  ;;  %v3739_v12 = vld [vmem:[%s5944_s5 + $0x38] sm:$0xff]  ;;  %v3737_v14 = vld [vmem:[%s5944_s5 + $0x28] sm:$0xff] }
 0xb2e   : > { %v1932_v24 = vpop.f32.mrf.mxu0  ;;  %4188 = vmatpush3.msra.mxu0 %v3739_v12 }
 0xb2f   : > { %v1948_v17 = vadd.f32 %v1945_v15, %v1923_v8  ;;  %v1943_v20 = vmul.f32 %v1940_v16, %v1928_v13  ;;  %v1933_v26 = vadd.f32 %v3729_v6, %v1932_v24  ;;  %4189 = vmatprep.subr.mxu0 %v4685_v2  ;;  %v3736_v15 = vld [vmem:[%s5944_s5 + $0x20] sm:$0xff] }
 0xb30   : > { %v4145_v29 = vpop.f32.mrf.mxu0 }
 0xb31   : > { %v1951_v28 = vmul.f32 0.7978846, %v1948_v17  ;;  %v1946_v30 = vmul.f32 %v1943_v20, %v1928_v13  ;;  %v1941_v31 = vmul.f32 0.044715, %v1933_v26  ;;  %v1938_v46 = vmul.f32 0.5, %v1933_v26 }
 0xb33   : > { %4506 = vtanh.f32 %v1951_v28  ;;  %v1949_v32 = vadd.f32 %v1946_v30, %v1928_v13  ;;  %v1944_v33 = vmul.f32 %v1941_v31, %v1933_v26  ;;  %v3738_v13 = vld [vmem:[%s5944_s5 + $0x30] sm:$0xff] }
 0xb34   : > { %4190 = vmatpush3.msra.mxu0 %v3738_v13 }
 0xb35   : > { %v1952_v34 = vmul.f32 0.7978846, %v1949_v32  ;;  %v1947_v36 = vmul.f32 %v1944_v33, %v1933_v26  ;;  %4191 = vmatprep.subr.mxu0 %v4685_v2  ;;  %v3734_v33 = vld [vmem:[%s5887_s11] ss:$0 sm:$0xff] }
 0xb36   : > { %4192 = vmatpush3.msra.mxu0 %v3737_v14 }
 0xb37   : > { %4508 = vtanh.f32 %v1952_v34  ;;  %v1950_v25 = vadd.f32 %v1947_v36, %v1933_v26  ;;  %4193 = vmatprep.subr.mxu0 %v4685_v2  ;;  %v3735_v36 = vld [vmem:[%s5888_s12] ss:$0 sm:$0xff] }
 0xb38   : > { %4194 = vmatpush3.msra.mxu0 %v3736_v15 }
 0xb39   : > { %v1953_v37 = vmul.f32 0.7978846, %v1950_v25  ;;  %4204 = vmatprep.subr.mxu0 %v4685_v2 }
 0xb3b   : > { %4510 = vtanh.f32 %v1953_v37 }
 0xb40   : > { %v4507_v23 = vpop.eup %4506 }
 0xb41   : > { %v1957_v38 = vadd.f32 1.0, %v4507_v23 }
 0xb43   : > { %v1960_v39 = vmul.f32 %v1957_v38, %v1936_v27 }
 0xb44   : > { %v4509_v40 = vpop.eup %4508 }
 0xb45   : > { %4179 = vmatmul.mubr.f32.vlgmr.msra.gmra.mxu1 %v1960_v39  ;;  %v1958_v43 = vadd.f32 1.0, %v4509_v40 }
 0xb46   : > { %4181 = vmatprep.mubr.msk.f32.mxu1 %vm4686_vm1, %v4685_v2 }
 0xb47   : > { %v1961_v44 = vmul.f32 %v1958_v43, %v1937_v42 }
 0xb48   : > { %v4511_v45 = vpop.eup %4510 }
 0xb49   : > { %4182 = vmatmul.mubr.f32.gmra.mxu1 %v1961_v44  ;;  %v1959_v47 = vadd.f32 1.0, %v4511_v45 }
 0xb4a   : > { %4184 = vmatprep.mubr.msk.f32.mxu1 %vm4686_vm1, %v4685_v2 }
 0xb4b   : > { %v1962_v49 = vmul.f32 %v1959_v47, %v1938_v46 }
 0xb4d   : > { %4185 = vmatmul.mubr.f32.gmra.mxu1 %v1962_v49 }
 0xb4e   : > { %4240 = vmatprep.mubr.msk.f32.mxu1 %vm4686_vm1, %v4685_v2 }
 0xc05   : > { %v2052_v51 = vpop.f32.mrf.mxu1 }
 0xc06   : > { %v2053_v53 = vadd.f32 %v3733_v50, %v2052_v51 }
 0xc07   : > { %v4180_v55 = vpop.f32.mrf.mxu1 }
 0xc08   : > { %v2068_v19 = vsel %vm747_vm2, %v2053_v53, 0.0 }
 0xc09   : > { %2069 = vadd.xlane.f32.xlu0 %v2068_v19  ;;  %v2057_v56 = vpop.f32.mrf.mxu1 }
 0xc0a   : > { %v2058_v21 = vadd.f32 %v3733_v50, %v2057_v56 }
 0xc0b   : > { %v4183_v58 = vpop.f32.mrf.mxu1 }
 0xc0c   : > { %v2071_v59 = vsel %vm747_vm2, %v2058_v21, 0.0 }
 0xc0d   : > { %2072 = vadd.xlane.f32.xlu1 %v2071_v59  ;;  %v2062_v60 = vpop.f32.mrf.mxu1 }
 0xc0e   : > { %v2063_v18 = vadd.f32 %v3733_v50, %v2062_v60 }
 0xc0f   : > { %v4186_v22 = vpop.f32.mrf.mxu1 }
 0xc10   : > { %v2074_v61 = vsel %vm747_vm2, %v2063_v18, 0.0 }
 0xc11   : > { %2075 = vadd.xlane.f32.xlu0 %v2074_v61 }
 0xc92   : > { %v2070_v62 = vpop.xlane.xlu0 %2069 }
 0xc93   : > { %v2077_v52 = vmul.f32 0.03125, %v2070_v62 }
 0xc95   : > { %v2080_v35 = vsub.f32 %v2053_v53, %v2077_v52 }
 0xc96   : > { %v2073_v63 = vpop.xlane.xlu1 %2072 }
 0xc97   : > { %v2078_v0 = vmul.f32 0.03125, %v2073_v63  ;;  %v2083_v1 = vmul.f32 %v2080_v35, %v2080_v35 }
 0xc99   : > { %v2081_v3 = vsub.f32 %v2058_v21, %v2078_v0  ;;  %v2086_v4 = vsel %vm747_vm2, %v2083_v1, 0.0 }
 0xc9a   : > { %2087 = vadd.xlane.f32.xlu1 %v2086_v4  ;;  %v2076_v5 = vpop.xlane.xlu0 %2075 }
 0xc9b   : > { %v2084_v6 = vmul.f32 %v2081_v3, %v2081_v3  ;;  %v2079_v7 = vmul.f32 0.03125, %v2076_v5 }
 0xc9d   : > { %v2089_v8 = vsel %vm747_vm2, %v2084_v6, 0.0  ;;  %v2082_v9 = vsub.f32 %v2063_v18, %v2079_v7 }
 0xc9e   : > { %2090 = vadd.xlane.f32.xlu0 %v2089_v8 }
 0xc9f   : > { %v2085_v10 = vmul.f32 %v2082_v9, %v2082_v9 }
 0xca1   : > { %v2092_v11 = vsel %vm747_vm2, %v2085_v10, 0.0 }
 0xca2   : > { %2093 = vadd.xlane.f32.xlu1 %v2092_v11 }
 0xd23   : > { %v2088_v16 = vpop.xlane.xlu1 %2087 }
 0xd24   : > { %v2095_v17 = vmul.f32 0.03125, %v2088_v16 }
 0xd26   : > { %v2098_v20 = vadd.f32 1e-05, %v2095_v17 }
 0xd27   : > { %v2091_v24 = vpop.xlane.xlu0 %2090 }
 0xd28   : > { %4512 = vrsqrt.f32 %v2098_v20  ;;  %v2096_v26 = vmul.f32 0.03125, %v2091_v24  ;;  %v3744_v24 = vld [vmem:[%s5884_s8 + $0x1] ss:$0 sm:$0xff] }
 0xd2a   : > { %v2099_v28 = vadd.f32 1e-05, %v2096_v26 }
 0xd2b   : > { %v2094_v29 = vpop.xlane.xlu1 %2093 }
 0xd2c   : > { %4514 = vrsqrt.f32 %v2099_v28  ;;  %v2097_v30 = vmul.f32 0.03125, %v2094_v29 }
 0xd2e   : > { %v2100_v31 = vadd.f32 1e-05, %v2097_v30 }
 0xd30   : > { %4516 = vrsqrt.f32 %v2100_v31 }
 0xd35   : > { %v4513_v32 = vpop.eup %4512 }
 0xd36   : > { %v2104_v34 = vmul.f32 %v4513_v32, %v2080_v35 }
 0xd38   : > { %v2113_v25 = vmul.f32 %v3734_v33, %v2104_v34 }
 0xd39   : > { %v4515_v37 = vpop.eup %4514 }
 0xd3a   : > { %v2122_v23 = vadd.f32 %v3735_v36, %v2113_v25  ;;  %v2105_v27 = vmul.f32 %v4515_v37, %v2081_v3 }
 0xd3c   : > { %v5361_v38 = vadd.f32 %v2122_v23, %v5234_v48  ;;  %v2114_v39 = vmul.f32 %v3734_v33, %v2105_v27 }
 0xd3d   : > { %v4517_v40 = vpop.eup %4516 }
 0xd3e   : > { %4196 = vmatmul.mubr.msk.f32.vlgmr.msra.gmra.mxu0 %vm747_vm2, %v5361_v38  ;;  %v2123_v42 = vadd.f32 %v3735_v36, %v2114_v39  ;;  %v2106_v43 = vmul.f32 %v4517_v40, %v2082_v9 }
 0xd3f   : > { %4198 = vmatprep.mubr.msk.f32.mxu0 %vm4686_vm1, %v4685_v2 }
 0xd40   : > { %v5368_v44 = vadd.f32 %v2123_v42, %v5241_v54  ;;  %v2115_v45 = vmul.f32 %v3734_v33, %v2106_v43 }
 0xd42   : > { %4199 = vmatmul.mubr.msk.f32.gmra.mxu0 %vm747_vm2, %v5368_v44  ;;  %v2124_v48 = vadd.f32 %v3735_v36, %v2115_v45 }
 0xd43   : > { %4201 = vmatprep.mubr.msk.f32.mxu0 %vm4686_vm1, %v4685_v2 }
 0xd44   : > { %v5375_v46 = vadd.f32 %v2124_v48, %v5250_v57 }
 0xd46   : > { %4202 = vmatmul.mubr.msk.f32.gmra.mxu0 %vm747_vm2, %v5375_v46 }
 0xd47   : > { %4210 = vmatprep.mubr.msk.f32.mxu0 %vm4686_vm1, %v4685_v2 }
 0xdfe   : > { %v5381_v47 = vpop.f32.mrf.mxu0 }
 0xe00   : > { %v4197_v54 = vpop.f32.mrf.mxu0 }
 0xe02   : > { %v5383_v49 = vpop.f32.mrf.mxu0 }
 0xe03   : > { %2240 = vrot.lane.b32.xlu1 %v5383_v49, %s4688_s25 }
 0xe04   : > { %v4200_v50 = vpop.f32.mrf.mxu0 }
 0xe06   : > { %v5387_v51 = vpop.f32.mrf.mxu0 }
 0xe07   : > { %2238 = vrot.lane.b32.xlu1 %v5381_v47, %s4688_s25  ;;  %2242 = vrot.lane.b32.xlu0 %v5387_v51, %s4688_s25  ;;  %s5924_s25 = sshll.u32 %s4827_s2, 4 }
 0xe08   : > { %v4203_v57 = vpop.f32.mrf.mxu0 }
 0xe0b   : > { %2344 = vrot.lane.b32.xlu1 %v5383_v49, %s4687_s0  ;;  %2346 = vrot.lane.b32.xlu0 %v5387_v51, %s4687_s0 }
 0xe0f   : > { %2336 = vrot.lane.b32.xlu1 %v5381_v47, %s5950_s19  ;;  %2342 = vrot.lane.b32.xlu0 %v5381_v47, %s4687_s0 }
 0xe13   : > { %2340 = vrot.lane.b32.xlu1 %v5387_v51, %s5950_s19  ;;  %2338 = vrot.lane.b32.xlu0 %v5383_v49, %s5950_s19  ;;  %s5799_s19 = sand.u32 1, %s4675_s22  }
 0xe14   : > { %s631_s0 = scalar_lea.vmem [#allocation4], %s5799_s19 }
 0xe75   : > { %v2241_v55 = vpop.permute.xlu1 %2240 }
 0xe79   : > { %v2243_v53 = vpop.permute.xlu0 %2242  ;;  %v2239_v19 = vpop.permute.xlu1 %2238 }
 0xe7a   : > { %4205 = vmatpush3.xpose.msk.msra.mxu0 %vm857_vm3, %v2243_v53 }
 0xe7b   : > { %4206 = vmatprep.subr.mxu0 %v4685_v2 }
 0xe7d   : > { %v2347_v56 = vpop.permute.xlu0 %2346  ;;  %v2345_v21 = vpop.permute.xlu1 %2344 }
 0xe7e   : > { %4207 = vmatpush3.xpose.msk.msra.mxu0 %vm857_vm3, %v2241_v55 }
 0xe7f   : > { %4208 = vmatprep.subr.mxu0 %v4685_v2 }
 0xe81   : > { %v2343_v58 = vpop.permute.xlu0 %2342  ;;  %v2337_v59 = vpop.permute.xlu1 %2336 }
 0xe82   : > { %4209 = vmatpush3.xpose.msk.msra.mxu0 %vm857_vm3, %v2239_v19 }
 0xe83   : > { %4219 = vmatprep.subr.mxu0 %v4685_v2 }
 0xe85   : > { %4211 = vmatmul.mubr.msk.f32.vlgmr.msra.gmra.mxu0 %vm857_vm3, %v5381_v47  ;;  %v2339_v60 = vpop.permute.xlu0 %2338  ;;  %v2341_v18 = vpop.permute.xlu1 %2340 }
 0xe86   : > { %4220 = vmatpush3.xpose.msk.msra.mxu0 %vm857_vm3, %v2347_v56  ;;  %4213 = vmatprep.mubr.msk.f32.mxu0 %vm4686_vm1, %v4685_v2 }
 0xe87   : > { %4221 = vmatprep.subr.mxu0 %v4685_v2 }
 0xe89   : > { %4214 = vmatmul.mubr.msk.f32.gmra.mxu0 %vm857_vm3, %v5383_v49 }
 0xe8a   : > { %4222 = vmatpush3.xpose.msk.msra.mxu0 %vm857_vm3, %v2345_v21  ;;  %4216 = vmatprep.mubr.msk.f32.mxu0 %vm4686_vm1, %v4685_v2 }
 0xe8b   : > { %4223 = vmatprep.subr.mxu0 %v4685_v2 }
 0xe8d   : > { %4217 = vmatmul.mubr.msk.f32.gmra.mxu0 %vm857_vm3, %v5387_v51 }
 0xe8e   : > { %4224 = vmatpush3.xpose.msk.msra.mxu0 %vm857_vm3, %v2343_v58  ;;  %4225 = vmatprep.mubr.msk.f32.mxu0 %vm4686_vm1, %v4685_v2 }
 0xe8f   : > { %4249 = vmatprep.subr.mxu0 %v4685_v2 }
 0xe91   : > { %4226 = vmatmul.mubr.msk.f32.vlgmr.msra.gmra.mxu0 %vm857_vm3, %v2337_v59 }
 0xe92   : > { %4228 = vmatprep.mubr.msk.f32.mxu0 %vm4686_vm1, %v4685_v2 }
 0xe95   : > { %4229 = vmatmul.mubr.msk.f32.gmra.mxu0 %vm857_vm3, %v2339_v60 }
 0xe96   : > { %4231 = vmatprep.mubr.msk.f32.mxu0 %vm4686_vm1, %v4685_v2 }
 0xe99   : > { %4232 = vmatmul.mubr.msk.f32.gmra.mxu0 %vm857_vm3, %v2341_v18 }
 0xe9a   : > { %4255 = vmatprep.mubr.msk.f32.mxu0 %vm4686_vm1, %v4685_v2 }
 0xf45   : > { %v2322_v22 = vpop.f32.mrf.mxu0 }
 0xf46   : > { %v2323_v61 = vadd.f32 %v2322_v22, %v4983_v41 }
 0xf47   : > { %v4212_v62 = vpop.f32.mrf.mxu0 }
 0xf48   : > { %v2440_v52 = vsel %vm1054_vm5, %v2323_v61, -inf }
 0xf49   : > { %2441 = vmax.xlane.f32.xlu1 %v2440_v52  ;;  %v2327_v35 = vpop.f32.mrf.mxu0 }
 0xf4a   : > { %v2328_v10 = vadd.f32 %v2327_v35, %v4983_v41 }
 0xf4b   : > { %v4215_v63 = vpop.f32.mrf.mxu0 }
 0xf4c   : > { %v2443_v16 = vsel %vm1054_vm5, %v2328_v10, -inf }
 0xf4d   : > { %v2332_v0 = vpop.f32.mrf.mxu0 }
 0xf4e   : > { %v2333_v15 = vadd.f32 %v2332_v0, %v4983_v41 }
 0xf4f   : > { %v4218_v1 = vpop.f32.mrf.mxu0 }
 0xf50   : > { %v2446_v20 = vsel %vm1054_vm5, %v2333_v15, -inf }
 0xf51   : > { %v2426_v3 = vpop.f32.mrf.mxu0 }
 0xf52   : > { %v2427_v4 = vadd.f32 %v2426_v3, %v4983_v41 }
 0xf53   : > { %v4227_v5 = vpop.f32.mrf.mxu0 }
 0xf54   : > { %v2473_v6 = vsel %vm1054_vm5, %v2427_v4, -inf }
 0xf55   : > { %2474 = vmax.xlane.f32.xlu0 %v2473_v6  ;;  %v2431_v7 = vpop.f32.mrf.mxu0 }
 0xf56   : > { %v2432_v8 = vadd.f32 %v2431_v7, %v4983_v41 }
 0xf57   : > { %v4230_v9 = vpop.f32.mrf.mxu0 }
 0xf58   : > { %v2476_v11 = vsel %vm1054_vm5, %v2432_v8, -inf }
 0xf59   : > { %2477 = vmax.xlane.f32.xlu0 %v2476_v11  ;;  %v2436_v12 = vpop.f32.mrf.mxu0 }
 0xf5a   : > { %v2437_v13 = vadd.f32 %v2436_v12, %v4983_v41 }
 0xf5b   : > { %v4233_v14 = vpop.f32.mrf.mxu0 }
 0xf5c   : > { %v2479_v17 = vsel %vm1054_vm5, %v2437_v13, -inf }
 0xf5d   : > { %2444 = vmax.xlane.f32.xlu0 %v2443_v16  ;;  %2480 = vmax.xlane.f32.xlu1 %v2479_v17 }
 0xf61   : > { %2447 = vmax.xlane.f32.xlu0 %v2446_v20 }
 0xf6e   : > { %2230 = vperm.xlu1 %4439, %v3744_v24  }
 0xf72   : > { %2514 = vrot.lane.b32.xlu1 %v5383_v49, %s5951_s24 }
 0xf76   : > { %2512 = vrot.lane.b32.xlu1 %v5381_v47, %s5951_s24 }
 0xf77   : > { %2516 = vrot.lane.b32.xlu0 %v5387_v51, %s5951_s24 }
 0xf7a   : > { %2653 = vrot.lane.b32.xlu1 %v5387_v51, %s5952_s26 }
 0xf7b   : > { %2757 = vrot.lane.b32.xlu0 %v5387_v51, %s5953_s28 }
 0xf7e   : > { %2651 = vrot.lane.b32.xlu1 %v5383_v49, %s5952_s26 }
 0xf7f   : > { %2755 = vrot.lane.b32.xlu0 %v5383_v49, %s5953_s28 }
 0xfd2   : > { %v2442_v26 = vpop.xlane.xlu1 %2441 }
 0xfd3   : > { %v2449_v28 = vsub.f32 %v2323_v61, %v2442_v26 }
 0xfd5   : > { %v2452_v29 = vmul.f32 1.442695, %v2449_v28 }
 0xfd7   : > { %4518 = vpow2.f32 %v2452_v29 }
 0xfde   : > { %v2475_v30 = vpop.xlane.xlu0 %2474 }
 0xfdf   : > { %v2482_v31 = vsub.f32 %v2427_v4, %v2475_v30 }
 0xfe1   : > { %v2485_v32 = vmul.f32 1.442695, %v2482_v31 }
 0xfe2   : > { %v2478_v33 = vpop.xlane.xlu0 %2477 }
 0xfe3   : > { %4520 = vpow2.f32 %v2485_v32  ;;  %v2483_v34 = vsub.f32 %v2432_v8, %v2478_v33 }
 0xfe4   : > { %v5467_v36 = vpop.eup %4518 }
 0xfe5   : > { %v2487_v25 = vmul.f32 1.442695, %v2483_v34  ;;  %v2458_v37 = vsel %vm1054_vm5, %v5467_v36, 0.0 }
 0xfe6   : > { %2459 = vadd.xlane.f32.xlu0 %v2458_v37  ;;  %v2445_v23 = vpop.xlane.xlu0 %2444  ;;  %v2481_v27 = vpop.xlane.xlu1 %2480 }
 0xfe7   : > { %4522 = vpow2.f32 %v2487_v25  ;;  %v2450_v39 = vsub.f32 %v2328_v10, %v2445_v23  ;;  %v2484_v40 = vsub.f32 %v2437_v13, %v2481_v27 }
 0xfe9   : > { %v2454_v42 = vmul.f32 1.442695, %v2450_v39  ;;  %v2489_v43 = vmul.f32 1.442695, %v2484_v40 }
 0xfea   : > { %v2448_v45 = vpop.xlane.xlu0 %2447  ;;  %v5471_v48 = vpop.permute.xlu1 %2230 }
 0xfeb   : > { %4524 = vpow2.f32 %v2454_v42  ;;  %v2451_v54 = vsub.f32 %v2333_v15, %v2448_v45 }
 0xfec   : > { %4526 = vpow2.f32 %v2489_v43 }
 0xfed   : > { %v2456_v50 = vmul.f32 1.442695, %v2451_v54 }
 0xfee   : > { %v2517_v57 = vpop.permute.xlu0 %2516  ;;  %v2515_v53 = vpop.permute.xlu1 %2514 }
 0xfef   : > { %4528 = vpow2.f32 %v2456_v50  ;;  %4235 = vmatpush3.msra.mxu1 %v2517_v57 }
 0xff0   : > { %v4521_v55 = vpop.eup %4520  ;;  %4236 = vmatprep.subr.mxu1 %v4685_v2 }
 0xff1   : > { %4237 = vmatpush3.msra.mxu1 %v2515_v53  ;;  %v2491_v19 = vsel %vm1054_vm5, %v4521_v55, 0.0 }
 0xff2   : > { %2492 = vadd.xlane.f32.xlu1 %v2491_v19  ;;  %4238 = vmatprep.subr.mxu1 %v4685_v2  ;;  %v2513_v56 = vpop.permute.xlu1 %2512  ;;  %v2758_v63 = vpop.permute.xlu0 %2757 }
 0xff3   : > { %4239 = vmatpush3.msra.mxu1 %v2513_v56 }
 0xff4   : > { %v4523_v21 = vpop.eup %4522  ;;  %4264 = vmatprep.subr.mxu1 %v4685_v2 }
 0xff5   : > { %v2494_v58 = vsel %vm1054_vm5, %v4523_v21, 0.0 }
 0xff6   : > { %2495 = vadd.xlane.f32.xlu1 %v2494_v58  ;;  %v2654_v59 = vpop.permute.xlu1 %2653  ;;  %v2756_v0 = vpop.permute.xlu0 %2755 }
 0xff7   : > { %4250 = vmatpush3.xpose.msk.msra.mxu0 %vm857_vm3, %v2654_v59 }
 0xff8   : > { %v4525_v60 = vpop.eup %4524  ;;  %4251 = vmatprep.subr.mxu0 %v4685_v2 }
 0xff9   : > { %v4527_v18 = vpop.eup %4526  ;;  %v2461_v22 = vsel %vm1054_vm5, %v4525_v60, 0.0 }
 0xffa   : > { %2462 = vadd.xlane.f32.xlu0 %v2461_v22  ;;  %v2497_v61 = vsel %vm1054_vm5, %v4527_v18, 0.0  ;;  %v2652_v62 = vpop.permute.xlu1 %2651 }
 0xffb   : > { %2498 = vadd.xlane.f32.xlu1 %v2497_v61  ;;  %4252 = vmatpush3.xpose.msk.msra.mxu0 %vm857_vm3, %v2652_v62 }
 0xffc   : > { %v4529_v52 = vpop.eup %4528  ;;  %4253 = vmatprep.subr.mxu0 %v4685_v2 }
 0xffd   : > { %v2464_v35 = vsel %vm1054_vm5, %v4529_v52, 0.0 }
 0xffe   : > { %2465 = vadd.xlane.f32.xlu0 %v2464_v35 }
0x100c   : > { %2649 = vrot.lane.b32.xlu1 %v5381_v47, %s5952_s26 }
0x1010   : > { %2643 = vrot.lane.b32.xlu1 %v5381_v47, %s5954_s27 }
0x1014   : > { %2753 = vrot.lane.b32.xlu0 %v5381_v47, %s5953_s28  ;;  %s3595_s28 = scalar_lea.hbm %s5896_s20, %s5924_s25 }
0x1018   : > { %2747 = vrot.lane.b32.xlu0 %v5381_v47, %s5955_s23 }
0x106f   : > { %v2460_v1 = vpop.xlane.xlu0 %2459 }
0x1070   : > { %4530 = vrcp.f32 %v2460_v1 }
0x107b   : > { %v2493_v3 = vpop.xlane.xlu1 %2492 }
0x107c   : > { %4532 = vrcp.f32 %v2493_v3 }
0x107d   : > { %v4531_v8 = vpop.eup %4530 }
0x107e   : > { %v2470_v12 = vmul.f32 %v4531_v8, %v5467_v36 }
0x107f   : > { %v2496_v4 = vpop.xlane.xlu1 %2495 }
0x1080   : > { %4534 = vrcp.f32 %v2496_v4 }
0x1083   : > { %v2463_v5 = vpop.xlane.xlu0 %2462 }
0x1084   : > { %4536 = vrcp.f32 %v2463_v5  ;;  %v2499_v6 = vpop.xlane.xlu1 %2498 }
0x1085   : > { %4538 = vrcp.f32 %v2499_v6 }
0x1087   : > { %v2466_v7 = vpop.xlane.xlu0 %2465 }
0x1088   : > { %4540 = vrcp.f32 %v2466_v7  ;;  %v2650_v9 = vpop.permute.xlu1 %2649 }
0x1089   : > { %v4533_v10 = vpop.eup %4532  ;;  %4254 = vmatpush3.xpose.msk.msra.mxu0 %vm857_vm3, %v2650_v9 }
0x108a   : > { %v2503_v11 = vmul.f32 %v4533_v10, %v4521_v55  ;;  %4279 = vmatprep.subr.mxu0 %v4685_v2 }
0x108b   : > { %v2754_v34 = vpop.permute.xlu0 %2753 }
0x108c   : > { %v2506_v13 = vmul.f32 %v2503_v11, %v5471_v48  ;;  %v2644_v14 = vpop.permute.xlu1 %2643 }
0x108d   : > { %v4535_v15 = vpop.eup %4534  ;;  %4256 = vmatmul.mubr.msk.f32.vlgmr.msra.gmra.mxu0 %vm857_vm3, %v2644_v14 }
0x108e   : > { %v2509_v16 = vsub.f32 %v2470_v12, %v2506_v13  ;;  %v2504_v17 = vmul.f32 %v4535_v15, %v4523_v21  ;;  %4258 = vmatprep.mubr.msk.f32.mxu0 %vm4686_vm1, %v4685_v2 }
0x108f   : > { %v2748_v25 = vpop.permute.xlu0 %2747 }
0x1090   : > { %4241 = vmatmul.mubr.msk.f32.vlgmr.msra.gmra.mxu1 %vm1054_vm5, %v2509_v16  ;;  %v2507_v28 = vmul.f32 %v2504_v17, %v5471_v48 }
0x1091   : > { %v4537_v20 = vpop.eup %4536  ;;  %4265 = vmatpush3.xpose.msk.msra.mxu1 %vm857_vm3, %v2758_v63  ;;  %4243 = vmatprep.mubr.msk.f32.mxu1 %vm4686_vm1, %v4685_v2 }
0x1092   : > { %v4539_v24 = vpop.eup %4538  ;;  %4266 = vmatprep.subr.mxu1 %v4685_v2  ;;  %v2471_v26 = vmul.f32 %v4537_v20, %v4525_v60 }
0x1093   : > { %v2505_v29 = vmul.f32 %v4539_v24, %v4527_v18 }
0x1094   : > { %v2510_v30 = vsub.f32 %v2471_v26, %v2507_v28 }
0x1095   : > { %v4541_v31 = vpop.eup %4540  ;;  %4267 = vmatpush3.xpose.msk.msra.mxu1 %vm857_vm3, %v2756_v0  ;;  %v2508_v33 = vmul.f32 %v2505_v29, %v5471_v48 }
0x1096   : > { %4244 = vmatmul.mubr.msk.f32.gmra.mxu1 %vm1054_vm5, %v2510_v30  ;;  %4268 = vmatprep.subr.mxu1 %v4685_v2  ;;  %v2472_v32 = vmul.f32 %v4541_v31, %v4529_v52 }
0x1097   : > { %4246 = vmatprep.mubr.msk.f32.mxu1 %vm4686_vm1, %v4685_v2 }
0x1098   : > { %v2511_v36 = vsub.f32 %v2472_v32, %v2508_v33 }
0x1099   : > { %4269 = vmatpush3.xpose.msk.msra.mxu1 %vm857_vm3, %v2754_v34 }
0x109a   : > { %4247 = vmatmul.mubr.msk.f32.gmra.mxu1 %vm1054_vm5, %v2511_v36  ;;  %4294 = vmatprep.subr.mxu1 %v4685_v2 }
0x109b   : > { %4270 = vmatprep.mubr.msk.f32.mxu1 %vm4686_vm1, %v4685_v2 }
0x109e   : > { %4271 = vmatmul.mubr.msk.f32.vlgmr.msra.gmra.mxu1 %vm857_vm3, %v2748_v25 }
0x109f   : > { %4273 = vmatprep.mubr.msk.f32.mxu1 %vm4686_vm1, %v4685_v2 }
0x114d   : > { %v2733_v37 = vpop.f32.mrf.mxu0 }
0x114e   : > { %v2734_v23 = vadd.f32 %v2733_v37, %v4983_v41 }
0x114f   : > { %v4257_v27 = vpop.f32.mrf.mxu0 }
0x1150   : > { %v5521_v39 = vpop.f32.mrf.mxu1  ;;  %v2851_v40 = vsel %vm1054_vm5, %v2734_v23, -inf }
0x1151   : > { %2852 = vmax.xlane.f32.xlu1 %v2851_v40  ;;  %v2610_v36 = vmul.f32 %v5521_v39, %v5521_v39 }
0x1152   : > { %v4242_v42 = vpop.f32.mrf.mxu1 }
0x1156   : > { %v5524_v43 = vpop.f32.mrf.mxu1 }
0x1158   : > { %v4245_v45 = vpop.f32.mrf.mxu1 }
0x115a   : > { %v5526_v54 = vpop.f32.mrf.mxu1 }
0x115c   : > { %v4248_v50 = vpop.f32.mrf.mxu1 }
0x115e   : > { %v2837_v57 = vpop.f32.mrf.mxu1 }
0x115f   : > { %v2838_v53 = vadd.f32 %v2837_v57, %v4983_v41 }
0x1160   : > { %v4272_v55 = vpop.f32.mrf.mxu1 }
0x1161   : > { %v2884_v19 = vsel %vm1054_vm5, %v2838_v53, -inf }
0x1162   : > { %2645 = vrot.lane.b32.xlu1 %v5383_v49, %s5954_s27  ;;  %2885 = vmax.xlane.f32.xlu0 %v2884_v19 }
0x1166   : > { %2927 = vrot.lane.b32.xlu1 %v5387_v51, %s5956_s1 }
0x116a   : > { %2647 = vrot.lane.b32.xlu1 %v5387_v51, %s5954_s27  ;;  %s3597_s27 = sshll.u32 %s631_s0, 4  ;;  %s3598_s27 = int_to_ptr.vmem [resolvable:$true] %s3597_s27 }
0x116e   : > { %2925 = vrot.lane.b32.xlu1 %v5383_v49, %s5956_s1 }
0x11da   : > { %v2853_v56 = vpop.xlane.xlu1 %2852 }
0x11db   : > { %v2860_v21 = vsub.f32 %v2734_v23, %v2853_v56  ;;  %v2613_v23 = vsel %vm1228_vm6, %v2610_v36, 0.0 }
0x11dd   : > { %v2863_v58 = vmul.f32 1.442695, %v2860_v21 }
0x11de   : > { %v2646_v59 = vpop.permute.xlu1 %2645 }
0x11df   : > { %4542 = vpow2.f32 %v2863_v58  ;;  %4259 = vmatmul.mubr.msk.f32.gmra.mxu0 %vm857_vm3, %v2646_v59 }
0x11e0   : > { %4261 = vmatprep.mubr.msk.f32.mxu0 %vm4686_vm1, %v4685_v2 }
0x11e2   : > { %v2928_v60 = vpop.permute.xlu1 %2927 }
0x11e3   : > { %4280 = vmatpush3.msra.mxu0 %v2928_v60 }
0x11e4   : > { %4281 = vmatprep.subr.mxu0 %v4685_v2 }
0x11e6   : > { %v2648_v18 = vpop.permute.xlu1 %2647 }
0x11e7   : > { %4262 = vmatmul.mubr.msk.f32.gmra.mxu0 %vm857_vm3, %v2648_v18 }
0x11e8   : > { %4285 = vmatprep.mubr.msk.f32.mxu0 %vm4686_vm1, %v4685_v2 }
0x11ea   : > { %v2926_v22 = vpop.permute.xlu1 %2925 }
0x11eb   : > { %4282 = vmatpush3.msra.mxu0 %v2926_v22  ;;  %v2886_v52 = vpop.xlane.xlu0 %2885 }
0x11ec   : > { %v4543_v61 = vpop.eup %4542  ;;  %4283 = vmatprep.subr.mxu0 %v4685_v2  ;;  %v2893_v35 = vsub.f32 %v2838_v53, %v2886_v52 }
0x11ed   : > { %v2869_v62 = vsel %vm1054_vm5, %v4543_v61, 0.0 }
0x11ee   : > { %2870 = vadd.xlane.f32.xlu0 %v2869_v62  ;;  %v2896_v63 = vmul.f32 1.442695, %v2893_v35 }
0x11f0   : > { %4544 = vpow2.f32 %v2896_v63  ;;  %v3780_v63 = vld [vmem:[%s5948_s6 + $0x38] sm:$0xff] }
0x11f1   : > { %4295 = vmatpush3.msra.mxu1 %v3780_v63 }
0x11f2   : > { %4296 = vmatprep.subr.mxu1 %v4685_v2 }
0x11fd   : > { %v4545_v0 = vpop.eup %4544 }
0x11fe   : > { %v2902_v1 = vsel %vm1054_vm5, %v4545_v0, 0.0 }
0x1204   : > { %2749 = vrot.lane.b32.xlu0 %v5383_v49, %s5955_s23 }
0x1208   : > { %2751 = vrot.lane.b32.xlu0 %v5387_v51, %s5955_s23  ;;  %s3572_s23 = scalar_lea.sflag [#allocation5], %s5799_s19 }
0x1227   : > { %2903 = vadd.xlane.f32.xlu0 %v2902_v1  ;;  %v3778_v1 = vld [vmem:[%s5948_s6 + $0x28] sm:$0xff] }
0x123d   : > { %2923 = vrot.lane.b32.xlu0 %v5381_v47, %s5956_s1  ;;  %s4593_s1 = scalar_lea.vmem %s3598_s27, 16 }
0x123e   : > { %p4594_p11 = scmp.ne.s32.totalorder %s3598_s27, %s4593_s1 }
0x1240   : > { %p4595_p12 = pnand %p4594_p11, %p4844_p5 }
0x1242   : > { %p4596_p13 = pneg %p4595_p12 }
0x1277   : > { %v2871_v3 = vpop.xlane.xlu0 %2870 }
0x1278   : > { %4546 = vrcp.f32 %v2871_v3 }
0x127b   : > { %v2750_v4 = vpop.permute.xlu0 %2749 }
0x127c   : > { %4274 = vmatmul.mubr.msk.f32.gmra.mxu1 %vm857_vm3, %v2750_v4 }
0x127d   : > { %4276 = vmatprep.mubr.msk.f32.mxu1 %vm4686_vm1, %v4685_v2 }
0x127f   : > { %v2752_v49 = vpop.permute.xlu0 %2751 }
0x1280   : > { %4277 = vmatmul.mubr.msk.f32.gmra.mxu1 %vm857_vm3, %v2752_v49 }
0x1281   : > { %4302 = vmatprep.mubr.msk.f32.mxu1 %vm4686_vm1, %v4685_v2 }
0x1285   : > { %v4547_v11 = vpop.eup %4546 }
0x1286   : > { %v2881_v14 = vmul.f32 %v4547_v11, %v4543_v61 }
0x129f   : > { %v2738_v51 = vpop.f32.mrf.mxu0 }
0x12a0   : > { %v2739_v5 = vadd.f32 %v2738_v51, %v4983_v41  ;;  %v3777_v51 = vld [vmem:[%s5948_s6 + $0x20] sm:$0xff] }
0x12a1   : > { %v4260_v6 = vpop.f32.mrf.mxu0 }
0x12a2   : > { %v2854_v7 = vsel %vm1054_vm5, %v2739_v5, -inf }
0x12a3   : > { %2855 = vmax.xlane.f32.xlu0 %v2854_v7  ;;  %v5603_v7 = vld [vmem:[%s5949_s7 + $0x1] ss:$0 sm:$0xff] }
0x12a7   : > { %v2743_v47 = vpop.f32.mrf.mxu0 }
0x12a8   : > { %v2744_v30 = vadd.f32 %v2743_v47, %v4983_v41 }
0x12a9   : > { %v4263_v8 = vpop.f32.mrf.mxu0 }
0x12aa   : > { %v2857_v37 = vsel %vm1054_vm5, %v2744_v30, -inf  ;;  %v2612_v8 = vmul.f32 %v5526_v54, %v5526_v54 }
0x12b0   : > { %v2904_v9 = vpop.xlane.xlu0 %2903 }
0x12b1   : > { %4548 = vrcp.f32 %v2904_v9  ;;  %v2619_v9 = vsel %vm1228_vm6, %v2612_v8, 0.0  ;;  %v3790_v8 = vld [vmem:[%s5889_s13 + $0x30] sm:$0xff] }
0x12b4   : > { %v2924_v10 = vpop.permute.xlu0 %2923 }
0x12b5   : > { %4284 = vmatpush3.msra.mxu0 %v2924_v10 }
0x12b6   : > { %4311 = vmatprep.subr.mxu0 %v4685_v2 }
0x12be   : > { %v4549_v12 = vpop.eup %4548 }
0x12bf   : > { %v2914_v13 = vmul.f32 %v4549_v12, %v4545_v0  ;;  %v3779_v0 = vld [vmem:[%s5948_s6 + $0x30] sm:$0xff] }
0x12c0   : > { %4297 = vmatpush3.msra.mxu1 %v3779_v0 }
0x12c1   : > { %v2917_v15 = vmul.f32 %v2914_v13, %v5471_v48  ;;  %4298 = vmatprep.subr.mxu1 %v4685_v2 }
0x12c2   : > { %4299 = vmatpush3.msra.mxu1 %v3778_v1 }
0x12c3   : > { %v2920_v16 = vsub.f32 %v2881_v14, %v2917_v15  ;;  %4300 = vmatprep.subr.mxu1 %v4685_v2 }
0x12c4   : > { %4301 = vmatpush3.msra.mxu1 %v3777_v51 }
0x12c5   : > { %4286 = vmatmul.mubr.msk.f32.vlgmr.msra.gmra.mxu0 %vm1054_vm5, %v2920_v16  ;;  %4328 = vmatprep.subr.mxu1 %v4685_v2 }
0x12c6   : > { %4288 = vmatprep.mubr.msk.f32.mxu0 %vm4686_vm1, %v4685_v2 }
0x132c   : > { %v2856_v17 = vpop.xlane.xlu0 %2855 }
0x132d   : > { %v2861_v20 = vsub.f32 %v2739_v5, %v2856_v17 }
0x132f   : > { %v2865_v24 = vmul.f32 1.442695, %v2861_v20 }
0x1331   : > { %4550 = vpow2.f32 %v2865_v24 }
0x133c   : > { %v2842_v26 = vpop.f32.mrf.mxu1 }
0x133d   : > { %v2843_v28 = vadd.f32 %v2842_v26, %v4983_v41 }
0x133e   : > { %v4275_v29 = vpop.f32.mrf.mxu1  ;;  %v5576_v27 = vpop.eup %4550 }
0x133f   : > { %v2887_v31 = vsel %vm1054_vm5, %v2843_v28, -inf  ;;  %v2872_v40 = vsel %vm1054_vm5, %v5576_v27, 0.0 }
0x1340   : > { %2888 = vmax.xlane.f32.xlu1 %v2887_v31  ;;  %v2847_v32 = vpop.f32.mrf.mxu1 }
0x1341   : > { %v2848_v33 = vadd.f32 %v2847_v32, %v4983_v41 }
0x1342   : > { %v4278_v34 = vpop.f32.mrf.mxu1 }
0x1343   : > { %v2890_v25 = vsel %vm1054_vm5, %v2848_v33, -inf }
0x1344   : > { %2891 = vmax.xlane.f32.xlu0 %v2890_v25  ;;  %2858 = vmax.xlane.f32.xlu1 %v2857_v37 }
0x1348   : > { %2614 = vadd.xlane.f32.xlu1 %v2613_v23 }
0x134c   : > { %2873 = vadd.xlane.f32.xlu1 %v2872_v40 }
0x1385   : > { %v3007_v41 = vpop.f32.mrf.mxu0 }
0x1386   : > { %v3021_v42 = vmul.f32 %v3007_v41, %v3007_v41 }
0x1387   : > { %v4287_v45 = vpop.f32.mrf.mxu0 }
0x1388   : > { %v3024_v50 = vsel %vm1228_vm6, %v3021_v42, 0.0 }
0x1389   : > { %3025 = vadd.xlane.f32.xlu0 %v3024_v50 }
0x13c9   : > { %v2889_v57 = vpop.xlane.xlu1 %2888 }
0x13ca   : > { %v2894_v53 = vsub.f32 %v2843_v28, %v2889_v57 }
0x13cc   : > { %v2898_v55 = vmul.f32 1.442695, %v2894_v53 }
0x13cd   : > { %v2892_v19 = vpop.xlane.xlu0 %2891  ;;  %v2859_v56 = vpop.xlane.xlu1 %2858 }
0x13ce   : > { %4552 = vpow2.f32 %v2898_v55  ;;  %v2895_v21 = vsub.f32 %v2848_v33, %v2892_v19  ;;  %v2862_v58 = vsub.f32 %v2744_v30, %v2859_v56 }
0x13d0   : > { %v2900_v59 = vmul.f32 1.442695, %v2895_v21  ;;  %v2867_v60 = vmul.f32 1.442695, %v2862_v58 }
0x13d1   : > { %v2615_v10 = vpop.xlane.xlu1 %2614 }
0x13d2   : > { %4554 = vpow2.f32 %v2900_v59  ;;  %v2622_v34 = vmul.f32 0.0625, %v2615_v10  ;;  %v3788_v10 = vld [vmem:[%s5889_s13 + $0x20] sm:$0xff] }
0x13d3   : > { %4556 = vpow2.f32 %v2867_v60 }
0x13d4   : > { %v2625_v36 = vadd.f32 1e-05, %v2622_v34 }
0x13d5   : > { %v2874_v11 = vpop.xlane.xlu1 %2873 }
0x13db   : > { %v4553_v18 = vpop.eup %4552 }
0x13dc   : > { %v2905_v22 = vsel %vm1054_vm5, %v4553_v18, 0.0 }
0x13dd   : > { %2906 = vadd.xlane.f32.xlu0 %v2905_v22 }
0x13df   : > { %v4555_v61 = vpop.eup %4554 }
0x13e0   : > { %v4557_v62 = vpop.eup %4556  ;;  %v2908_v52 = vsel %vm1054_vm5, %v4555_v61, 0.0 }
0x13e1   : > { %v2875_v35 = vsel %vm1054_vm5, %v4557_v62, 0.0  ;;  %2909 = vadd.xlane.f32.xlu0 %v2908_v52 }
0x13e2   : > { %2876 = vadd.xlane.f32.xlu1 %v2875_v35 }
0x1412   : > { %v3026_v3 = vpop.xlane.xlu0 %3025 }
0x1413   : > { %v3033_v4 = vmul.f32 0.0625, %v3026_v3 }
0x1415   : > { %v3036_v49 = vadd.f32 1e-05, %v3033_v4 }
0x1417   : > { %4558 = vrsqrt.f32 %v3036_v49 }
0x1418   : > { %4560 = vrcp.f32 %v2874_v11 }
0x1424   : > { %v4559_v5 = vpop.eup %4558 }
0x1425   : > { %v3042_v6 = vmul.f32 %v4559_v5, %v3007_v41  ;;  %v4561_v15 = vpop.eup %4560 }
0x1426   : > { %v2882_v20 = vmul.f32 %v4561_v15, %v5576_v27 }
0x1427   : > { %v3045_v47 = vmul.f32 %v5603_v7, %v3042_v6 }
0x1429   : > { %3051 = vrot.lane.b32.xlu0 %v3045_v47, %s5957_s29  ;;  %v3791_v47 = vld [vmem:[%s5889_s13 + $0x38] sm:$0xff] }
0x142a   : > { %4312 = vmatpush3.msra.mxu0 %v3791_v47 }
0x142b   : > { %4313 = vmatprep.subr.mxu0 %v4685_v2 }
0x142c   : > { %4314 = vmatpush3.msra.mxu0 %v3790_v8 }
0x142d   : > { %4315 = vmatprep.subr.mxu0 %v4685_v2 }
0x1448   : > { %2620 = vadd.xlane.f32.xlu0 %v2619_v9  ;;  %v3789_v9 = vld [vmem:[%s5889_s13 + $0x28] sm:$0xff] }
0x1449   : > { %4316 = vmatpush3.msra.mxu0 %v3789_v9 }
0x144a   : > { %4317 = vmatprep.subr.mxu0 %v4685_v2 }
0x144b   : > { %4318 = vmatpush3.msra.mxu0 %v3788_v10 }
0x144c   : > { %4369 = vmatprep.subr.mxu0 %v4685_v2 }
0x1466   : > { %v2907_v12 = vpop.xlane.xlu0 %2906 }
0x1467   : > { %4562 = vrcp.f32 %v2907_v12 }
0x146a   : > { %v2910_v13 = vpop.xlane.xlu0 %2909 }
0x146b   : > { %v2877_v14 = vpop.xlane.xlu1 %2876  ;;  %4564 = vrcp.f32 %v2910_v13 }
0x146c   : > { %4566 = vrcp.f32 %v2877_v14 }
0x146d   : > { %4568 = vrsqrt.f32 %v2625_v36 }
0x1474   : > { %v4563_v16 = vpop.eup %4562 }
0x1475   : > { %v2915_v17 = vmul.f32 %v4563_v16, %v4553_v18 }
0x1477   : > { %v2918_v24 = vmul.f32 %v2915_v17, %v5471_v48 }
0x1478   : > { %v4565_v26 = vpop.eup %4564 }
0x1479   : > { %v4567_v28 = vpop.eup %4566  ;;  %v2921_v29 = vsub.f32 %v2882_v20, %v2918_v24  ;;  %v2916_v30 = vmul.f32 %v4565_v26, %v4555_v61  ;;  %v2611_v61 = vmul.f32 %v5524_v43, %v5524_v43 }
0x147a   : > { %v2883_v31 = vmul.f32 %v4567_v28, %v4557_v62  ;;  %v4569_v25 = vpop.eup %4568  ;;  %v5655_v28 = vld [vmem:[%s5885_s9 + $0x1] ss:$0 sm:$0xff] }
0x147b   : > { %4289 = vmatmul.mubr.msk.f32.gmra.mxu0 %vm1054_vm5, %v2921_v29  ;;  %v2919_v32 = vmul.f32 %v2916_v30, %v5471_v48  ;;  %v2631_v37 = vmul.f32 %v4569_v25, %v5521_v39  ;;  %v2616_v1 = vsel %vm1228_vm6, %v2611_v61, 0.0  ;;  %v5660_v30 = vld [vmem:[%s5886_s10 + $0x1] ss:$0 sm:$0xff] }
0x147c   : > { %4291 = vmatprep.mubr.msk.f32.mxu0 %vm4686_vm1, %v4685_v2 }
0x147d   : > { %v2922_v33 = vsub.f32 %v2883_v31, %v2919_v32  ;;  %v2640_v23 = vmul.f32 %v5603_v7, %v2631_v37 }
0x147f   : > { %4292 = vmatmul.mubr.msk.f32.gmra.mxu0 %vm1054_vm5, %v2922_v33 }
0x1480   : > { %4319 = vmatprep.mubr.msk.f32.mxu0 %vm4686_vm1, %v4685_v2 }
0x149b   : > { %v3052_v27 = vpop.permute.xlu0 %3051 }
0x149c   : > { %v3060_v48 = vsel %vm1228_vm6, %v2640_v23, %v3052_v27 }
0x149d   : > { %4303 = vmatmul.mubr.msk.f32.vlgmr.msra.gmra.mxu1 %vm747_vm2, %v3060_v48 }
0x149e   : > { %4305 = vmatprep.mubr.msk.f32.mxu1 %vm4686_vm1, %v4685_v2 }
0x14d1   : > { %v2621_v11 = vpop.xlane.xlu0 %2620 }
0x14d2   : > { %v2624_v12 = vmul.f32 0.0625, %v2621_v11 }
0x14d4   : > { %v2627_v16 = vadd.f32 1e-05, %v2624_v12 }
0x153b   : > { %v3012_v40 = vpop.f32.mrf.mxu0 }
0x153c   : > { %v3022_v57 = vmul.f32 %v3012_v40, %v3012_v40 }
0x153d   : > { %v4290_v41 = vpop.f32.mrf.mxu0 }
0x153e   : > { %v3027_v19 = vsel %vm1228_vm6, %v3022_v57, 0.0  ;;  %v3810_v41 = vld [vmem:[%s5891_s15 + $0xe8] sm:$0xff] }
0x153f   : > { %v3017_v42 = vpop.f32.mrf.mxu0  ;;  %v3806_v57 = vld [vmem:[%s5891_s15 + $0xc8] sm:$0xff] }
0x1540   : > { %v3023_v55 = vmul.f32 %v3017_v42, %v3017_v42 }
0x1541   : > { %v4293_v45 = vpop.f32.mrf.mxu0 }
0x1542   : > { %v3030_v56 = vsel %vm1228_vm6, %v3023_v55, 0.0  ;;  %v3808_v45 = vld [vmem:[%s5891_s15 + $0xd8] sm:$0xff]  ;;  %v3803_v55 = vld [vmem:[%s5891_s15 + $0xb0] sm:$0xff] }
0x155d   : > { %v3143_v50 = vpop.f32.mrf.mxu1 }
0x155e   : > { %v3161_v53 = vsel %vm747_vm2, %v3143_v50, 0.0 }
0x155f   : > { %3162 = vadd.xlane.f32.xlu1 %v3161_v53  ;;  %v4304_v39 = vpop.f32.mrf.mxu1  ;;  %v3805_v53 = vld [vmem:[%s5891_s15 + $0xc0] sm:$0xff] }
0x1560   : > { %v3804_v39 = vld [vmem:[%s5891_s15 + $0xb8] sm:$0xff] }
0x1563   : > { %3028 = vadd.xlane.f32.xlu1 %v3027_v19  ;;  %v3802_v19 = vld [vmem:[%s5891_s15 + $0xa8] sm:$0xff] }
0x1567   : > { %3031 = vadd.xlane.f32.xlu1 %v3030_v56  ;;  %v3801_v56 = vld [vmem:[%s5891_s15 + $0xa0] sm:$0xff] }
0x15e8   : > { %v3163_v21 = vpop.xlane.xlu1 %3162 }
0x15e9   : > { %v3170_v58 = vmul.f32 0.03125, %v3163_v21  ;;  %v3800_v21 = vld [vmem:[%s5891_s15 + $0x98] sm:$0xff] }
0x15eb   : > { %v3173_v59 = vsub.f32 %v3143_v50, %v3170_v58  ;;  %v3807_v50 = vld [vmem:[%s5891_s15 + $0xd0] sm:$0xff] }
0x15ec   : > { %v3029_v60 = vpop.xlane.xlu1 %3028  ;;  %v3799_v58 = vld [vmem:[%s5891_s15 + $0x90] sm:$0xff] }
0x15ed   : > { %v3034_v18 = vmul.f32 0.0625, %v3029_v60  ;;  %v3176_v22 = vmul.f32 %v3173_v59, %v3173_v59  ;;  %v3797_v60 = vld [vmem:[%s5891_s15 + $0x80] sm:$0xff] }
0x15ef   : > { %v3037_v62 = vadd.f32 1e-05, %v3034_v18  ;;  %v3179_v52 = vsel %vm747_vm2, %v3176_v22, 0.0  ;;  %v5749_v18 = vld [vmem:[%s5890_s14 + $0x1] ss:$0 sm:$0xff] }
0x15f0   : > { %3180 = vadd.xlane.f32.xlu1 %v3179_v52  ;;  %v3032_v35 = vpop.xlane.xlu1 %3031 }
0x15f1   : > { %4570 = vrsqrt.f32 %v3037_v62  ;;  %v3035_v63 = vmul.f32 0.0625, %v3032_v35 }
0x15f3   : > { %v3038_v0 = vadd.f32 1e-05, %v3035_v63 }
0x15f4   : > { %2617 = vadd.xlane.f32.xlu1 %v2616_v1 }
0x15f5   : > { %4572 = vrsqrt.f32 %v3038_v0 }
0x15fe   : > { %v4571_v3 = vpop.eup %4570 }
0x15ff   : > { %v3043_v4 = vmul.f32 %v4571_v3, %v3012_v40 }
0x1601   : > { %v3046_v51 = vmul.f32 %v5603_v7, %v3043_v4 }
0x1602   : > { %v4573_v49 = vpop.eup %4572 }
0x1603   : > { %v3044_v5 = vmul.f32 %v4573_v49, %v3017_v42  ;;  %v3809_v42 = vld [vmem:[%s5891_s15 + $0xe0] sm:$0xff] }
0x1605   : > { %3053 = vrot.lane.b32.xlu1 %v3046_v51, %s5957_s29  ;;  %v3047_v6 = vmul.f32 %v5603_v7, %v3044_v5 }
0x1609   : > { %3055 = vrot.lane.b32.xlu1 %v3047_v6, %s5957_s29  ;;  %s4699_s29 = smov [#allocation4]  }
0x160a   : > { %s4597_s3 = sshll.u32 %s4699_s29, 4  ;;  %s4598_s3 = int_to_ptr.vmem [resolvable:$false] %s4597_s3 }
0x160b   : > { %s4599_s5 = scalar_lea.vmem %s4598_s3, 32  ;;  %p4600_p0 = scmp.lt.s32.totalorder %s3598_s27, %s4598_s3 }
0x160c   : > { %p4601_p1 = scmp.lt.s32.totalorder %s4599_s5, %s4593_s1 }
0x160e   : > { %p4602_p2 = por %p4601_p1, %p4600_p0 }
0x1610   : > { %p4603_p3 = pnand %p4602_p2, %p4596_p13 }
0x1679   : > { %v3181_v13 = vpop.xlane.xlu1 %3180 }
0x167a   : > { %v3188_v14 = vmul.f32 0.03125, %v3181_v13 }
0x167c   : > { %v3191_v15 = vadd.f32 1e-05, %v3188_v14 }
0x167d   : > { %v2618_v17 = vpop.xlane.xlu1 %2617 }
0x167e   : > { %4574 = vrsqrt.f32 %v3191_v15  ;;  %v2623_v20 = vmul.f32 0.0625, %v2618_v17 }
0x167f   : > { %4576 = vrsqrt.f32 %v2627_v16 }
0x1680   : > { %v2626_v24 = vadd.f32 1e-05, %v2623_v20 }
0x1681   : > { %v3054_v34 = vpop.permute.xlu1 %3053 }
0x1682   : > { %4578 = vrsqrt.f32 %v2626_v24 }
0x1685   : > { %v3056_v40 = vpop.permute.xlu1 %3055 }
0x168b   : > { %v4575_v26 = vpop.eup %4574 }
0x168c   : > { %v3197_v29 = vmul.f32 %v4575_v26, %v3173_v59  ;;  %v4577_v31 = vpop.eup %4576  ;;  %v3798_v59 = vld [vmem:[%s5891_s15 + $0x88] sm:$0xff] }
0x168d   : > { %v2633_v23 = vmul.f32 %v4577_v31, %v5526_v54 }
0x168e   : > { %v3206_v32 = vmul.f32 %v5655_v28, %v3197_v29  ;;  %v3814_v29 = vld [vmem:[%s5892_s16 + $0x1] ss:$0 sm:$0xff] }
0x168f   : > { %v4579_v33 = vpop.eup %4578 }
0x1690   : > { %v2632_v36 = vmul.f32 %v4579_v33, %v5524_v43  ;;  %v3215_v25 = vadd.f32 %v5660_v30, %v3206_v32  ;;  %v2642_v43 = vmul.f32 %v5603_v7, %v2633_v23 }
0x1692   : > { %v2641_v37 = vmul.f32 %v5603_v7, %v2632_v36  ;;  %v5668_v27 = vadd.f32 %v3215_v25, %v5361_v38  ;;  %v3062_v54 = vsel %vm1228_vm6, %v2642_v43, %v3056_v40  ;;  %v3812_v38 = vld [vmem:[%s5891_s15 + $0xf8] sm:$0xff]  ;;  %v3811_v7 = vld [vmem:[%s5891_s15 + $0xf0] sm:$0xff] }
0x1693   : > { %4329 = vmatpush3.msra.mxu1 %v3812_v38 }
0x1694   : > { %v3061_v48 = vsel %vm1228_vm6, %v2641_v37, %v3054_v34  ;;  %4320 = vmatmul.mubr.msk.f32.vlgmr.msra.gmra.mxu0 %vm747_vm2, %v5668_v27  ;;  %4330 = vmatprep.subr.mxu1 %v4685_v2 }
0x1695   : > { %4306 = vmatmul.mubr.msk.f32.gmra.mxu1 %vm747_vm2, %v3061_v48  ;;  %4322 = vmatprep.mubr.msk.f32.mxu0 %vm4686_vm1, %v4685_v2 }
0x1696   : > { %4308 = vmatprep.mubr.msk.f32.mxu1 %vm4686_vm1, %v4685_v2  ;;  %4331 = vmatpush3.msra.mxu1 %v3811_v7 }
0x1697   : > { %4332 = vmatprep.subr.mxu1 %v4685_v2 }
0x1698   : > { %4333 = vmatpush3.msra.mxu1 %v3810_v41 }
0x1699   : > { %4309 = vmatmul.mubr.msk.f32.gmra.mxu1 %vm747_vm2, %v3062_v54  ;;  %4334 = vmatprep.subr.mxu1 %v4685_v2 }
0x169a   : > { %4360 = vmatprep.mubr.msk.f32.mxu1 %vm4686_vm1, %v4685_v2  ;;  %4335 = vmatpush3.msra.mxu1 %v3809_v42 }
0x169b   : > { %4336 = vmatprep.subr.mxu1 %v4685_v2 }
0x169c   : > { %4337 = vmatpush3.msra.mxu1 %v3808_v45 }
0x169d   : > { %4338 = vmatprep.subr.mxu1 %v4685_v2 }
0x169e   : > { %4339 = vmatpush3.msra.mxu1 %v3807_v50 }
0x169f   : > { %4340 = vmatprep.subr.mxu1 %v4685_v2 }
0x16a0   : > { %4341 = vmatpush3.msra.mxu1 %v3806_v57 }
0x16a1   : > { %4342 = vmatprep.subr.mxu1 %v4685_v2 }
0x16a2   : > { %4343 = vmatpush3.msra.mxu1 %v3805_v53 }
0x16a3   : > { %4344 = vmatprep.subr.mxu1 %v4685_v2 }
0x16a4   : > { %4345 = vmatpush3.msra.mxu1 %v3804_v39 }
0x16a5   : > { %4346 = vmatprep.subr.mxu1 %v4685_v2 }
0x16a6   : > { %4347 = vmatpush3.msra.mxu1 %v3803_v55 }
0x16a7   : > { %4348 = vmatprep.subr.mxu1 %v4685_v2 }
0x16a8   : > { %4349 = vmatpush3.msra.mxu1 %v3802_v19 }
0x16a9   : > { %4350 = vmatprep.subr.mxu1 %v4685_v2 }
0x16aa   : > { %4351 = vmatpush3.msra.mxu1 %v3801_v56  ;;  %v3488_v56 = vld [vmem:[%s5893_s17 + $0x8] sm:$0xff] }
0x16ab   : > { %4352 = vmatprep.subr.mxu1 %v4685_v2 }
0x16ac   : > { %4353 = vmatpush3.msra.mxu1 %v3800_v21  ;;  %v3487_v21 = vld [vmem:[%s5893_s17] sm:$0xff] }
0x16ad   : > { %4354 = vmatprep.subr.mxu1 %v4685_v2 }
0x16ae   : > { %4355 = vmatpush3.msra.mxu1 %v3799_v58 }
0x16af   : > { %4356 = vmatprep.subr.mxu1 %v4685_v2 }
0x16b0   : > { %4357 = vmatpush3.msra.mxu1 %v3798_v59 }
0x16b1   : > { %4358 = vmatprep.subr.mxu1 %v4685_v2 }
0x16b2   : > { %4359 = vmatpush3.msra.mxu1 %v3797_v60 }
0x1754   : > { %v3309_v22 = vpop.f32.mrf.mxu0 }
0x1755   : > { %v3310_v61 = vadd.f32 %v5749_v18, %v3309_v22  ;;  %v3148_v62 = vpop.f32.mrf.mxu1 }
0x1756   : > { %v4321_v52 = vpop.f32.mrf.mxu0  ;;  %v3164_v35 = vsel %vm747_vm2, %v3148_v62, 0.0 }
0x1757   : > { %v3326_v63 = vmul.f32 0.044715, %v3310_v61  ;;  %3165 = vadd.xlane.f32.xlu1 %v3164_v35  ;;  %v4307_v0 = vpop.f32.mrf.mxu1  ;;  %v3323_v8 = vmul.f32 0.5, %v3310_v61 }
0x1759   : > { %v3329_v1 = vmul.f32 %v3326_v63, %v3310_v61  ;;  %v3153_v3 = vpop.f32.mrf.mxu1 }
0x175a   : > { %v3167_v4 = vsel %vm747_vm2, %v3153_v3, 0.0 }
0x175b   : > { %v3332_v49 = vmul.f32 %v3329_v1, %v3310_v61  ;;  %3168 = vadd.xlane.f32.xlu0 %v3167_v4  ;;  %v4310_v51 = vpop.f32.mrf.mxu1 }
0x175d   : > { %v3335_v5 = vadd.f32 %v3332_v49, %v3310_v61 }
0x175f   : > { %v3338_v6 = vmul.f32 0.7978846, %v3335_v5 }
0x1761   : > { %4580 = vtanh.f32 %v3338_v6 }
0x176e   : > { %v4581_v47 = vpop.eup %4580 }
0x176f   : > { %v3344_v9 = vadd.f32 1.0, %v4581_v47 }
0x1771   : > { %v3347_v10 = vmul.f32 %v3344_v9, %v3323_v8 }
0x1773   : > { %4361 = vmatmul.mubr.f32.vlgmr.msra.gmra.mxu1 %v3347_v10 }
0x1774   : > { %4363 = vmatprep.mubr.msk.f32.mxu1 %vm4686_vm1, %v4685_v2 }
0x17e0   : > { %v3166_v11 = vpop.xlane.xlu1 %3165 }
0x17e1   : > { %v3171_v12 = vmul.f32 0.03125, %v3166_v11  ;;  %v3818_v11 = vld [vmem:[%s5888_s12 + $0x1] ss:$0 sm:$0xff] }
0x17e3   : > { %v3174_v13 = vsub.f32 %v3148_v62, %v3171_v12 }
0x17e4   : > { %v3169_v14 = vpop.xlane.xlu0 %3168 }
0x17e5   : > { %v3172_v15 = vmul.f32 0.03125, %v3169_v14  ;;  %v3177_v16 = vmul.f32 %v3174_v13, %v3174_v13 }
0x17e7   : > { %v3175_v17 = vsub.f32 %v3153_v3, %v3172_v15  ;;  %v3182_v20 = vsel %vm747_vm2, %v3177_v16, 0.0 }
0x17e8   : > { %3183 = vadd.xlane.f32.xlu0 %v3182_v20 }
0x17e9   : > { %v3178_v24 = vmul.f32 %v3175_v17, %v3175_v17 }
0x17eb   : > { %v3185_v26 = vsel %vm747_vm2, %v3178_v24, 0.0 }
0x17ec   : > { %3186 = vadd.xlane.f32.xlu0 %v3185_v26 }
0x1833   : > { %v3441_v31 = vpop.f32.mrf.mxu1 }
0x1834   : > { %v3442_v32 = vadd.f32 %v3814_v29, %v3441_v31 }
0x1835   : > { %v4362_v33 = vpop.f32.mrf.mxu1 }
0x1836   : > { %v3457_v34 = vsel %vm747_vm2, %v3442_v32, 0.0 }
0x1837   : > { %3458 = vadd.xlane.f32.xlu0 %v3457_v34 }
0x1871   : > { %v3184_v36 = vpop.xlane.xlu0 %3183 }
0x1872   : > { %v3189_v25 = vmul.f32 0.03125, %v3184_v36 }
0x1874   : > { %v3192_v37 = vadd.f32 1e-05, %v3189_v25 }
0x1875   : > { %v3187_v23 = vpop.xlane.xlu0 %3186 }
0x1876   : > { %4582 = vrsqrt.f32 %v3192_v37  ;;  %v3190_v48 = vmul.f32 0.03125, %v3187_v23 }
0x1878   : > { %v3193_v40 = vadd.f32 1e-05, %v3190_v48 }
0x187a   : > { %4584 = vrsqrt.f32 %v3193_v40 }
0x1883   : > { %v4583_v43 = vpop.eup %4582 }
0x1884   : > { %v3198_v54 = vmul.f32 %v4583_v43, %v3174_v13 }
0x1886   : > { %v3207_v38 = vmul.f32 %v5655_v28, %v3198_v54 }
0x1887   : > { %v4585_v7 = vpop.eup %4584 }
0x1888   : > { %v3216_v41 = vadd.f32 %v5660_v30, %v3207_v38  ;;  %v3199_v42 = vmul.f32 %v4585_v7, %v3175_v17 }
0x188a   : > { %v3219_v45 = vadd.f32 %v3216_v41, %v5368_v44  ;;  %v3208_v50 = vmul.f32 %v5655_v28, %v3199_v42 }
0x188c   : > { %4323 = vmatmul.mubr.msk.f32.gmra.mxu0 %vm747_vm2, %v3219_v45  ;;  %v3217_v57 = vadd.f32 %v5660_v30, %v3208_v50  ;;  %v3490_v30 = vld [vmem:[%s5893_s17 + $0x18] sm:$0xff] }
0x188d   : > { %4325 = vmatprep.mubr.msk.f32.mxu0 %vm4686_vm1, %v4685_v2  ;;  %4370 = vmatpush3.msra.mxu0 %v3490_v30 }
0x188e   : > { %v3220_v53 = vadd.f32 %v3217_v57, %v5375_v46  ;;  %4371 = vmatprep.subr.mxu0 %v4685_v2  ;;  %v3489_v46 = vld [vmem:[%s5893_s17 + $0x10] sm:$0xff] }
0x188f   : > { %4372 = vmatpush3.msra.mxu0 %v3489_v46 }
0x1890   : > { %4326 = vmatmul.mubr.msk.f32.gmra.mxu0 %vm747_vm2, %v3220_v53  ;;  %4373 = vmatprep.subr.mxu0 %v4685_v2 }
0x1891   : > { %4377 = vmatprep.mubr.msk.f32.mxu0 %vm4686_vm1, %v4685_v2  ;;  %4374 = vmatpush3.msra.mxu0 %v3488_v56 }
0x1892   : > { %4375 = vmatprep.subr.mxu0 %v4685_v2 }
0x1893   : > { %4376 = vmatpush3.msra.mxu0 %v3487_v21 }
0x18c0   : > { %v3459_v39 = vpop.xlane.xlu0 %3458 }
0x18c1   : > { %v3460_v55 = vmul.f32 0.03125, %v3459_v39 }
0x18c3   : > { %v3461_v19 = vsub.f32 %v3442_v32, %v3460_v55 }
0x18c5   : > { %v3462_v44 = vmul.f32 %v3461_v19, %v3461_v19 }
0x18c7   : > { %v3463_v28 = vsel %vm747_vm2, %v3462_v44, 0.0 }
0x18c8   : > { %3464 = vadd.xlane.f32.xlu0 %v3463_v28 }
0x194c   : > { %v3314_v58 = vpop.f32.mrf.mxu0 }
0x194d   : > { %v3315_v59 = vadd.f32 %v5749_v18, %v3314_v58 }
0x194e   : > { %v4324_v60 = vpop.f32.mrf.mxu0 }
0x194f   : > { %v3327_v22 = vmul.f32 0.044715, %v3315_v59  ;;  %v3324_v14 = vmul.f32 0.5, %v3315_v59 }
0x1950   : > { %v3319_v61 = vpop.f32.mrf.mxu0 }
0x1951   : > { %v3330_v62 = vmul.f32 %v3327_v22, %v3315_v59  ;;  %v3320_v52 = vadd.f32 %v5749_v18, %v3319_v61  ;;  %v3465_v35 = vpop.xlane.xlu0 %3464  ;;  %v3817_v18 = vld [vmem:[%s5887_s11 + $0x1] ss:$0 sm:$0xff] }
0x1952   : > { %v3466_v63 = vmul.f32 0.03125, %v3465_v35  ;;  %v4327_v0 = vpop.f32.mrf.mxu0 }
0x1953   : > { %v3328_v1 = vmul.f32 0.044715, %v3320_v52  ;;  %v3333_v3 = vmul.f32 %v3330_v62, %v3315_v59  ;;  %v3325_v26 = vmul.f32 0.5, %v3320_v52 }
0x1954   : > { %v3467_v4 = vadd.f32 1e-05, %v3466_v63 }
0x1955   : > { %v3331_v49 = vmul.f32 %v3328_v1, %v3320_v52  ;;  %v3336_v51 = vadd.f32 %v3333_v3, %v3315_v59 }
0x1956   : > { %4586 = vrsqrt.f32 %v3467_v4 }
0x1957   : > { %v3339_v5 = vmul.f32 0.7978846, %v3336_v51  ;;  %v3334_v6 = vmul.f32 %v3331_v49, %v3320_v52 }
0x1959   : > { %4588 = vtanh.f32 %v3339_v5  ;;  %v3337_v47 = vadd.f32 %v3334_v6, %v3320_v52 }
0x195b   : > { %v3340_v8 = vmul.f32 0.7978846, %v3337_v47 }
0x195d   : > { %4590 = vtanh.f32 %v3340_v8 }
0x1963   : > { %v4587_v9 = vpop.eup %4586 }
0x1964   : > { %v3469_v10 = vmul.f32 %v4587_v9, %v3461_v19 }
0x1966   : > { %v4589_v12 = vpop.eup %4588  ;;  %v3476_v13 = vmul.f32 %v3817_v18, %v3469_v10 }
0x1967   : > { %v3345_v15 = vadd.f32 1.0, %v4589_v12 }
0x1968   : > { %v3483_v16 = vadd.f32 %v3818_v11, %v3476_v13 }
0x1969   : > { %v3348_v17 = vmul.f32 %v3345_v15, %v3324_v14 }
0x196a   : > { %v4591_v20 = vpop.eup %4590  ;;  %v3484_v24 = vadd.f32 %v3483_v16, %v5668_v27 }
0x196b   : > { %4364 = vmatmul.mubr.f32.gmra.mxu1 %v3348_v17  ;;  %v3346_v29 = vadd.f32 1.0, %v4591_v20 }
0x196c   : > { %4378 = vmatmul.mubr.msk.f32.vlgmr.msra.gmra.mxu0 %vm747_vm2, %v3484_v24  ;;  %4366 = vmatprep.mubr.msk.f32.mxu1 %vm4686_vm1, %v4685_v2  ;;  %3486 = vst.msk [vmem:[%s631_s0] sm:$0x1] %vm3485_vm7, %v3484_v24 }
0x196d   : > { %v3349_v31 = vmul.f32 %v3346_v29, %v3325_v26 }
0x196f   : > { %4367 = vmatmul.mubr.f32.gmra.mxu1 %v3349_v31 }
0x1970   : > { %4606 = shalt.err (!%p4603_p3)
}
0x1971   : > { %s4607_s6 = scalar_lea.hbm %s3595_s28, 16  ;;  %s4611_s26 = scalar_lea.hbm %s5896_s20, 32 }
0x1972   : > { %p4608_p4 = scmp.ne.s32.totalorder %s3595_s28, %s4607_s6  ;;  %p4612_p9 = scmp.lt.s32.totalorder %s3595_s28, %s5896_s20 }
0x1973   : > { %p4613_p10 = scmp.lt.s32.totalorder %s4611_s26, %s4607_s6 }
0x1974   : > { %p4609_p7 = pnand %p4608_p4, %p4844_p5 }
0x1975   : > { %p4614_p11 = por %p4613_p10, %p4612_p9 }
0x1976   : > { %p4610_p8 = pneg %p4609_p7 }
0x1978   : > { %p4615_p12 = pnand %p4614_p11, %p4610_p8 }
0x197a   : > { %4618 = shalt.err (!%p4615_p12)
}
0x197b   : > { %4381 = dma.vmem_to_hbm [thread:$0]  (%p4844_p5), %s3598_s27, 16, %s3595_s28, %s3572_s23   ;;  %v3491_v2 = vld [vmem:[%s5894_s18] sm:$0x1]  ;;  %vm3565_vm8 = vcmask 73728  }
0x197c   : > { %s625_s1 = scalar_lea.vmem [#allocation2], %s5799_s19  ;;  %s5958_s6 = sshll.u32 %s4827_s2, 4 }
0x197d   : > { %s3584_s29 = sshll.u32 %s625_s1, 4  ;;  %s5959_s0 = sld [smem:[#allocation22_spill]]  ;;  %s5836_s29 = int_to_ptr.vmem [resolvable:$true] %s3584_s29 }
0x197e   : > { %s3568_s28 = scalar_lea.sflag [#allocation3], %s5799_s19  ;;  %s4619_s27 = scalar_lea.vmem %s5836_s29, 16 }
0x197f   : > { %p4620_p13 = scmp.ne.s32.totalorder %s5836_s29, %s4619_s27  ;;  %s4700_s2 = smov [#allocation2]  }
0x1980   : > { %s4623_s23 = sshll.u32 %s4700_s2, 4  ;;  %s4624_s23 = int_to_ptr.vmem [resolvable:$false] %s4623_s23 }
0x1981   : > { %p4621_p0 = pnand %p4620_p13, %p4844_p5  ;;  %s4625_s26 = scalar_lea.vmem %s4624_s23, 32 }
0x1982   : > { %p4626_p2 = scmp.lt.s32.totalorder %s5836_s29, %s4624_s23  ;;  %p4627_p3 = scmp.lt.s32.totalorder %s4625_s26, %s4619_s27 }
0x1983   : > { %s5834_s24 = scalar_lea.hbm %s5959_s0, %s5958_s6  ;;  %p4622_p1 = pneg %p4621_p0 }
0x1984   : > { %p4628_p4 = por %p4627_p3, %p4626_p2 }
0x1986   : > { %p4629_p7 = pnand %p4628_p4, %p4622_p1 }
0x1a2b   : > { %v3446_v27 = vpop.f32.mrf.mxu1 }
0x1a2c   : > { %v3561_v32 = vpop.f32.mrf.mxu0 }
0x1a2d   : > { %v3562_v33 = vadd.f32 %v3561_v32, %v3491_v2  ;;  %v4365_v34 = vpop.f32.mrf.mxu1 }
0x1a2e   : > { %v4379_v36 = vpop.f32.mrf.mxu0 }
0x1a2f   : > { %v3450_v25 = vpop.f32.mrf.mxu1  ;;  %3566 = vst.msk [vmem:[%s625_s1] sm:$0x1] %vm3565_vm8, %v3562_v33 }
0x1a30   : > { %4632 = shalt.err (!%p4629_p7)
}
0x1a31   : > { %s4633_s5 = scalar_lea.hbm %s5834_s24, 16  ;;  %s4637_s1 = scalar_lea.hbm %s5959_s0, 32 }
0x1a32   : > { %p4634_p8 = scmp.ne.s32.totalorder %s5834_s24, %s4633_s5  ;;  %p4638_p11 = scmp.lt.s32.totalorder %s5834_s24, %s5959_s0 }
0x1a33   : > { %p4639_p12 = scmp.lt.s32.totalorder %s4637_s1, %s4633_s5 }
0x1a34   : > { %p4635_p9 = pnand %p4634_p8, %p4844_p5 }
0x1a35   : > { %p4640_p13 = por %p4639_p12, %p4638_p11 }
0x1a36   : > { %p4636_p10 = pneg %p4635_p9 }
0x1a38   : > { %p4641_p0 = pnand %p4640_p13, %p4636_p10 }
0x1a3a   : > { %4644 = shalt.err (!%p4641_p0)
}
0x1a3b   : > { %4380 = dma.vmem_to_hbm [thread:$0]  (%p4844_p5), %s5836_s29, 16, %s5834_s24, %s3568_s28   ;;  %v4368_v37 = vpop.f32.mrf.mxu1 }
0x1a3c PF: > { %s5960_s25 = sld [smem:[#allocation10_spill]] }
0x1a3d   : > { %s5961_s27 = sld [smem:[#allocation8_spill]] }
0x1a42   : > { %p4391_p1 = scmp.ge.s32.totalorder %s5960_s25, 2 }
0x1a43   : > { %s3609_s23 = sand.u32 1, %s5961_s27  }
0x1a44   : > { %p4385_p2 = pnand %p4391_p1, %p4848_p6  ;;  %s3610_s26 = scalar_lea.sflag [#allocation3], %s3609_s23 }
0x1a46   : > { %p4386_p3 = pneg %p4385_p2 }
0x1a48   : > { %4662 = dma.done.wait (%p4386_p3), %s3610_s26, 16  }
0x1a49   : > { %4664 = vsyncadd (%p4386_p3), %s3610_s26, 4294967280  ;;  %s3618_s5 = scalar_lea.sflag [#allocation5], %s3609_s23 }
0x1a4a   : > { %4666 = dma.done.wait (%p4386_p3), %s3618_s5, 16  }
0x1a4b   : > { %4668 = vsyncadd (%p4386_p3), %s3618_s5, 4294967280  ;;  %s5963_s24 = sld [smem:[#allocation11_spill]]  ;;  %s5966_s1 = smov %s4675_s22 }
0x1a4c   : > { %s5964_s4 = sld [smem:[#allocation9_spill]] }
0x1a4d   : > { %s5965_s23 = sld [smem:[#allocation12_spill]] }
0x1a51   : > { %p34_p5 = scmp.ge.s32.totalorder %s5963_s24, 4  }
0x1a52   : > { %s5967_s22 = smov %s5964_s4 }
0x1a53   :  { %36 = sbr.rel (!%p34_p5) target bundleno = 15 (0xf), region = 160 }
0x1a58   :  { %3622 = vsyncpa [#allocation3], 1 }
0x1a59   :  { %3624 = vsyncpa [#allocation3 + $0x1], 1 }
0x1a5a   :  { %3625 = vsyncpa [#allocation5], 1 }
0x1a5b   :  { %3627 = vsyncpa [#allocation5 + $0x1], 1 }

</bundles_post_ra>
